<compile_context>
chip_gen: v7x
topology: tpu7x:2x2x1
jax: 0.10.0
libtpu: 0.0.40
codegen_flags: <defaults>
</compile_context>

<pallas_src>
from functools import partial

import jax
import jax.numpy as jnp
from jax.experimental import pallas as pl
from jax.experimental.pallas import tpu as pltpu


# ----------------------------------------------------------------------------
# Tiling configuration
# ----------------------------------------------------------------------------
_TM = 512                         # row tile for linear layers
_TN_CAP = 1024                    # max output-feature tile for linear layers
_LN_TILE = 1024                   # row tile for layernorm
_ATTN_MB_CAP = 64                 # max sequences per attention grid step
_ATTN_VMEM_BUDGET = 8 * 1024 * 1024   # per-step (in+out, single buffer) block budget
_VMEM_LIMIT = 48 * 1024 * 1024    # scoped VMEM limit (< 64 MiB physical on v7x)


def _divisor_tile(dim, cap, granule=128):
    """Largest multiple of `granule` <= cap that divides `dim`; full dim if small / no divisor."""
    if dim <= cap:
        return dim
    t = (cap // granule) * granule
    while t >= granule:
        if dim % t == 0:
            return t
        t -= granule
    return dim


# ----------------------------------------------------------------------------
# In-kernel math helpers
# ----------------------------------------------------------------------------
def _erf(x):
    """erf via Abramowitz & Stegun 7.1.26 (max abs err ~1.5e-7); VPU/EUP-only ops."""
    a1, a2, a3, a4, a5 = 0.254829592, -0.284496736, 1.421413741, -1.453152027, 1.061405429
    pc = 0.3275911
    ax = jnp.abs(x)
    t = 1.0 / (1.0 + pc * ax)
    poly = ((((a5 * t + a4) * t + a3) * t + a2) * t + a1) * t
    y = 1.0 - poly * jnp.exp(-ax * ax)
    return jnp.where(x < 0.0, -y, y)


def _gelu_exact(x):
    """Exact (erf-based) GELU matching nn.GELU default, computed in f32."""
    return 0.5 * x * (1.0 + _erf(x * 0.7071067811865476))


# ----------------------------------------------------------------------------
# Pallas kernels
# ----------------------------------------------------------------------------
def linear_kernel(x_ref, w_ref, b_ref, o_ref, *, activation):
    # bf16 operands on the MXU, f32 accumulation + epilogue (bias, exact-erf GELU).
    x = x_ref[...].astype(jnp.bfloat16)
    w = w_ref[...].astype(jnp.bfloat16)
    y = jnp.dot(x, w, preferred_element_type=jnp.float32)
    y = y + b_ref[...].astype(jnp.float32)
    if activation == "gelu":
        y = _gelu_exact(y)
    o_ref[...] = y.astype(o_ref.dtype)


def layernorm_kernel(x_ref, g_ref, b_ref, o_ref, *, eps):
    x = x_ref[...].astype(jnp.float32)
    mu = jnp.mean(x, axis=-1, keepdims=True)
    var = jnp.mean((x - mu) ** 2, axis=-1, keepdims=True)
    y = (x - mu) * jax.lax.rsqrt(var + eps)
    o_ref[...] = (y * g_ref[...] + b_ref[...]).astype(o_ref.dtype)


def attention_kernel(qkv_ref, o_ref, *, num_heads, scale):
    """qkv_ref: (mb, N, 3D) fused qkv rows; o_ref: (mb, N, D). Heads split in-kernel."""
    D = qkv_ref.shape[-1] // 3
    dh = D // num_heads
    outs = []
    for h in range(num_heads):                       # static, unrolled head loop
        lo = h * dh
        # fold the softmax scale into q before the MXU matmul (smaller surface than N x N)
        q = (qkv_ref[:, :, lo:lo + dh].astype(jnp.float32) * scale).astype(jnp.bfloat16)
        k = qkv_ref[:, :, D + lo:D + lo + dh].astype(jnp.bfloat16)
        v = qkv_ref[:, :, 2 * D + lo:2 * D + lo + dh].astype(jnp.bfloat16)
        s = jnp.einsum("bqd,bkd->bqk", q, k, preferred_element_type=jnp.float32)
        s = s - jnp.max(s, axis=-1, keepdims=True)
        p = jnp.exp(s)
        p = p * pl.reciprocal(jnp.sum(p, axis=-1, keepdims=True), approx=True)
        o = jnp.einsum("bqk,bkd->bqd", p.astype(jnp.bfloat16), v,
                       preferred_element_type=jnp.float32)
        outs.append(o)
    # single lane-dense store of the full (mb, N, D) block
    o_ref[...] = jnp.concatenate(outs, axis=-1).astype(o_ref.dtype)


# ----------------------------------------------------------------------------
# Pallas wrappers
# ----------------------------------------------------------------------------
def linear(x, w, b, activation="none"):
    """x: (rows, din) @ w: (din, dout) + b: (dout,). No host-side padding / slicing."""
    rows, din = x.shape
    dout = w.shape[1]
    tm = rows if rows <= _TM else _TM
    tn = _divisor_tile(dout, _TN_CAP)
    nm = pl.cdiv(rows, tm)
    nn = dout // tn
    return pl.pallas_call(
        partial(linear_kernel, activation=activation),
        out_shape=jax.ShapeDtypeStruct((rows, dout), x.dtype),
        # rows innermost: the (din, tn) weight block stays resident across the row sweep.
        grid=(nn, nm),
        in_specs=[
            pl.BlockSpec((tm, din), lambda j, i: (i, 0)),
            pl.BlockSpec((din, tn), lambda j, i: (0, j)),
            pl.BlockSpec((1, tn), lambda j, i: (0, j)),
        ],
        out_specs=pl.BlockSpec((tm, tn), lambda j, i: (i, j)),
        compiler_params=pltpu.CompilerParams(
            dimension_semantics=("parallel", "parallel"),
            vmem_limit_bytes=_VMEM_LIMIT),
    )(x, w, b.reshape(1, dout))


def layernorm(x, g, b, eps=1e-6):
    shape = x.shape
    D = shape[-1]
    x2 = x.reshape(-1, D)
    rows = x2.shape[0]
    tile = rows if rows <= _LN_TILE else _LN_TILE
    out = pl.pallas_call(
        partial(layernorm_kernel, eps=eps),
        out_shape=jax.ShapeDtypeStruct((rows, D), x.dtype),
        grid=(pl.cdiv(rows, tile),),
        in_specs=[
            pl.BlockSpec((tile, D), lambda i: (i, 0)),
            pl.BlockSpec((1, D), lambda i: (0, 0)),
            pl.BlockSpec((1, D), lambda i: (0, 0)),
        ],
        out_specs=pl.BlockSpec((tile, D), lambda i: (i, 0)),
        compiler_params=pltpu.CompilerParams(
            dimension_semantics=("parallel",),
            vmem_limit_bytes=_VMEM_LIMIT),
    )(x2, g.reshape(1, D), b.reshape(1, D))
    return out.reshape(shape)


def attention(x, p, num_heads):
    """Multi-head self-attention (qkv_bias=True) matching the PyTorch Attention module.

    x: (M, N, D) -> (M, N, D). The fused qkv output is consumed directly by the attention
    kernel in (M, N, 3D) layout (free reshape), so no head-split transposes hit HBM.
    """
    M, N, D = x.shape
    dh = D // num_heads
    scale = dh ** -0.5
    qkv = linear(x.reshape(M * N, D), p["qkv_w"], p["qkv_b"])        # (M*N, 3D)
    qkv = qkv.reshape(M, N, 3 * D)                                    # free reshape

    per_seq_bytes = N * 4 * D * 4                                     # qkv block + out block
    mb = max(1, min(M, _ATTN_MB_CAP, _ATTN_VMEM_BUDGET // per_seq_bytes))

    o = pl.pallas_call(
        partial(attention_kernel, num_heads=num_heads, scale=scale),
        out_shape=jax.ShapeDtypeStruct((M, N, D), x.dtype),
        grid=(pl.cdiv(M, mb),),
        in_specs=[pl.BlockSpec((mb, N, 3 * D), lambda i: (i, 0, 0))],
        out_specs=pl.BlockSpec((mb, N, D), lambda i: (i, 0, 0)),
        compiler_params=pltpu.CompilerParams(
            dimension_semantics=("parallel",),
            vmem_limit_bytes=_VMEM_LIMIT),
    )(qkv)

    o = linear(o.reshape(M * N, D), p["proj_w"], p["proj_b"])
    return o.reshape(M, N, D)


# ----------------------------------------------------------------------------
# Model components (glue in JAX, compute in Pallas)
# ----------------------------------------------------------------------------
def block_forward(x, blk, B, T, W, num_heads):
    """Divided space-time attention block (DropPath/Dropout = identity, eval)."""
    seq, D = x.shape[1], x.shape[2]
    N = (seq - 1) // T
    H = N // W

    # --- temporal attention ---
    xt = x[:, 1:, :]                                                  # (B, HWT, D)
    xt_r = xt.reshape(B, H, W, T, D).reshape(B * H * W, T, D)
    t_in = layernorm(xt_r, blk["tnorm1_g"], blk["tnorm1_b"])
    res_t = attention(t_in, blk["tattn"], num_heads)                  # (BHW, T, D)
    res_t = res_t.reshape(B, H * W * T, D)
    res_t = linear(res_t.reshape(-1, D), blk["tfc_w"], blk["tfc_b"]).reshape(B, H * W * T, D)
    xt = x[:, 1:, :] + res_t

    # --- spatial attention ---
    init_cls = x[:, 0:1, :]                                           # (B, 1, D)
    cls_rep = jnp.repeat(init_cls, T, axis=1).reshape(B * T, 1, D)
    xs = xt.reshape(B, H, W, T, D).transpose(0, 3, 1, 2, 4).reshape(B * T, H * W, D)
    xs = jnp.concatenate([cls_rep, xs], axis=1)                       # (BT, HW+1, D)
    s_in = layernorm(xs, blk["norm1_g"], blk["norm1_b"])
    res_s = attention(s_in, blk["attn"], num_heads)                   # (BT, HW+1, D)
    cls_tok = res_s[:, 0, :].reshape(B, T, D).mean(axis=1, keepdims=True)
    res_sp = res_s[:, 1:, :].reshape(B, T, H, W, D).transpose(0, 2, 3, 1, 4)
    res_sp = res_sp.reshape(B, H * W * T, D)

    x = jnp.concatenate([init_cls, xt], axis=1) + jnp.concatenate([cls_tok, res_sp], axis=1)

    # --- MLP ---
    h = layernorm(x, blk["norm2_g"], blk["norm2_b"])
    h = linear(h.reshape(-1, D), blk["fc1_w"], blk["fc1_b"], activation="gelu")
    h = linear(h, blk["fc2_w"], blk["fc2_b"]).reshape(x.shape)
    return x + h


def timesformer_forward(video, params, *, patch, num_heads, T):
    """video: (B, C, T, H, W) float32 -> logits (B, num_classes)."""
    B, C, Tv, Himg, Wimg = video.shape
    p = patch
    nh, nw = Himg // p, Wimg // p
    Np = nh * nw

    # patchify:  b c t h w -> (b t) (nh nw) (c ph pw)   (Conv2d stride=kernel == matmul)
    x = video.transpose(0, 2, 1, 3, 4).reshape(B * T, C, nh, p, nw, p)
    x = x.transpose(0, 2, 4, 1, 3, 5).reshape(B * T * Np, C * p * p)
    x = linear(x, params["patch_w"], params["patch_b"])
    D = x.shape[-1]
    x = x.reshape(B * T, Np, D)

    # cls token + positional embedding
    cls = jnp.broadcast_to(params["cls_token"], (B * T, 1, D))
    x = jnp.concatenate([cls, x], axis=1)                             # (BT, Np+1, D)
    x = x + params["pos_embed"]

    # time embedding (attention_type != 'space_only')
    cls_tokens = x[:B, 0, :][:, None, :]                              # (B, 1, D)
    xp = x[:, 1:].reshape(B, T, Np, D).transpose(0, 2, 1, 3).reshape(B * Np, T, D)
    xp = xp + params["time_embed"]
    xp = xp.reshape(B, Np * T, D)
    x = jnp.concatenate([cls_tokens, xp], axis=1)                     # (B, Np*T+1, D)

    for blk in params["blocks"]:
        x = block_forward(x, blk, B, T, nw, num_heads)

    x = layernorm(x, params["norm_g"], params["norm_b"])
    logits = linear(x[:, 0, :], params["head_w"], params["head_b"])
    return logits


# ----------------------------------------------------------------------------
# Deterministic parameter init (mirrors the module's __init__ shapes/semantics)
# ----------------------------------------------------------------------------
def init_params(key, *, C, patch, D, num_heads, depth, T, num_patches, mlp_ratio, num_classes):
    hidden = int(D * mlp_ratio)
    keys = iter(jax.random.split(key, 16 + depth * 16))

    def tn(shape, std=0.02):
        return (jax.random.truncated_normal(next(keys), -2.0, 2.0, shape, jnp.float32) * std)

    params = {
        "patch_w": tn((C * patch * patch, D)),
        "patch_b": jnp.zeros((D,), jnp.float32),
        "cls_token": tn((1, 1, D)),
        "pos_embed": tn((1, num_patches + 1, D)),
        "time_embed": jnp.zeros((1, T, D), jnp.float32),  # stays zero in reference init
        "norm_g": jnp.ones((D,), jnp.float32),
        "norm_b": jnp.zeros((D,), jnp.float32),
        "head_w": tn((D, num_classes)),
        "head_b": jnp.zeros((num_classes,), jnp.float32),
        "blocks": [],
    }
    for i in range(depth):
        blk = {
            "norm1_g": jnp.ones((D,), jnp.float32), "norm1_b": jnp.zeros((D,), jnp.float32),
            "attn": {"qkv_w": tn((D, 3 * D)), "qkv_b": jnp.zeros((3 * D,), jnp.float32),
                     "proj_w": tn((D, D)), "proj_b": jnp.zeros((D,), jnp.float32)},
            "tnorm1_g": jnp.ones((D,), jnp.float32), "tnorm1_b": jnp.zeros((D,), jnp.float32),
            "tattn": {"qkv_w": tn((D, 3 * D)), "qkv_b": jnp.zeros((3 * D,), jnp.float32),
                      "proj_w": tn((D, D)), "proj_b": jnp.zeros((D,), jnp.float32)},
            # reference: temporal_fc of block 0 keeps trunc_normal init, others zeroed
            "tfc_w": tn((D, D)) if i == 0 else jnp.zeros((D, D), jnp.float32),
            "tfc_b": jnp.zeros((D,), jnp.float32),
            "norm2_g": jnp.ones((D,), jnp.float32), "norm2_b": jnp.zeros((D,), jnp.float32),
            "fc1_w": tn((D, hidden)), "fc1_b": jnp.zeros((hidden,), jnp.float32),
            "fc2_w": tn((hidden, D)), "fc2_b": jnp.zeros((D,), jnp.float32),
        }
        params["blocks"].append(blk)
    return params


# ----------------------------------------------------------------------------
if __name__ == "__main__":
    # Small synthetic config consistent with TimeSformer(attention_type='divided_space_time')
    B, C, T = 2, 3, 2
    IMG, PATCH = 16, 8
    D, HEADS, DEPTH = 32, 4, 2
    MLP_RATIO = 4
    NUM_CLASSES = 8
    NUM_PATCHES = (IMG // PATCH) * (IMG // PATCH)

    key = jax.random.PRNGKey(0)
    k_param, k_data = jax.random.split(key)
    params = init_params(k_param, C=C, patch=PATCH, D=D, num_heads=HEADS, depth=DEPTH,
                         T=T, num_patches=NUM_PATCHES, mlp_ratio=MLP_RATIO,
                         num_classes=NUM_CLASSES)

    video = jax.random.normal(k_data, (B, C, T, IMG, IMG), jnp.float32)

    fwd = jax.jit(partial(timesformer_forward, patch=PATCH, num_heads=HEADS, T=T))
    logits = fwd(video, params)
    jax.block_until_ready(logits)
    assert logits.shape == (B, NUM_CLASSES)
    print("KERNEL_OK")
</pallas_src>

<mosaic_0001>
module attributes {stable_mosaic.version = 11 : i64} {
  func.func @linear_kernel(%arg0: i32, %arg1: i32, %arg2: memref<16x32xf32, #tpu.memory_space<vmem>>, %arg3: memref<32x96xf32, #tpu.memory_space<vmem>>, %arg4: memref<1x96xf32, #tpu.memory_space<vmem>>, %arg5: memref<16x96xf32, #tpu.memory_space<vmem>>) attributes {dimension_semantics = [#tpu.dimension_semantics<parallel>, #tpu.dimension_semantics<parallel>], iteration_bounds = array<i64: 1, 1>, scalar_prefetch = 0 : i64, scratch_operands = 0 : i64, tpu.core_type = #tpu.core_type<tc>, window_params = [{transform_indices = @transform_0, window_bounds = array<i64: 16, 32>}, {transform_indices = @transform_1, window_bounds = array<i64: 32, 96>}, {transform_indices = @transform_2, window_bounds = array<i64: 1, 96>}, {transform_indices = @transform_3, window_bounds = array<i64: 16, 96>}]} {
    %c0 = arith.constant 0 : index
    %c0_0 = arith.constant 0 : index
    %0 = vector.load %arg2[%c0, %c0_0] : memref<16x32xf32, #tpu.memory_space<vmem>>, vector<16x32xf32>
    %1 = arith.truncf %0 : vector<16x32xf32> to vector<16x32xbf16>
    %c0_1 = arith.constant 0 : index
    %c0_2 = arith.constant 0 : index
    %2 = vector.load %arg3[%c0_1, %c0_2] : memref<32x96xf32, #tpu.memory_space<vmem>>, vector<32x96xf32>
    %3 = arith.truncf %2 : vector<32x96xf32> to vector<32x96xbf16>
    %cst = arith.constant dense<0.000000e+00> : vector<16x96xf32>
    %4 = tpu.matmul %1, %3, %cst {dimension_numbers = #tpu.dot_dimension_numbers<[1], [0], [0], [1], [0, 0, 1, 1], [], []>} : vector<16x32xbf16>, vector<32x96xbf16>, vector<16x96xf32> -> vector<16x96xf32>
    %c0_3 = arith.constant 0 : index
    %c0_4 = arith.constant 0 : index
    %5 = vector.load %arg4[%c0_3, %c0_4] : memref<1x96xf32, #tpu.memory_space<vmem>>, vector<1x96xf32>
    %6 = vector.broadcast %5 : vector<1x96xf32> to vector<16x96xf32>
    %7 = arith.addf %4, %6 : vector<16x96xf32>
    %c0_5 = arith.constant 0 : index
    %c0_6 = arith.constant 0 : index
    %8 = vector.load %arg5[%c0_5, %c0_6] : memref<16x96xf32, #tpu.memory_space<vmem>>, vector<16x96xf32>
    tpu.vector_store %arg5[%c0_5, %c0_6], %7 {strides = array<i32>} : memref<16x96xf32, #tpu.memory_space<vmem>>, vector<16x96xf32>,
    return
  }
  func.func @transform_0(%arg0: i32, %arg1: i32) -> (i32, i32) {
    %c0_i32 = arith.constant 0 : i32
    %c0_i32_0 = arith.constant 0 : i32
    return %arg1, %c0_i32 : i32, i32
  }
  func.func @transform_1(%arg0: i32, %arg1: i32) -> (i32, i32) {
    %c0_i32 = arith.constant 0 : i32
    %c0_i32_0 = arith.constant 0 : i32
    return %c0_i32, %arg0 : i32, i32
  }
  func.func @transform_2(%arg0: i32, %arg1: i32) -> (i32, i32) {
    %c0_i32 = arith.constant 0 : i32
    %c0_i32_0 = arith.constant 0 : i32
    return %c0_i32, %arg0 : i32, i32
  }
  func.func @transform_3(%arg0: i32, %arg1: i32) -> (i32, i32) {
    %c0_i32 = arith.constant 0 : i32
    return %arg1, %arg0 : i32, i32
  }
}

module attributes {stable_mosaic.version = 11 : i64} {
  func.func @layernorm_kernel(%arg0: i32, %arg1: memref<16x32xf32, #tpu.memory_space<vmem>>, %arg2: memref<1x32xf32, #tpu.memory_space<vmem>>, %arg3: memref<1x32xf32, #tpu.memory_space<vmem>>, %arg4: memref<16x32xf32, #tpu.memory_space<vmem>>) attributes {dimension_semantics = [#tpu.dimension_semantics<parallel>], iteration_bounds = array<i64: 1>, scalar_prefetch = 0 : i64, scratch_operands = 0 : i64, tpu.core_type = #tpu.core_type<tc>, window_params = [{transform_indices = @transform_0, window_bounds = array<i64: 16, 32>}, {pipeline_mode = #tpu.pipeline_mode<synchronous>, transform_indices = @transform_1, window_bounds = array<i64: 1, 32>}, {pipeline_mode = #tpu.pipeline_mode<synchronous>, transform_indices = @transform_2, window_bounds = array<i64: 1, 32>}, {transform_indices = @transform_3, window_bounds = array<i64: 16, 32>}]} {
    %c0 = arith.constant 0 : index
    %c0_0 = arith.constant 0 : index
    %0 = vector.load %arg1[%c0, %c0_0] : memref<16x32xf32, #tpu.memory_space<vmem>>, vector<16x32xf32>
    %cst = arith.constant dense<0.000000e+00> : vector<16xf32>
    %1 = vector.multi_reduction <add>, %0, %cst [1] : vector<16x32xf32> to vector<16xf32>
    %2 = vector.shape_cast %1 : vector<16xf32> to vector<16x1xf32>
    %cst_1 = arith.constant 3.200000e+01 : f32
    %3 = vector.broadcast %cst_1 : f32 to vector<16x1xf32>
    %4 = arith.divf %2, %3 : vector<16x1xf32>
    %5 = vector.broadcast %4 : vector<16x1xf32> to vector<16x32xf32>
    %6 = arith.subf %0, %5 : vector<16x32xf32>
    %7 = arith.mulf %6, %6 : vector<16x32xf32>
    %cst_2 = arith.constant dense<0.000000e+00> : vector<16xf32>
    %8 = vector.multi_reduction <add>, %7, %cst_2 [1] : vector<16x32xf32> to vector<16xf32>
    %9 = vector.shape_cast %8 : vector<16xf32> to vector<16x1xf32>
    %cst_3 = arith.constant 3.200000e+01 : f32
    %10 = vector.broadcast %cst_3 : f32 to vector<16x1xf32>
    %11 = arith.divf %9, %10 : vector<16x1xf32>
    %12 = vector.broadcast %4 : vector<16x1xf32> to vector<16x32xf32>
    %13 = arith.subf %0, %12 : vector<16x32xf32>
    %cst_4 = arith.constant 9.99999997E-7 : f32
    %14 = vector.broadcast %cst_4 : f32 to vector<16x1xf32>
    %15 = arith.addf %11, %14 : vector<16x1xf32>
    %16 = math.rsqrt %15 : vector<16x1xf32>
    %17 = vector.broadcast %16 : vector<16x1xf32> to vector<16x32xf32>
    %18 = arith.mulf %13, %17 : vector<16x32xf32>
    %c0_5 = arith.constant 0 : index
    %c0_6 = arith.constant 0 : index
    %19 = vector.load %arg2[%c0_5, %c0_6] : memref<1x32xf32, #tpu.memory_space<vmem>>, vector<1x32xf32>
    %20 = vector.broadcast %19 : vector<1x32xf32> to vector<16x32xf32>
    %21 = arith.mulf %18, %20 : vector<16x32xf32>
    %c0_7 = arith.constant 0 : index
    %c0_8 = arith.constant 0 : index
    %22 = vector.load %arg3[%c0_7, %c0_8] : memref<1x32xf32, #tpu.memory_space<vmem>>, vector<1x32xf32>
    %23 = vector.broadcast %22 : vector<1x32xf32> to vector<16x32xf32>
    %24 = arith.addf %21, %23 : vector<16x32xf32>
    %c0_9 = arith.constant 0 : index
    %c0_10 = arith.constant 0 : index
    %25 = vector.load %arg4[%c0_9, %c0_10] : memref<16x32xf32, #tpu.memory_space<vmem>>, vector<16x32xf32>
    tpu.vector_store %arg4[%c0_9, %c0_10], %24 {strides = array<i32>} : memref<16x32xf32, #tpu.memory_space<vmem>>, vector<16x32xf32>,
    return
  }
  func.func @transform_0(%arg0: i32) -> (i32, i32) {
    %c0_i32 = arith.constant 0 : i32
    %c0_i32_0 = arith.constant 0 : i32
    return %arg0, %c0_i32 : i32, i32
  }
  func.func @transform_1(%arg0: i32) -> (i32, i32) {
    %c0_i32 = arith.constant 0 : i32
    %c0_i32_0 = arith.constant 0 : i32
    %c0_i32_1 = arith.constant 0 : i32
    return %c0_i32, %c0_i32_0 : i32, i32
  }
  func.func @transform_2(%arg0: i32) -> (i32, i32) {
    %c0_i32 = arith.constant 0 : i32
    %c0_i32_0 = arith.constant 0 : i32
    %c0_i32_1 = arith.constant 0 : i32
    return %c0_i32, %c0_i32_0 : i32, i32
  }
  func.func @transform_3(%arg0: i32) -> (i32, i32) {
    %c0_i32 = arith.constant 0 : i32
    %c0_i32_0 = arith.constant 0 : i32
    return %arg0, %c0_i32 : i32, i32
  }
}

module attributes {stable_mosaic.version = 11 : i64} {
  func.func @linear_kernel(%arg0: i32, %arg1: i32, %arg2: memref<16x192xf32, #tpu.memory_space<vmem>>, %arg3: memref<192x32xf32, #tpu.memory_space<vmem>>, %arg4: memref<1x32xf32, #tpu.memory_space<vmem>>, %arg5: memref<16x32xf32, #tpu.memory_space<vmem>>) attributes {dimension_semantics = [#tpu.dimension_semantics<parallel>, #tpu.dimension_semantics<parallel>], iteration_bounds = array<i64: 1, 1>, scalar_prefetch = 0 : i64, scratch_operands = 0 : i64, tpu.core_type = #tpu.core_type<tc>, window_params = [{transform_indices = @transform_0, window_bounds = array<i64: 16, 192>}, {transform_indices = @transform_1, window_bounds = array<i64: 192, 32>}, {transform_indices = @transform_2, window_bounds = array<i64: 1, 32>}, {transform_indices = @transform_3, window_bounds = array<i64: 16, 32>}]} {
    %c0 = arith.constant 0 : index
    %c0_0 = arith.constant 0 : index
    %0 = vector.load %arg2[%c0, %c0_0] : memref<16x192xf32, #tpu.memory_space<vmem>>, vector<16x192xf32>
    %1 = arith.truncf %0 : vector<16x192xf32> to vector<16x192xbf16>
    %c0_1 = arith.constant 0 : index
    %c0_2 = arith.constant 0 : index
    %2 = vector.load %arg3[%c0_1, %c0_2] : memref<192x32xf32, #tpu.memory_space<vmem>>, vector<192x32xf32>
    %3 = arith.truncf %2 : vector<192x32xf32> to vector<192x32xbf16>
    %cst = arith.constant dense<0.000000e+00> : vector<16x32xf32>
    %4 = tpu.matmul %1, %3, %cst {dimension_numbers = #tpu.dot_dimension_numbers<[1], [0], [0], [1], [0, 0, 1, 1], [], []>} : vector<16x192xbf16>, vector<192x32xbf16>, vector<16x32xf32> -> vector<16x32xf32>
    %c0_3 = arith.constant 0 : index
    %c0_4 = arith.constant 0 : index
    %5 = vector.load %arg4[%c0_3, %c0_4] : memref<1x32xf32, #tpu.memory_space<vmem>>, vector<1x32xf32>
    %6 = vector.broadcast %5 : vector<1x32xf32> to vector<16x32xf32>
    %7 = arith.addf %4, %6 : vector<16x32xf32>
    %c0_5 = arith.constant 0 : index
    %c0_6 = arith.constant 0 : index
    %8 = vector.load %arg5[%c0_5, %c0_6] : memref<16x32xf32, #tpu.memory_space<vmem>>, vector<16x32xf32>
    tpu.vector_store %arg5[%c0_5, %c0_6], %7 {strides = array<i32>} : memref<16x32xf32, #tpu.memory_space<vmem>>, vector<16x32xf32>,
    return
  }
  func.func @transform_0(%arg0: i32, %arg1: i32) -> (i32, i32) {
    %c0_i32 = arith.constant 0 : i32
    %c0_i32_0 = arith.constant 0 : i32
    return %arg1, %c0_i32 : i32, i32
  }
  func.func @transform_1(%arg0: i32, %arg1: i32) -> (i32, i32) {
    %c0_i32 = arith.constant 0 : i32
    %c0_i32_0 = arith.constant 0 : i32
    return %c0_i32, %arg0 : i32, i32
  }
  func.func @transform_2(%arg0: i32, %arg1: i32) -> (i32, i32) {
    %c0_i32 = arith.constant 0 : i32
    %c0_i32_0 = arith.constant 0 : i32
    return %c0_i32, %arg0 : i32, i32
  }
  func.func @transform_3(%arg0: i32, %arg1: i32) -> (i32, i32) {
    %c0_i32 = arith.constant 0 : i32
    return %arg1, %arg0 : i32, i32
  }
}

module attributes {stable_mosaic.version = 11 : i64} {
  func.func @attention_kernel(%arg0: i32, %arg1: memref<8x2x96xf32, #tpu.memory_space<vmem>>, %arg2: memref<8x2x32xf32, #tpu.memory_space<vmem>>) attributes {dimension_semantics = [#tpu.dimension_semantics<parallel>], iteration_bounds = array<i64: 1>, scalar_prefetch = 0 : i64, scratch_operands = 0 : i64, tpu.core_type = #tpu.core_type<tc>, window_params = [{transform_indices = @transform_0, window_bounds = array<i64: 8, 2, 96>}, {transform_indices = @transform_1, window_bounds = array<i64: 8, 2, 32>}]} {
    %c0 = arith.constant 0 : index
    %c0_0 = arith.constant 0 : index
    %c0_1 = arith.constant 0 : index
    %0 = vector.load %arg1[%c0, %c0_0, %c0_1] : memref<8x2x96xf32, #tpu.memory_space<vmem>>, vector<8x2x8xf32>
    %cst = arith.constant 0.353553385 : f32
    %1 = vector.broadcast %cst : f32 to vector<8x2x8xf32>
    %2 = arith.mulf %0, %1 : vector<8x2x8xf32>
    %3 = arith.truncf %2 : vector<8x2x8xf32> to vector<8x2x8xbf16>
    %c0_2 = arith.constant 0 : index
    %c0_3 = arith.constant 0 : index
    %c32 = arith.constant 32 : index
    %4 = vector.load %arg1[%c0_2, %c0_3, %c32] : memref<8x2x96xf32, #tpu.memory_space<vmem>>, vector<8x2x8xf32>
    %5 = arith.truncf %4 : vector<8x2x8xf32> to vector<8x2x8xbf16>
    %c0_4 = arith.constant 0 : index
    %c0_5 = arith.constant 0 : index
    %c64 = arith.constant 64 : index
    %6 = vector.load %arg1[%c0_4, %c0_5, %c64] : memref<8x2x96xf32, #tpu.memory_space<vmem>>, vector<8x2x8xf32>
    %7 = arith.truncf %6 : vector<8x2x8xf32> to vector<8x2x8xbf16>
    "tpu.trace_start"() <{level = 10 : i32, message = "bqd,bkd->bqk"}> : () -> ()
    %cst_6 = arith.constant dense<0.000000e+00> : vector<8x2x2xf32>
    %8 = tpu.matmul %3, %5, %cst_6 {dimension_numbers = #tpu.dot_dimension_numbers<[2], [2], [1], [1], [0, 0, 0, 1, 1, 1], [0], [0]>} : vector<8x2x8xbf16>, vector<8x2x8xbf16>, vector<8x2x2xf32> -> vector<8x2x2xf32>
    "tpu.trace_stop"() : () -> ()
    %cst_7 = arith.constant dense<0xFF800000> : vector<8x2xf32>
    %9 = vector.multi_reduction <maximumf>, %8, %cst_7 [2] : vector<8x2x2xf32> to vector<8x2xf32>
    %10 = vector.shape_cast %9 : vector<8x2xf32> to vector<8x2x1xf32>
    %11 = vector.broadcast %10 : vector<8x2x1xf32> to vector<8x2x2xf32>
    %12 = arith.subf %8, %11 : vector<8x2x2xf32>
    %13 = math.exp %12 : vector<8x2x2xf32>
    %cst_8 = arith.constant dense<0.000000e+00> : vector<8x2xf32>
    %14 = vector.multi_reduction <add>, %13, %cst_8 [2] : vector<8x2x2xf32> to vector<8x2xf32>
    %15 = vector.shape_cast %14 : vector<8x2xf32> to vector<8x2x1xf32>
    %16 = tpu.reciprocal %15 {approx = true} : vector<8x2x1xf32> -> vector<8x2x1xf32>
    %17 = vector.broadcast %16 : vector<8x2x1xf32> to vector<8x2x2xf32>
    %18 = arith.mulf %13, %17 : vector<8x2x2xf32>
    %19 = arith.truncf %18 : vector<8x2x2xf32> to vector<8x2x2xbf16>
    "tpu.trace_start"() <{level = 10 : i32, message = "bqk,bkd->bqd"}> : () -> ()
    %cst_9 = arith.constant dense<0.000000e+00> : vector<8x2x8xf32>
    %20 = tpu.matmul %19, %7, %cst_9 {dimension_numbers = #tpu.dot_dimension_numbers<[2], [1], [1], [2], [0, 0, 0, 1, 1, 2], [0], [0]>} : vector<8x2x2xbf16>, vector<8x2x8xbf16>, vector<8x2x8xf32> -> vector<8x2x8xf32>
    "tpu.trace_stop"() : () -> ()
    %c0_10 = arith.constant 0 : index
    %c0_11 = arith.constant 0 : index
    %c8 = arith.constant 8 : index
    %21 = vector.load %arg1[%c0_10, %c0_11, %c8] : memref<8x2x96xf32, #tpu.memory_space<vmem>>, vector<8x2x8xf32>
    %cst_12 = arith.constant 0.353553385 : f32
    %22 = vector.broadcast %cst_12 : f32 to vector<8x2x8xf32>
    %23 = arith.mulf %21, %22 : vector<8x2x8xf32>
    %24 = arith.truncf %23 : vector<8x2x8xf32> to vector<8x2x8xbf16>
    %c0_13 = arith.constant 0 : index
    %c0_14 = arith.constant 0 : index
    %c40 = arith.constant 40 : index
    %25 = vector.load %arg1[%c0_13, %c0_14, %c40] : memref<8x2x96xf32, #tpu.memory_space<vmem>>, vector<8x2x8xf32>
    %26 = arith.truncf %25 : vector<8x2x8xf32> to vector<8x2x8xbf16>
    %c0_15 = arith.constant 0 : index
    %c0_16 = arith.constant 0 : index
    %c72 = arith.constant 72 : index
    %27 = vector.load %arg1[%c0_15, %c0_16, %c72] : memref<8x2x96xf32, #tpu.memory_space<vmem>>, vector<8x2x8xf32>
    %28 = arith.truncf %27 : vector<8x2x8xf32> to vector<8x2x8xbf16>
    "tpu.trace_start"() <{level = 10 : i32, message = "bqd,bkd->bqk"}> : () -> ()
    %cst_17 = arith.constant dense<0.000000e+00> : vector<8x2x2xf32>
    %29 = tpu.matmul %24, %26, %cst_17 {dimension_numbers = #tpu.dot_dimension_numbers<[2], [2], [1], [1], [0, 0, 0, 1, 1, 1], [0], [0]>} : vector<8x2x8xbf16>, vector<8x2x8xbf16>, vector<8x2x2xf32> -> vector<8x2x2xf32>
    "tpu.trace_stop"() : () -> ()
    %cst_18 = arith.constant dense<0xFF800000> : vector<8x2xf32>
    %30 = vector.multi_reduction <maximumf>, %29, %cst_18 [2] : vector<8x2x2xf32> to vector<8x2xf32>
    %31 = vector.shape_cast %30 : vector<8x2xf32> to vector<8x2x1xf32>
    %32 = vector.broadcast %31 : vector<8x2x1xf32> to vector<8x2x2xf32>
    %33 = arith.subf %29, %32 : vector<8x2x2xf32>
    %34 = math.exp %33 : vector<8x2x2xf32>
    %cst_19 = arith.constant dense<0.000000e+00> : vector<8x2xf32>
    %35 = vector.multi_reduction <add>, %34, %cst_19 [2] : vector<8x2x2xf32> to vector<8x2xf32>
    %36 = vector.shape_cast %35 : vector<8x2xf32> to vector<8x2x1xf32>
    %37 = tpu.reciprocal %36 {approx = true} : vector<8x2x1xf32> -> vector<8x2x1xf32>
    %38 = vector.broadcast %37 : vector<8x2x1xf32> to vector<8x2x2xf32>
    %39 = arith.mulf %34, %38 : vector<8x2x2xf32>
    %40 = arith.truncf %39 : vector<8x2x2xf32> to vector<8x2x2xbf16>
    "tpu.trace_start"() <{level = 10 : i32, message = "bqk,bkd->bqd"}> : () -> ()
    %cst_20 = arith.constant dense<0.000000e+00> : vector<8x2x8xf32>
    %41 = tpu.matmul %40, %28, %cst_20 {dimension_numbers = #tpu.dot_dimension_numbers<[2], [1], [1], [2], [0, 0, 0, 1, 1, 2], [0], [0]>} : vector<8x2x2xbf16>, vector<8x2x8xbf16>, vector<8x2x8xf32> -> vector<8x2x8xf32>
    "tpu.trace_stop"() : () -> ()
    %c0_21 = arith.constant 0 : index
    %c0_22 = arith.constant 0 : index
    %c16 = arith.constant 16 : index
    %42 = vector.load %arg1[%c0_21, %c0_22, %c16] : memref<8x2x96xf32, #tpu.memory_space<vmem>>, vector<8x2x8xf32>
    %cst_23 = arith.constant 0.353553385 : f32
    %43 = vector.broadcast %cst_23 : f32 to vector<8x2x8xf32>
    %44 = arith.mulf %42, %43 : vector<8x2x8xf32>
    %45 = arith.truncf %44 : vector<8x2x8xf32> to vector<8x2x8xbf16>
    %c0_24 = arith.constant 0 : index
    %c0_25 = arith.constant 0 : index
    %c48 = arith.constant 48 : index
    %46 = vector.load %arg1[%c0_24, %c0_25, %c48] : memref<8x2x96xf32, #tpu.memory_space<vmem>>, vector<8x2x8xf32>
    %47 = arith.truncf %46 : vector<8x2x8xf32> to vector<8x2x8xbf16>
    %c0_26 = arith.constant 0 : index
    %c0_27 = arith.constant 0 : index
    %c80 = arith.constant 80 : index
    %48 = vector.load %arg1[%c0_26, %c0_27, %c80] : memref<8x2x96xf32, #tpu.memory_space<vmem>>, vector<8x2x8xf32>
    %49 = arith.truncf %48 : vector<8x2x8xf32> to vector<8x2x8xbf16>
    "tpu.trace_start"() <{level = 10 : i32, message = "bqd,bkd->bqk"}> : () -> ()
    %cst_28 = arith.constant dense<0.000000e+00> : vector<8x2x2xf32>
    %50 = tpu.matmul %45, %47, %cst_28 {dimension_numbers = #tpu.dot_dimension_numbers<[2], [2], [1], [1], [0, 0, 0, 1, 1, 1], [0], [0]>} : vector<8x2x8xbf16>, vector<8x2x8xbf16>, vector<8x2x2xf32> -> vector<8x2x2xf32>
    "tpu.trace_stop"() : () -> ()
    %cst_29 = arith.constant dense<0xFF800000> : vector<8x2xf32>
    %51 = vector.multi_reduction <maximumf>, %50, %cst_29 [2] : vector<8x2x2xf32> to vector<8x2xf32>
    %52 = vector.shape_cast %51 : vector<8x2xf32> to vector<8x2x1xf32>
    %53 = vector.broadcast %52 : vector<8x2x1xf32> to vector<8x2x2xf32>
    %54 = arith.subf %50, %53 : vector<8x2x2xf32>
    %55 = math.exp %54 : vector<8x2x2xf32>
    %cst_30 = arith.constant dense<0.000000e+00> : vector<8x2xf32>
    %56 = vector.multi_reduction <add>, %55, %cst_30 [2] : vector<8x2x2xf32> to vector<8x2xf32>
    %57 = vector.shape_cast %56 : vector<8x2xf32> to vector<8x2x1xf32>
    %58 = tpu.reciprocal %57 {approx = true} : vector<8x2x1xf32> -> vector<8x2x1xf32>
    %59 = vector.broadcast %58 : vector<8x2x1xf32> to vector<8x2x2xf32>
    %60 = arith.mulf %55, %59 : vector<8x2x2xf32>
    %61 = arith.truncf %60 : vector<8x2x2xf32> to vector<8x2x2xbf16>
    "tpu.trace_start"() <{level = 10 : i32, message = "bqk,bkd->bqd"}> : () -> ()
    %cst_31 = arith.constant dense<0.000000e+00> : vector<8x2x8xf32>
    %62 = tpu.matmul %61, %49, %cst_31 {dimension_numbers = #tpu.dot_dimension_numbers<[2], [1], [1], [2], [0, 0, 0, 1, 1, 2], [0], [0]>} : vector<8x2x2xbf16>, vector<8x2x8xbf16>, vector<8x2x8xf32> -> vector<8x2x8xf32>
    "tpu.trace_stop"() : () -> ()
    %c0_32 = arith.constant 0 : index
    %c0_33 = arith.constant 0 : index
    %c24 = arith.constant 24 : index
    %63 = vector.load %arg1[%c0_32, %c0_33, %c24] : memref<8x2x96xf32, #tpu.memory_space<vmem>>, vector<8x2x8xf32>
    %cst_34 = arith.constant 0.353553385 : f32
    %64 = vector.broadcast %cst_34 : f32 to vector<8x2x8xf32>
    %65 = arith.mulf %63, %64 : vector<8x2x8xf32>
    %66 = arith.truncf %65 : vector<8x2x8xf32> to vector<8x2x8xbf16>
    %c0_35 = arith.constant 0 : index
    %c0_36 = arith.constant 0 : index
    %c56 = arith.constant 56 : index
    %67 = vector.load %arg1[%c0_35, %c0_36, %c56] : memref<8x2x96xf32, #tpu.memory_space<vmem>>, vector<8x2x8xf32>
    %68 = arith.truncf %67 : vector<8x2x8xf32> to vector<8x2x8xbf16>
    %c0_37 = arith.constant 0 : index
    %c0_38 = arith.constant 0 : index
    %c88 = arith.constant 88 : index
    %69 = vector.load %arg1[%c0_37, %c0_38, %c88] : memref<8x2x96xf32, #tpu.memory_space<vmem>>, vector<8x2x8xf32>
    %70 = arith.truncf %69 : vector<8x2x8xf32> to vector<8x2x8xbf16>
    "tpu.trace_start"() <{level = 10 : i32, message = "bqd,bkd->bqk"}> : () -> ()
    %cst_39 = arith.constant dense<0.000000e+00> : vector<8x2x2xf32>
    %71 = tpu.matmul %66, %68, %cst_39 {dimension_numbers = #tpu.dot_dimension_numbers<[2], [2], [1], [1], [0, 0, 0, 1, 1, 1], [0], [0]>} : vector<8x2x8xbf16>, vector<8x2x8xbf16>, vector<8x2x2xf32> -> vector<8x2x2xf32>
    "tpu.trace_stop"() : () -> ()
    %cst_40 = arith.constant dense<0xFF800000> : vector<8x2xf32>
    %72 = vector.multi_reduction <maximumf>, %71, %cst_40 [2] : vector<8x2x2xf32> to vector<8x2xf32>
    %73 = vector.shape_cast %72 : vector<8x2xf32> to vector<8x2x1xf32>
    %74 = vector.broadcast %73 : vector<8x2x1xf32> to vector<8x2x2xf32>
    %75 = arith.subf %71, %74 : vector<8x2x2xf32>
    %76 = math.exp %75 : vector<8x2x2xf32>
    %cst_41 = arith.constant dense<0.000000e+00> : vector<8x2xf32>
    %77 = vector.multi_reduction <add>, %76, %cst_41 [2] : vector<8x2x2xf32> to vector<8x2xf32>
    %78 = vector.shape_cast %77 : vector<8x2xf32> to vector<8x2x1xf32>
    %79 = tpu.reciprocal %78 {approx = true} : vector<8x2x1xf32> -> vector<8x2x1xf32>
    %80 = vector.broadcast %79 : vector<8x2x1xf32> to vector<8x2x2xf32>
    %81 = arith.mulf %76, %80 : vector<8x2x2xf32>
    %82 = arith.truncf %81 : vector<8x2x2xf32> to vector<8x2x2xbf16>
    "tpu.trace_start"() <{level = 10 : i32, message = "bqk,bkd->bqd"}> : () -> ()
    %cst_42 = arith.constant dense<0.000000e+00> : vector<8x2x8xf32>
    %83 = tpu.matmul %82, %70, %cst_42 {dimension_numbers = #tpu.dot_dimension_numbers<[2], [1], [1], [2], [0, 0, 0, 1, 1, 2], [0], [0]>} : vector<8x2x2xbf16>, vector<8x2x8xbf16>, vector<8x2x8xf32> -> vector<8x2x8xf32>
    "tpu.trace_stop"() : () -> ()
    %84 = tpu.concatenate %20, %41, %62, %83 in 2 : vector<8x2x8xf32>, vector<8x2x8xf32>, vector<8x2x8xf32>, vector<8x2x8xf32> -> vector<8x2x32xf32>
    %c0_43 = arith.constant 0 : index
    %c0_44 = arith.constant 0 : index
    %c0_45 = arith.constant 0 : index
    %85 = vector.load %arg2[%c0_43, %c0_44, %c0_45] : memref<8x2x32xf32, #tpu.memory_space<vmem>>, vector<8x2x32xf32>
    tpu.vector_store %arg2[%c0_43, %c0_44, %c0_45], %84 {strides = array<i32>} : memref<8x2x32xf32, #tpu.memory_space<vmem>>, vector<8x2x32xf32>,
    return
  }
  func.func @transform_0(%arg0: i32) -> (i32, i32, i32) {
    %c0_i32 = arith.constant 0 : i32
    %c0_i32_0 = arith.constant 0 : i32
    %c0_i32_1 = arith.constant 0 : i32
    return %arg0, %c0_i32, %c0_i32_0 : i32, i32, i32
  }
  func.func @transform_1(%arg0: i32) -> (i32, i32, i32) {
    %c0_i32 = arith.constant 0 : i32
    %c0_i32_0 = arith.constant 0 : i32
    %c0_i32_1 = arith.constant 0 : i32
    return %arg0, %c0_i32, %c0_i32_0 : i32, i32, i32
  }
}

module attributes {stable_mosaic.version = 11 : i64} {
  func.func @linear_kernel(%arg0: i32, %arg1: i32, %arg2: memref<16x32xf32, #tpu.memory_space<vmem>>, %arg3: memref<32x32xf32, #tpu.memory_space<vmem>>, %arg4: memref<1x32xf32, #tpu.memory_space<vmem>>, %arg5: memref<16x32xf32, #tpu.memory_space<vmem>>) attributes {dimension_semantics = [#tpu.dimension_semantics<parallel>, #tpu.dimension_semantics<parallel>], iteration_bounds = array<i64: 1, 1>, scalar_prefetch = 0 : i64, scratch_operands = 0 : i64, tpu.core_type = #tpu.core_type<tc>, window_params = [{transform_indices = @transform_0, window_bounds = array<i64: 16, 32>}, {transform_indices = @transform_1, window_bounds = array<i64: 32, 32>}, {transform_indices = @transform_2, window_bounds = array<i64: 1, 32>}, {transform_indices = @transform_3, window_bounds = array<i64: 16, 32>}]} {
    %c0 = arith.constant 0 : index
    %c0_0 = arith.constant 0 : index
    %0 = vector.load %arg2[%c0, %c0_0] : memref<16x32xf32, #tpu.memory_space<vmem>>, vector<16x32xf32>
    %1 = arith.truncf %0 : vector<16x32xf32> to vector<16x32xbf16>
    %c0_1 = arith.constant 0 : index
    %c0_2 = arith.constant 0 : index
    %2 = vector.load %arg3[%c0_1, %c0_2] : memref<32x32xf32, #tpu.memory_space<vmem>>, vector<32x32xf32>
    %3 = arith.truncf %2 : vector<32x32xf32> to vector<32x32xbf16>
    %cst = arith.constant dense<0.000000e+00> : vector<16x32xf32>
    %4 = tpu.matmul %1, %3, %cst {dimension_numbers = #tpu.dot_dimension_numbers<[1], [0], [0], [1], [0, 0, 1, 1], [], []>} : vector<16x32xbf16>, vector<32x32xbf16>, vector<16x32xf32> -> vector<16x32xf32>
    %c0_3 = arith.constant 0 : index
    %c0_4 = arith.constant 0 : index
    %5 = vector.load %arg4[%c0_3, %c0_4] : memref<1x32xf32, #tpu.memory_space<vmem>>, vector<1x32xf32>
    %6 = vector.broadcast %5 : vector<1x32xf32> to vector<16x32xf32>
    %7 = arith.addf %4, %6 : vector<16x32xf32>
    %c0_5 = arith.constant 0 : index
    %c0_6 = arith.constant 0 : index
    %8 = vector.load %arg5[%c0_5, %c0_6] : memref<16x32xf32, #tpu.memory_space<vmem>>, vector<16x32xf32>
    tpu.vector_store %arg5[%c0_5, %c0_6], %7 {strides = array<i32>} : memref<16x32xf32, #tpu.memory_space<vmem>>, vector<16x32xf32>,
    return
  }
  func.func @transform_0(%arg0: i32, %arg1: i32) -> (i32, i32) {
    %c0_i32 = arith.constant 0 : i32
    %c0_i32_0 = arith.constant 0 : i32
    return %arg1, %c0_i32 : i32, i32
  }
  func.func @transform_1(%arg0: i32, %arg1: i32) -> (i32, i32) {
    %c0_i32 = arith.constant 0 : i32
    %c0_i32_0 = arith.constant 0 : i32
    return %c0_i32, %arg0 : i32, i32
  }
  func.func @transform_2(%arg0: i32, %arg1: i32) -> (i32, i32) {
    %c0_i32 = arith.constant 0 : i32
    %c0_i32_0 = arith.constant 0 : i32
    return %c0_i32, %arg0 : i32, i32
  }
  func.func @transform_3(%arg0: i32, %arg1: i32) -> (i32, i32) {
    %c0_i32 = arith.constant 0 : i32
    return %arg1, %arg0 : i32, i32
  }
}

module attributes {stable_mosaic.version = 11 : i64} {
  func.func @layernorm_kernel(%arg0: i32, %arg1: memref<20x32xf32, #tpu.memory_space<vmem>>, %arg2: memref<1x32xf32, #tpu.memory_space<vmem>>, %arg3: memref<1x32xf32, #tpu.memory_space<vmem>>, %arg4: memref<20x32xf32, #tpu.memory_space<vmem>>) attributes {dimension_semantics = [#tpu.dimension_semantics<parallel>], iteration_bounds = array<i64: 1>, scalar_prefetch = 0 : i64, scratch_operands = 0 : i64, tpu.core_type = #tpu.core_type<tc>, window_params = [{transform_indices = @transform_0, window_bounds = array<i64: 20, 32>}, {pipeline_mode = #tpu.pipeline_mode<synchronous>, transform_indices = @transform_1, window_bounds = array<i64: 1, 32>}, {pipeline_mode = #tpu.pipeline_mode<synchronous>, transform_indices = @transform_2, window_bounds = array<i64: 1, 32>}, {transform_indices = @transform_3, window_bounds = array<i64: 20, 32>}]} {
    %c0 = arith.constant 0 : index
    %c0_0 = arith.constant 0 : index
    %0 = vector.load %arg1[%c0, %c0_0] : memref<20x32xf32, #tpu.memory_space<vmem>>, vector<20x32xf32>
    %cst = arith.constant dense<0.000000e+00> : vector<20xf32>
    %1 = vector.multi_reduction <add>, %0, %cst [1] : vector<20x32xf32> to vector<20xf32>
    %2 = vector.shape_cast %1 : vector<20xf32> to vector<20x1xf32>
    %cst_1 = arith.constant 3.200000e+01 : f32
    %3 = vector.broadcast %cst_1 : f32 to vector<20x1xf32>
    %4 = arith.divf %2, %3 : vector<20x1xf32>
    %5 = vector.broadcast %4 : vector<20x1xf32> to vector<20x32xf32>
    %6 = arith.subf %0, %5 : vector<20x32xf32>
    %7 = arith.mulf %6, %6 : vector<20x32xf32>
    %cst_2 = arith.constant dense<0.000000e+00> : vector<20xf32>
    %8 = vector.multi_reduction <add>, %7, %cst_2 [1] : vector<20x32xf32> to vector<20xf32>
    %9 = vector.shape_cast %8 : vector<20xf32> to vector<20x1xf32>
    %cst_3 = arith.constant 3.200000e+01 : f32
    %10 = vector.broadcast %cst_3 : f32 to vector<20x1xf32>
    %11 = arith.divf %9, %10 : vector<20x1xf32>
    %12 = vector.broadcast %4 : vector<20x1xf32> to vector<20x32xf32>
    %13 = arith.subf %0, %12 : vector<20x32xf32>
    %cst_4 = arith.constant 9.99999997E-7 : f32
    %14 = vector.broadcast %cst_4 : f32 to vector<20x1xf32>
    %15 = arith.addf %11, %14 : vector<20x1xf32>
    %16 = math.rsqrt %15 : vector<20x1xf32>
    %17 = vector.broadcast %16 : vector<20x1xf32> to vector<20x32xf32>
    %18 = arith.mulf %13, %17 : vector<20x32xf32>
    %c0_5 = arith.constant 0 : index
    %c0_6 = arith.constant 0 : index
    %19 = vector.load %arg2[%c0_5, %c0_6] : memref<1x32xf32, #tpu.memory_space<vmem>>, vector<1x32xf32>
    %20 = vector.broadcast %19 : vector<1x32xf32> to vector<20x32xf32>
    %21 = arith.mulf %18, %20 : vector<20x32xf32>
    %c0_7 = arith.constant 0 : index
    %c0_8 = arith.constant 0 : index
    %22 = vector.load %arg3[%c0_7, %c0_8] : memref<1x32xf32, #tpu.memory_space<vmem>>, vector<1x32xf32>
    %23 = vector.broadcast %22 : vector<1x32xf32> to vector<20x32xf32>
    %24 = arith.addf %21, %23 : vector<20x32xf32>
    %c0_9 = arith.constant 0 : index
    %c0_10 = arith.constant 0 : index
    %25 = vector.load %arg4[%c0_9, %c0_10] : memref<20x32xf32, #tpu.memory_space<vmem>>, vector<20x32xf32>
    tpu.vector_store %arg4[%c0_9, %c0_10], %24 {strides = array<i32>} : memref<20x32xf32, #tpu.memory_space<vmem>>, vector<20x32xf32>,
    return
  }
  func.func @transform_0(%arg0: i32) -> (i32, i32) {
    %c0_i32 = arith.constant 0 : i32
    %c0_i32_0 = arith.constant 0 : i32
    return %arg0, %c0_i32 : i32, i32
  }
  func.func @transform_1(%arg0: i32) -> (i32, i32) {
    %c0_i32 = arith.constant 0 : i32
    %c0_i32_0 = arith.constant 0 : i32
    %c0_i32_1 = arith.constant 0 : i32
    return %c0_i32, %c0_i32_0 : i32, i32
  }
  func.func @transform_2(%arg0: i32) -> (i32, i32) {
    %c0_i32 = arith.constant 0 : i32
    %c0_i32_0 = arith.constant 0 : i32
    %c0_i32_1 = arith.constant 0 : i32
    return %c0_i32, %c0_i32_0 : i32, i32
  }
  func.func @transform_3(%arg0: i32) -> (i32, i32) {
    %c0_i32 = arith.constant 0 : i32
    %c0_i32_0 = arith.constant 0 : i32
    return %arg0, %c0_i32 : i32, i32
  }
}

module attributes {stable_mosaic.version = 11 : i64} {
  func.func @linear_kernel(%arg0: i32, %arg1: i32, %arg2: memref<20x32xf32, #tpu.memory_space<vmem>>, %arg3: memref<32x96xf32, #tpu.memory_space<vmem>>, %arg4: memref<1x96xf32, #tpu.memory_space<vmem>>, %arg5: memref<20x96xf32, #tpu.memory_space<vmem>>) attributes {dimension_semantics = [#tpu.dimension_semantics<parallel>, #tpu.dimension_semantics<parallel>], iteration_bounds = array<i64: 1, 1>, scalar_prefetch = 0 : i64, scratch_operands = 0 : i64, tpu.core_type = #tpu.core_type<tc>, window_params = [{transform_indices = @transform_0, window_bounds = array<i64: 20, 32>}, {transform_indices = @transform_1, window_bounds = array<i64: 32, 96>}, {transform_indices = @transform_2, window_bounds = array<i64: 1, 96>}, {transform_indices = @transform_3, window_bounds = array<i64: 20, 96>}]} {
    %c0 = arith.constant 0 : index
    %c0_0 = arith.constant 0 : index
    %0 = vector.load %arg2[%c0, %c0_0] : memref<20x32xf32, #tpu.memory_space<vmem>>, vector<20x32xf32>
    %1 = arith.truncf %0 : vector<20x32xf32> to vector<20x32xbf16>
    %c0_1 = arith.constant 0 : index
    %c0_2 = arith.constant 0 : index
    %2 = vector.load %arg3[%c0_1, %c0_2] : memref<32x96xf32, #tpu.memory_space<vmem>>, vector<32x96xf32>
    %3 = arith.truncf %2 : vector<32x96xf32> to vector<32x96xbf16>
    %cst = arith.constant dense<0.000000e+00> : vector<20x96xf32>
    %4 = tpu.matmul %1, %3, %cst {dimension_numbers = #tpu.dot_dimension_numbers<[1], [0], [0], [1], [0, 0, 1, 1], [], []>} : vector<20x32xbf16>, vector<32x96xbf16>, vector<20x96xf32> -> vector<20x96xf32>
    %c0_3 = arith.constant 0 : index
    %c0_4 = arith.constant 0 : index
    %5 = vector.load %arg4[%c0_3, %c0_4] : memref<1x96xf32, #tpu.memory_space<vmem>>, vector<1x96xf32>
    %6 = vector.broadcast %5 : vector<1x96xf32> to vector<20x96xf32>
    %7 = arith.addf %4, %6 : vector<20x96xf32>
    %c0_5 = arith.constant 0 : index
    %c0_6 = arith.constant 0 : index
    %8 = vector.load %arg5[%c0_5, %c0_6] : memref<20x96xf32, #tpu.memory_space<vmem>>, vector<20x96xf32>
    tpu.vector_store %arg5[%c0_5, %c0_6], %7 {strides = array<i32>} : memref<20x96xf32, #tpu.memory_space<vmem>>, vector<20x96xf32>,
    return
  }
  func.func @transform_0(%arg0: i32, %arg1: i32) -> (i32, i32) {
    %c0_i32 = arith.constant 0 : i32
    %c0_i32_0 = arith.constant 0 : i32
    return %arg1, %c0_i32 : i32, i32
  }
  func.func @transform_1(%arg0: i32, %arg1: i32) -> (i32, i32) {
    %c0_i32 = arith.constant 0 : i32
    %c0_i32_0 = arith.constant 0 : i32
    return %c0_i32, %arg0 : i32, i32
  }
  func.func @transform_2(%arg0: i32, %arg1: i32) -> (i32, i32) {
    %c0_i32 = arith.constant 0 : i32
    %c0_i32_0 = arith.constant 0 : i32
    return %c0_i32, %arg0 : i32, i32
  }
  func.func @transform_3(%arg0: i32, %arg1: i32) -> (i32, i32) {
    %c0_i32 = arith.constant 0 : i32
    return %arg1, %arg0 : i32, i32
  }
}

module attributes {stable_mosaic.version = 11 : i64} {
  func.func @linear_kernel(%arg0: i32, %arg1: i32, %arg2: memref<20x32xf32, #tpu.memory_space<vmem>>, %arg3: memref<32x32xf32, #tpu.memory_space<vmem>>, %arg4: memref<1x32xf32, #tpu.memory_space<vmem>>, %arg5: memref<20x32xf32, #tpu.memory_space<vmem>>) attributes {dimension_semantics = [#tpu.dimension_semantics<parallel>, #tpu.dimension_semantics<parallel>], iteration_bounds = array<i64: 1, 1>, scalar_prefetch = 0 : i64, scratch_operands = 0 : i64, tpu.core_type = #tpu.core_type<tc>, window_params = [{transform_indices = @transform_0, window_bounds = array<i64: 20, 32>}, {transform_indices = @transform_1, window_bounds = array<i64: 32, 32>}, {transform_indices = @transform_2, window_bounds = array<i64: 1, 32>}, {transform_indices = @transform_3, window_bounds = array<i64: 20, 32>}]} {
    %c0 = arith.constant 0 : index
    %c0_0 = arith.constant 0 : index
    %0 = vector.load %arg2[%c0, %c0_0] : memref<20x32xf32, #tpu.memory_space<vmem>>, vector<20x32xf32>
    %1 = arith.truncf %0 : vector<20x32xf32> to vector<20x32xbf16>
    %c0_1 = arith.constant 0 : index
    %c0_2 = arith.constant 0 : index
    %2 = vector.load %arg3[%c0_1, %c0_2] : memref<32x32xf32, #tpu.memory_space<vmem>>, vector<32x32xf32>
    %3 = arith.truncf %2 : vector<32x32xf32> to vector<32x32xbf16>
    %cst = arith.constant dense<0.000000e+00> : vector<20x32xf32>
    %4 = tpu.matmul %1, %3, %cst {dimension_numbers = #tpu.dot_dimension_numbers<[1], [0], [0], [1], [0, 0, 1, 1], [], []>} : vector<20x32xbf16>, vector<32x32xbf16>, vector<20x32xf32> -> vector<20x32xf32>
    %c0_3 = arith.constant 0 : index
    %c0_4 = arith.constant 0 : index
    %5 = vector.load %arg4[%c0_3, %c0_4] : memref<1x32xf32, #tpu.memory_space<vmem>>, vector<1x32xf32>
    %6 = vector.broadcast %5 : vector<1x32xf32> to vector<20x32xf32>
    %7 = arith.addf %4, %6 : vector<20x32xf32>
    %c0_5 = arith.constant 0 : index
    %c0_6 = arith.constant 0 : index
    %8 = vector.load %arg5[%c0_5, %c0_6] : memref<20x32xf32, #tpu.memory_space<vmem>>, vector<20x32xf32>
    tpu.vector_store %arg5[%c0_5, %c0_6], %7 {strides = array<i32>} : memref<20x32xf32, #tpu.memory_space<vmem>>, vector<20x32xf32>,
    return
  }
  func.func @transform_0(%arg0: i32, %arg1: i32) -> (i32, i32) {
    %c0_i32 = arith.constant 0 : i32
    %c0_i32_0 = arith.constant 0 : i32
    return %arg1, %c0_i32 : i32, i32
  }
  func.func @transform_1(%arg0: i32, %arg1: i32) -> (i32, i32) {
    %c0_i32 = arith.constant 0 : i32
    %c0_i32_0 = arith.constant 0 : i32
    return %c0_i32, %arg0 : i32, i32
  }
  func.func @transform_2(%arg0: i32, %arg1: i32) -> (i32, i32) {
    %c0_i32 = arith.constant 0 : i32
    %c0_i32_0 = arith.constant 0 : i32
    return %c0_i32, %arg0 : i32, i32
  }
  func.func @transform_3(%arg0: i32, %arg1: i32) -> (i32, i32) {
    %c0_i32 = arith.constant 0 : i32
    return %arg1, %arg0 : i32, i32
  }
}

module attributes {stable_mosaic.version = 11 : i64} {
  func.func @attention_kernel(%arg0: i32, %arg1: memref<4x5x96xf32, #tpu.memory_space<vmem>>, %arg2: memref<4x5x32xf32, #tpu.memory_space<vmem>>) attributes {dimension_semantics = [#tpu.dimension_semantics<parallel>], iteration_bounds = array<i64: 1>, scalar_prefetch = 0 : i64, scratch_operands = 0 : i64, tpu.core_type = #tpu.core_type<tc>, window_params = [{transform_indices = @transform_0, window_bounds = array<i64: 4, 5, 96>}, {transform_indices = @transform_1, window_bounds = array<i64: 4, 5, 32>}]} {
    %c0 = arith.constant 0 : index
    %c0_0 = arith.constant 0 : index
    %c0_1 = arith.constant 0 : index
    %0 = vector.load %arg1[%c0, %c0_0, %c0_1] : memref<4x5x96xf32, #tpu.memory_space<vmem>>, vector<4x5x8xf32>
    %cst = arith.constant 0.353553385 : f32
    %1 = vector.broadcast %cst : f32 to vector<4x5x8xf32>
    %2 = arith.mulf %0, %1 : vector<4x5x8xf32>
    %3 = arith.truncf %2 : vector<4x5x8xf32> to vector<4x5x8xbf16>
    %c0_2 = arith.constant 0 : index
    %c0_3 = arith.constant 0 : index
    %c32 = arith.constant 32 : index
    %4 = vector.load %arg1[%c0_2, %c0_3, %c32] : memref<4x5x96xf32, #tpu.memory_space<vmem>>, vector<4x5x8xf32>
    %5 = arith.truncf %4 : vector<4x5x8xf32> to vector<4x5x8xbf16>
    %c0_4 = arith.constant 0 : index
    %c0_5 = arith.constant 0 : index
    %c64 = arith.constant 64 : index
    %6 = vector.load %arg1[%c0_4, %c0_5, %c64] : memref<4x5x96xf32, #tpu.memory_space<vmem>>, vector<4x5x8xf32>
    %7 = arith.truncf %6 : vector<4x5x8xf32> to vector<4x5x8xbf16>
    "tpu.trace_start"() <{level = 10 : i32, message = "bqd,bkd->bqk"}> : () -> ()
    %cst_6 = arith.constant dense<0.000000e+00> : vector<4x5x5xf32>
    %8 = tpu.matmul %3, %5, %cst_6 {dimension_numbers = #tpu.dot_dimension_numbers<[2], [2], [1], [1], [0, 0, 0, 1, 1, 1], [0], [0]>} : vector<4x5x8xbf16>, vector<4x5x8xbf16>, vector<4x5x5xf32> -> vector<4x5x5xf32>
    "tpu.trace_stop"() : () -> ()
    %cst_7 = arith.constant dense<0xFF800000> : vector<4x5xf32>
    %9 = vector.multi_reduction <maximumf>, %8, %cst_7 [2] : vector<4x5x5xf32> to vector<4x5xf32>
    %10 = vector.shape_cast %9 : vector<4x5xf32> to vector<4x5x1xf32>
    %11 = vector.broadcast %10 : vector<4x5x1xf32> to vector<4x5x5xf32>
    %12 = arith.subf %8, %11 : vector<4x5x5xf32>
    %13 = math.exp %12 : vector<4x5x5xf32>
    %cst_8 = arith.constant dense<0.000000e+00> : vector<4x5xf32>
    %14 = vector.multi_reduction <add>, %13, %cst_8 [2] : vector<4x5x5xf32> to vector<4x5xf32>
    %15 = vector.shape_cast %14 : vector<4x5xf32> to vector<4x5x1xf32>
    %16 = tpu.reciprocal %15 {approx = true} : vector<4x5x1xf32> -> vector<4x5x1xf32>
    %17 = vector.broadcast %16 : vector<4x5x1xf32> to vector<4x5x5xf32>
    %18 = arith.mulf %13, %17 : vector<4x5x5xf32>
    %19 = arith.truncf %18 : vector<4x5x5xf32> to vector<4x5x5xbf16>
    "tpu.trace_start"() <{level = 10 : i32, message = "bqk,bkd->bqd"}> : () -> ()
    %cst_9 = arith.constant dense<0.000000e+00> : vector<4x5x8xf32>
    %20 = tpu.matmul %19, %7, %cst_9 {dimension_numbers = #tpu.dot_dimension_numbers<[2], [1], [1], [2], [0, 0, 0, 1, 1, 2], [0], [0]>} : vector<4x5x5xbf16>, vector<4x5x8xbf16>, vector<4x5x8xf32> -> vector<4x5x8xf32>
    "tpu.trace_stop"() : () -> ()
    %c0_10 = arith.constant 0 : index
    %c0_11 = arith.constant 0 : index
    %c8 = arith.constant 8 : index
    %21 = vector.load %arg1[%c0_10, %c0_11, %c8] : memref<4x5x96xf32, #tpu.memory_space<vmem>>, vector<4x5x8xf32>
    %cst_12 = arith.constant 0.353553385 : f32
    %22 = vector.broadcast %cst_12 : f32 to vector<4x5x8xf32>
    %23 = arith.mulf %21, %22 : vector<4x5x8xf32>
    %24 = arith.truncf %23 : vector<4x5x8xf32> to vector<4x5x8xbf16>
    %c0_13 = arith.constant 0 : index
    %c0_14 = arith.constant 0 : index
    %c40 = arith.constant 40 : index
    %25 = vector.load %arg1[%c0_13, %c0_14, %c40] : memref<4x5x96xf32, #tpu.memory_space<vmem>>, vector<4x5x8xf32>
    %26 = arith.truncf %25 : vector<4x5x8xf32> to vector<4x5x8xbf16>
    %c0_15 = arith.constant 0 : index
    %c0_16 = arith.constant 0 : index
    %c72 = arith.constant 72 : index
    %27 = vector.load %arg1[%c0_15, %c0_16, %c72] : memref<4x5x96xf32, #tpu.memory_space<vmem>>, vector<4x5x8xf32>
    %28 = arith.truncf %27 : vector<4x5x8xf32> to vector<4x5x8xbf16>
    "tpu.trace_start"() <{level = 10 : i32, message = "bqd,bkd->bqk"}> : () -> ()
    %cst_17 = arith.constant dense<0.000000e+00> : vector<4x5x5xf32>
    %29 = tpu.matmul %24, %26, %cst_17 {dimension_numbers = #tpu.dot_dimension_numbers<[2], [2], [1], [1], [0, 0, 0, 1, 1, 1], [0], [0]>} : vector<4x5x8xbf16>, vector<4x5x8xbf16>, vector<4x5x5xf32> -> vector<4x5x5xf32>
    "tpu.trace_stop"() : () -> ()
    %cst_18 = arith.constant dense<0xFF800000> : vector<4x5xf32>
    %30 = vector.multi_reduction <maximumf>, %29, %cst_18 [2] : vector<4x5x5xf32> to vector<4x5xf32>
    %31 = vector.shape_cast %30 : vector<4x5xf32> to vector<4x5x1xf32>
    %32 = vector.broadcast %31 : vector<4x5x1xf32> to vector<4x5x5xf32>
    %33 = arith.subf %29, %32 : vector<4x5x5xf32>
    %34 = math.exp %33 : vector<4x5x5xf32>
    %cst_19 = arith.constant dense<0.000000e+00> : vector<4x5xf32>
    %35 = vector.multi_reduction <add>, %34, %cst_19 [2] : vector<4x5x5xf32> to vector<4x5xf32>
    %36 = vector.shape_cast %35 : vector<4x5xf32> to vector<4x5x1xf32>
    %37 = tpu.reciprocal %36 {approx = true} : vector<4x5x1xf32> -> vector<4x5x1xf32>
    %38 = vector.broadcast %37 : vector<4x5x1xf32> to vector<4x5x5xf32>
    %39 = arith.mulf %34, %38 : vector<4x5x5xf32>
    %40 = arith.truncf %39 : vector<4x5x5xf32> to vector<4x5x5xbf16>
    "tpu.trace_start"() <{level = 10 : i32, message = "bqk,bkd->bqd"}> : () -> ()
    %cst_20 = arith.constant dense<0.000000e+00> : vector<4x5x8xf32>
    %41 = tpu.matmul %40, %28, %cst_20 {dimension_numbers = #tpu.dot_dimension_numbers<[2], [1], [1], [2], [0, 0, 0, 1, 1, 2], [0], [0]>} : vector<4x5x5xbf16>, vector<4x5x8xbf16>, vector<4x5x8xf32> -> vector<4x5x8xf32>
    "tpu.trace_stop"() : () -> ()
    %c0_21 = arith.constant 0 : index
    %c0_22 = arith.constant 0 : index
    %c16 = arith.constant 16 : index
    %42 = vector.load %arg1[%c0_21, %c0_22, %c16] : memref<4x5x96xf32, #tpu.memory_space<vmem>>, vector<4x5x8xf32>
    %cst_23 = arith.constant 0.353553385 : f32
    %43 = vector.broadcast %cst_23 : f32 to vector<4x5x8xf32>
    %44 = arith.mulf %42, %43 : vector<4x5x8xf32>
    %45 = arith.truncf %44 : vector<4x5x8xf32> to vector<4x5x8xbf16>
    %c0_24 = arith.constant 0 : index
    %c0_25 = arith.constant 0 : index
    %c48 = arith.constant 48 : index
    %46 = vector.load %arg1[%c0_24, %c0_25, %c48] : memref<4x5x96xf32, #tpu.memory_space<vmem>>, vector<4x5x8xf32>
    %47 = arith.truncf %46 : vector<4x5x8xf32> to vector<4x5x8xbf16>
    %c0_26 = arith.constant 0 : index
    %c0_27 = arith.constant 0 : index
    %c80 = arith.constant 80 : index
    %48 = vector.load %arg1[%c0_26, %c0_27, %c80] : memref<4x5x96xf32, #tpu.memory_space<vmem>>, vector<4x5x8xf32>
    %49 = arith.truncf %48 : vector<4x5x8xf32> to vector<4x5x8xbf16>
    "tpu.trace_start"() <{level = 10 : i32, message = "bqd,bkd->bqk"}> : () -> ()
    %cst_28 = arith.constant dense<0.000000e+00> : vector<4x5x5xf32>
    %50 = tpu.matmul %45, %47, %cst_28 {dimension_numbers = #tpu.dot_dimension_numbers<[2], [2], [1], [1], [0, 0, 0, 1, 1, 1], [0], [0]>} : vector<4x5x8xbf16>, vector<4x5x8xbf16>, vector<4x5x5xf32> -> vector<4x5x5xf32>
    "tpu.trace_stop"() : () -> ()
    %cst_29 = arith.constant dense<0xFF800000> : vector<4x5xf32>
    %51 = vector.multi_reduction <maximumf>, %50, %cst_29 [2] : vector<4x5x5xf32> to vector<4x5xf32>
    %52 = vector.shape_cast %51 : vector<4x5xf32> to vector<4x5x1xf32>
    %53 = vector.broadcast %52 : vector<4x5x1xf32> to vector<4x5x5xf32>
    %54 = arith.subf %50, %53 : vector<4x5x5xf32>
    %55 = math.exp %54 : vector<4x5x5xf32>
    %cst_30 = arith.constant dense<0.000000e+00> : vector<4x5xf32>
    %56 = vector.multi_reduction <add>, %55, %cst_30 [2] : vector<4x5x5xf32> to vector<4x5xf32>
    %57 = vector.shape_cast %56 : vector<4x5xf32> to vector<4x5x1xf32>
    %58 = tpu.reciprocal %57 {approx = true} : vector<4x5x1xf32> -> vector<4x5x1xf32>
    %59 = vector.broadcast %58 : vector<4x5x1xf32> to vector<4x5x5xf32>
    %60 = arith.mulf %55, %59 : vector<4x5x5xf32>
    %61 = arith.truncf %60 : vector<4x5x5xf32> to vector<4x5x5xbf16>
    "tpu.trace_start"() <{level = 10 : i32, message = "bqk,bkd->bqd"}> : () -> ()
    %cst_31 = arith.constant dense<0.000000e+00> : vector<4x5x8xf32>
    %62 = tpu.matmul %61, %49, %cst_31 {dimension_numbers = #tpu.dot_dimension_numbers<[2], [1], [1], [2], [0, 0, 0, 1, 1, 2], [0], [0]>} : vector<4x5x5xbf16>, vector<4x5x8xbf16>, vector<4x5x8xf32> -> vector<4x5x8xf32>
    "tpu.trace_stop"() : () -> ()
    %c0_32 = arith.constant 0 : index
    %c0_33 = arith.constant 0 : index
    %c24 = arith.constant 24 : index
    %63 = vector.load %arg1[%c0_32, %c0_33, %c24] : memref<4x5x96xf32, #tpu.memory_space<vmem>>, vector<4x5x8xf32>
    %cst_34 = arith.constant 0.353553385 : f32
    %64 = vector.broadcast %cst_34 : f32 to vector<4x5x8xf32>
    %65 = arith.mulf %63, %64 : vector<4x5x8xf32>
    %66 = arith.truncf %65 : vector<4x5x8xf32> to vector<4x5x8xbf16>
    %c0_35 = arith.constant 0 : index
    %c0_36 = arith.constant 0 : index
    %c56 = arith.constant 56 : index
    %67 = vector.load %arg1[%c0_35, %c0_36, %c56] : memref<4x5x96xf32, #tpu.memory_space<vmem>>, vector<4x5x8xf32>
    %68 = arith.truncf %67 : vector<4x5x8xf32> to vector<4x5x8xbf16>
    %c0_37 = arith.constant 0 : index
    %c0_38 = arith.constant 0 : index
    %c88 = arith.constant 88 : index
    %69 = vector.load %arg1[%c0_37, %c0_38, %c88] : memref<4x5x96xf32, #tpu.memory_space<vmem>>, vector<4x5x8xf32>
    %70 = arith.truncf %69 : vector<4x5x8xf32> to vector<4x5x8xbf16>
    "tpu.trace_start"() <{level = 10 : i32, message = "bqd,bkd->bqk"}> : () -> ()
    %cst_39 = arith.constant dense<0.000000e+00> : vector<4x5x5xf32>
    %71 = tpu.matmul %66, %68, %cst_39 {dimension_numbers = #tpu.dot_dimension_numbers<[2], [2], [1], [1], [0, 0, 0, 1, 1, 1], [0], [0]>} : vector<4x5x8xbf16>, vector<4x5x8xbf16>, vector<4x5x5xf32> -> vector<4x5x5xf32>
    "tpu.trace_stop"() : () -> ()
    %cst_40 = arith.constant dense<0xFF800000> : vector<4x5xf32>
    %72 = vector.multi_reduction <maximumf>, %71, %cst_40 [2] : vector<4x5x5xf32> to vector<4x5xf32>
    %73 = vector.shape_cast %72 : vector<4x5xf32> to vector<4x5x1xf32>
    %74 = vector.broadcast %73 : vector<4x5x1xf32> to vector<4x5x5xf32>
    %75 = arith.subf %71, %74 : vector<4x5x5xf32>
    %76 = math.exp %75 : vector<4x5x5xf32>
    %cst_41 = arith.constant dense<0.000000e+00> : vector<4x5xf32>
    %77 = vector.multi_reduction <add>, %76, %cst_41 [2] : vector<4x5x5xf32> to vector<4x5xf32>
    %78 = vector.shape_cast %77 : vector<4x5xf32> to vector<4x5x1xf32>
    %79 = tpu.reciprocal %78 {approx = true} : vector<4x5x1xf32> -> vector<4x5x1xf32>
    %80 = vector.broadcast %79 : vector<4x5x1xf32> to vector<4x5x5xf32>
    %81 = arith.mulf %76, %80 : vector<4x5x5xf32>
    %82 = arith.truncf %81 : vector<4x5x5xf32> to vector<4x5x5xbf16>
    "tpu.trace_start"() <{level = 10 : i32, message = "bqk,bkd->bqd"}> : () -> ()
    %cst_42 = arith.constant dense<0.000000e+00> : vector<4x5x8xf32>
    %83 = tpu.matmul %82, %70, %cst_42 {dimension_numbers = #tpu.dot_dimension_numbers<[2], [1], [1], [2], [0, 0, 0, 1, 1, 2], [0], [0]>} : vector<4x5x5xbf16>, vector<4x5x8xbf16>, vector<4x5x8xf32> -> vector<4x5x8xf32>
    "tpu.trace_stop"() : () -> ()
    %84 = tpu.concatenate %20, %41, %62, %83 in 2 : vector<4x5x8xf32>, vector<4x5x8xf32>, vector<4x5x8xf32>, vector<4x5x8xf32> -> vector<4x5x32xf32>
    %c0_43 = arith.constant 0 : index
    %c0_44 = arith.constant 0 : index
    %c0_45 = arith.constant 0 : index
    %85 = vector.load %arg2[%c0_43, %c0_44, %c0_45] : memref<4x5x32xf32, #tpu.memory_space<vmem>>, vector<4x5x32xf32>
    tpu.vector_store %arg2[%c0_43, %c0_44, %c0_45], %84 {strides = array<i32>} : memref<4x5x32xf32, #tpu.memory_space<vmem>>, vector<4x5x32xf32>,
    return
  }
  func.func @transform_0(%arg0: i32) -> (i32, i32, i32) {
    %c0_i32 = arith.constant 0 : i32
    %c0_i32_0 = arith.constant 0 : i32
    %c0_i32_1 = arith.constant 0 : i32
    return %arg0, %c0_i32, %c0_i32_0 : i32, i32, i32
  }
  func.func @transform_1(%arg0: i32) -> (i32, i32, i32) {
    %c0_i32 = arith.constant 0 : i32
    %c0_i32_0 = arith.constant 0 : i32
    %c0_i32_1 = arith.constant 0 : i32
    return %arg0, %c0_i32, %c0_i32_0 : i32, i32, i32
  }
}

module attributes {stable_mosaic.version = 11 : i64} {
  func.func @layernorm_kernel(%arg0: i32, %arg1: memref<18x32xf32, #tpu.memory_space<vmem>>, %arg2: memref<1x32xf32, #tpu.memory_space<vmem>>, %arg3: memref<1x32xf32, #tpu.memory_space<vmem>>, %arg4: memref<18x32xf32, #tpu.memory_space<vmem>>) attributes {dimension_semantics = [#tpu.dimension_semantics<parallel>], iteration_bounds = array<i64: 1>, scalar_prefetch = 0 : i64, scratch_operands = 0 : i64, tpu.core_type = #tpu.core_type<tc>, window_params = [{transform_indices = @transform_0, window_bounds = array<i64: 18, 32>}, {pipeline_mode = #tpu.pipeline_mode<synchronous>, transform_indices = @transform_1, window_bounds = array<i64: 1, 32>}, {pipeline_mode = #tpu.pipeline_mode<synchronous>, transform_indices = @transform_2, window_bounds = array<i64: 1, 32>}, {transform_indices = @transform_3, window_bounds = array<i64: 18, 32>}]} {
    %c0 = arith.constant 0 : index
    %c0_0 = arith.constant 0 : index
    %0 = vector.load %arg1[%c0, %c0_0] : memref<18x32xf32, #tpu.memory_space<vmem>>, vector<18x32xf32>
    %cst = arith.constant dense<0.000000e+00> : vector<18xf32>
    %1 = vector.multi_reduction <add>, %0, %cst [1] : vector<18x32xf32> to vector<18xf32>
    %2 = vector.shape_cast %1 : vector<18xf32> to vector<18x1xf32>
    %cst_1 = arith.constant 3.200000e+01 : f32
    %3 = vector.broadcast %cst_1 : f32 to vector<18x1xf32>
    %4 = arith.divf %2, %3 : vector<18x1xf32>
    %5 = vector.broadcast %4 : vector<18x1xf32> to vector<18x32xf32>
    %6 = arith.subf %0, %5 : vector<18x32xf32>
    %7 = arith.mulf %6, %6 : vector<18x32xf32>
    %cst_2 = arith.constant dense<0.000000e+00> : vector<18xf32>
    %8 = vector.multi_reduction <add>, %7, %cst_2 [1] : vector<18x32xf32> to vector<18xf32>
    %9 = vector.shape_cast %8 : vector<18xf32> to vector<18x1xf32>
    %cst_3 = arith.constant 3.200000e+01 : f32
    %10 = vector.broadcast %cst_3 : f32 to vector<18x1xf32>
    %11 = arith.divf %9, %10 : vector<18x1xf32>
    %12 = vector.broadcast %4 : vector<18x1xf32> to vector<18x32xf32>
    %13 = arith.subf %0, %12 : vector<18x32xf32>
    %cst_4 = arith.constant 9.99999997E-7 : f32
    %14 = vector.broadcast %cst_4 : f32 to vector<18x1xf32>
    %15 = arith.addf %11, %14 : vector<18x1xf32>
    %16 = math.rsqrt %15 : vector<18x1xf32>
    %17 = vector.broadcast %16 : vector<18x1xf32> to vector<18x32xf32>
    %18 = arith.mulf %13, %17 : vector<18x32xf32>
    %c0_5 = arith.constant 0 : index
    %c0_6 = arith.constant 0 : index
    %19 = vector.load %arg2[%c0_5, %c0_6] : memref<1x32xf32, #tpu.memory_space<vmem>>, vector<1x32xf32>
    %20 = vector.broadcast %19 : vector<1x32xf32> to vector<18x32xf32>
    %21 = arith.mulf %18, %20 : vector<18x32xf32>
    %c0_7 = arith.constant 0 : index
    %c0_8 = arith.constant 0 : index
    %22 = vector.load %arg3[%c0_7, %c0_8] : memref<1x32xf32, #tpu.memory_space<vmem>>, vector<1x32xf32>
    %23 = vector.broadcast %22 : vector<1x32xf32> to vector<18x32xf32>
    %24 = arith.addf %21, %23 : vector<18x32xf32>
    %c0_9 = arith.constant 0 : index
    %c0_10 = arith.constant 0 : index
    %25 = vector.load %arg4[%c0_9, %c0_10] : memref<18x32xf32, #tpu.memory_space<vmem>>, vector<18x32xf32>
    tpu.vector_store %arg4[%c0_9, %c0_10], %24 {strides = array<i32>} : memref<18x32xf32, #tpu.memory_space<vmem>>, vector<18x32xf32>,
    return
  }
  func.func @transform_0(%arg0: i32) -> (i32, i32) {
    %c0_i32 = arith.constant 0 : i32
    %c0_i32_0 = arith.constant 0 : i32
    return %arg0, %c0_i32 : i32, i32
  }
  func.func @transform_1(%arg0: i32) -> (i32, i32) {
    %c0_i32 = arith.constant 0 : i32
    %c0_i32_0 = arith.constant 0 : i32
    %c0_i32_1 = arith.constant 0 : i32
    return %c0_i32, %c0_i32_0 : i32, i32
  }
  func.func @transform_2(%arg0: i32) -> (i32, i32) {
    %c0_i32 = arith.constant 0 : i32
    %c0_i32_0 = arith.constant 0 : i32
    %c0_i32_1 = arith.constant 0 : i32
    return %c0_i32, %c0_i32_0 : i32, i32
  }
  func.func @transform_3(%arg0: i32) -> (i32, i32) {
    %c0_i32 = arith.constant 0 : i32
    %c0_i32_0 = arith.constant 0 : i32
    return %arg0, %c0_i32 : i32, i32
  }
}

module attributes {stable_mosaic.version = 11 : i64} {
  func.func @linear_kernel(%arg0: i32, %arg1: i32, %arg2: memref<18x32xf32, #tpu.memory_space<vmem>>, %arg3: memref<32x128xf32, #tpu.memory_space<vmem>>, %arg4: memref<1x128xf32, #tpu.memory_space<vmem>>, %arg5: memref<18x128xf32, #tpu.memory_space<vmem>>) attributes {dimension_semantics = [#tpu.dimension_semantics<parallel>, #tpu.dimension_semantics<parallel>], iteration_bounds = array<i64: 1, 1>, scalar_prefetch = 0 : i64, scratch_operands = 0 : i64, tpu.core_type = #tpu.core_type<tc>, window_params = [{transform_indices = @transform_0, window_bounds = array<i64: 18, 32>}, {transform_indices = @transform_1, window_bounds = array<i64: 32, 128>}, {transform_indices = @transform_2, window_bounds = array<i64: 1, 128>}, {transform_indices = @transform_3, window_bounds = array<i64: 18, 128>}]} {
    %c0 = arith.constant 0 : index
    %c0_0 = arith.constant 0 : index
    %0 = vector.load %arg2[%c0, %c0_0] : memref<18x32xf32, #tpu.memory_space<vmem>>, vector<18x32xf32>
    %1 = arith.truncf %0 : vector<18x32xf32> to vector<18x32xbf16>
    %c0_1 = arith.constant 0 : index
    %c0_2 = arith.constant 0 : index
    %2 = vector.load %arg3[%c0_1, %c0_2] : memref<32x128xf32, #tpu.memory_space<vmem>>, vector<32x128xf32>
    %3 = arith.truncf %2 : vector<32x128xf32> to vector<32x128xbf16>
    %cst = arith.constant dense<0.000000e+00> : vector<18x128xf32>
    %4 = tpu.matmul %1, %3, %cst {dimension_numbers = #tpu.dot_dimension_numbers<[1], [0], [0], [1], [0, 0, 1, 1], [], []>} : vector<18x32xbf16>, vector<32x128xbf16>, vector<18x128xf32> -> vector<18x128xf32>
    %c0_3 = arith.constant 0 : index
    %c0_4 = arith.constant 0 : index
    %5 = vector.load %arg4[%c0_3, %c0_4] : memref<1x128xf32, #tpu.memory_space<vmem>>, vector<1x128xf32>
    %6 = vector.broadcast %5 : vector<1x128xf32> to vector<18x128xf32>
    %7 = arith.addf %4, %6 : vector<18x128xf32>
    %cst_5 = arith.constant 5.000000e-01 : f32
    %8 = vector.broadcast %cst_5 : f32 to vector<18x128xf32>
    %9 = arith.mulf %8, %7 : vector<18x128xf32>
    %cst_6 = arith.constant 0.707106769 : f32
    %10 = vector.broadcast %cst_6 : f32 to vector<18x128xf32>
    %11 = arith.mulf %7, %10 : vector<18x128xf32>
    %12 = math.absf %11 : vector<18x128xf32>
    %cst_7 = arith.constant 0.327591091 : f32
    %13 = vector.broadcast %cst_7 : f32 to vector<18x128xf32>
    %14 = arith.mulf %13, %12 : vector<18x128xf32>
    %cst_8 = arith.constant 1.000000e+00 : f32
    %15 = vector.broadcast %cst_8 : f32 to vector<18x128xf32>
    %16 = arith.addf %15, %14 : vector<18x128xf32>
    %cst_9 = arith.constant 1.000000e+00 : f32
    %17 = vector.broadcast %cst_9 : f32 to vector<18x128xf32>
    %18 = arith.divf %17, %16 : vector<18x128xf32>
    %cst_10 = arith.constant 1.06140542 : f32
    %19 = vector.broadcast %cst_10 : f32 to vector<18x128xf32>
    %20 = arith.mulf %19, %18 : vector<18x128xf32>
    %cst_11 = arith.constant -1.45315206 : f32
    %21 = vector.broadcast %cst_11 : f32 to vector<18x128xf32>
    %22 = arith.addf %20, %21 : vector<18x128xf32>
    %23 = arith.mulf %22, %18 : vector<18x128xf32>
    %cst_12 = arith.constant 1.42141378 : f32
    %24 = vector.broadcast %cst_12 : f32 to vector<18x128xf32>
    %25 = arith.addf %23, %24 : vector<18x128xf32>
    %26 = arith.mulf %25, %18 : vector<18x128xf32>
    %cst_13 = arith.constant -0.284496725 : f32
    %27 = vector.broadcast %cst_13 : f32 to vector<18x128xf32>
    %28 = arith.addf %26, %27 : vector<18x128xf32>
    %29 = arith.mulf %28, %18 : vector<18x128xf32>
    %cst_14 = arith.constant 0.254829586 : f32
    %30 = vector.broadcast %cst_14 : f32 to vector<18x128xf32>
    %31 = arith.addf %29, %30 : vector<18x128xf32>
    %32 = arith.mulf %31, %18 : vector<18x128xf32>
    %cst_15 = arith.constant 0.000000e+00 : f32
    %33 = vector.broadcast %cst_15 : f32 to vector<18x128xf32>
    %34 = arith.subf %33, %12 : vector<18x128xf32>
    %35 = arith.mulf %34, %12 : vector<18x128xf32>
    %36 = math.exp %35 : vector<18x128xf32>
    %37 = arith.mulf %32, %36 : vector<18x128xf32>
    %cst_16 = arith.constant 1.000000e+00 : f32
    %38 = vector.broadcast %cst_16 : f32 to vector<18x128xf32>
    %39 = arith.subf %38, %37 : vector<18x128xf32>
    %cst_17 = arith.constant 0.000000e+00 : f32
    %40 = vector.broadcast %cst_17 : f32 to vector<18x128xf32>
    %41 = arith.cmpf olt, %11, %40 : vector<18x128xf32>
    %cst_18 = arith.constant 0.000000e+00 : f32
    %42 = vector.broadcast %cst_18 : f32 to vector<18x128xf32>
    %43 = arith.subf %42, %39 : vector<18x128xf32>
    %44 = arith.select %41, %43, %39 : vector<18x128xi1>, vector<18x128xf32>
    %cst_19 = arith.constant 1.000000e+00 : f32
    %45 = vector.broadcast %cst_19 : f32 to vector<18x128xf32>
    %46 = arith.addf %45, %44 : vector<18x128xf32>
    %47 = arith.mulf %9, %46 : vector<18x128xf32>
    %c0_20 = arith.constant 0 : index
    %c0_21 = arith.constant 0 : index
    %48 = vector.load %arg5[%c0_20, %c0_21] : memref<18x128xf32, #tpu.memory_space<vmem>>, vector<18x128xf32>
    tpu.vector_store %arg5[%c0_20, %c0_21], %47 {strides = array<i32>} : memref<18x128xf32, #tpu.memory_space<vmem>>, vector<18x128xf32>,
    return
  }
  func.func @transform_0(%arg0: i32, %arg1: i32) -> (i32, i32) {
    %c0_i32 = arith.constant 0 : i32
    %c0_i32_0 = arith.constant 0 : i32
    return %arg1, %c0_i32 : i32, i32
  }
  func.func @transform_1(%arg0: i32, %arg1: i32) -> (i32, i32) {
    %c0_i32 = arith.constant 0 : i32
    %c0_i32_0 = arith.constant 0 : i32
    return %c0_i32, %arg0 : i32, i32
  }
  func.func @transform_2(%arg0: i32, %arg1: i32) -> (i32, i32) {
    %c0_i32 = arith.constant 0 : i32
    %c0_i32_0 = arith.constant 0 : i32
    return %c0_i32, %arg0 : i32, i32
  }
  func.func @transform_3(%arg0: i32, %arg1: i32) -> (i32, i32) {
    %c0_i32 = arith.constant 0 : i32
    return %arg1, %arg0 : i32, i32
  }
}

module attributes {stable_mosaic.version = 11 : i64} {
  func.func @linear_kernel(%arg0: i32, %arg1: i32, %arg2: memref<18x128xf32, #tpu.memory_space<vmem>>, %arg3: memref<128x32xf32, #tpu.memory_space<vmem>>, %arg4: memref<1x32xf32, #tpu.memory_space<vmem>>, %arg5: memref<18x32xf32, #tpu.memory_space<vmem>>) attributes {dimension_semantics = [#tpu.dimension_semantics<parallel>, #tpu.dimension_semantics<parallel>], iteration_bounds = array<i64: 1, 1>, scalar_prefetch = 0 : i64, scratch_operands = 0 : i64, tpu.core_type = #tpu.core_type<tc>, window_params = [{transform_indices = @transform_0, window_bounds = array<i64: 18, 128>}, {transform_indices = @transform_1, window_bounds = array<i64: 128, 32>}, {transform_indices = @transform_2, window_bounds = array<i64: 1, 32>}, {transform_indices = @transform_3, window_bounds = array<i64: 18, 32>}]} {
    %c0 = arith.constant 0 : index
    %c0_0 = arith.constant 0 : index
    %0 = vector.load %arg2[%c0, %c0_0] : memref<18x128xf32, #tpu.memory_space<vmem>>, vector<18x128xf32>
    %1 = arith.truncf %0 : vector<18x128xf32> to vector<18x128xbf16>
    %c0_1 = arith.constant 0 : index
    %c0_2 = arith.constant 0 : index
    %2 = vector.load %arg3[%c0_1, %c0_2] : memref<128x32xf32, #tpu.memory_space<vmem>>, vector<128x32xf32>
    %3 = arith.truncf %2 : vector<128x32xf32> to vector<128x32xbf16>
    %cst = arith.constant dense<0.000000e+00> : vector<18x32xf32>
    %4 = tpu.matmul %1, %3, %cst {dimension_numbers = #tpu.dot_dimension_numbers<[1], [0], [0], [1], [0, 0, 1, 1], [], []>} : vector<18x128xbf16>, vector<128x32xbf16>, vector<18x32xf32> -> vector<18x32xf32>
    %c0_3 = arith.constant 0 : index
    %c0_4 = arith.constant 0 : index
    %5 = vector.load %arg4[%c0_3, %c0_4] : memref<1x32xf32, #tpu.memory_space<vmem>>, vector<1x32xf32>
    %6 = vector.broadcast %5 : vector<1x32xf32> to vector<18x32xf32>
    %7 = arith.addf %4, %6 : vector<18x32xf32>
    %c0_5 = arith.constant 0 : index
    %c0_6 = arith.constant 0 : index
    %8 = vector.load %arg5[%c0_5, %c0_6] : memref<18x32xf32, #tpu.memory_space<vmem>>, vector<18x32xf32>
    tpu.vector_store %arg5[%c0_5, %c0_6], %7 {strides = array<i32>} : memref<18x32xf32, #tpu.memory_space<vmem>>, vector<18x32xf32>,
    return
  }
  func.func @transform_0(%arg0: i32, %arg1: i32) -> (i32, i32) {
    %c0_i32 = arith.constant 0 : i32
    %c0_i32_0 = arith.constant 0 : i32
    return %arg1, %c0_i32 : i32, i32
  }
  func.func @transform_1(%arg0: i32, %arg1: i32) -> (i32, i32) {
    %c0_i32 = arith.constant 0 : i32
    %c0_i32_0 = arith.constant 0 : i32
    return %c0_i32, %arg0 : i32, i32
  }
  func.func @transform_2(%arg0: i32, %arg1: i32) -> (i32, i32) {
    %c0_i32 = arith.constant 0 : i32
    %c0_i32_0 = arith.constant 0 : i32
    return %c0_i32, %arg0 : i32, i32
  }
  func.func @transform_3(%arg0: i32, %arg1: i32) -> (i32, i32) {
    %c0_i32 = arith.constant 0 : i32
    return %arg1, %arg0 : i32, i32
  }
}

module attributes {stable_mosaic.version = 11 : i64} {
  func.func @linear_kernel(%arg0: i32, %arg1: i32, %arg2: memref<2x32xf32, #tpu.memory_space<vmem>>, %arg3: memref<32x8xf32, #tpu.memory_space<vmem>>, %arg4: memref<1x8xf32, #tpu.memory_space<vmem>>, %arg5: memref<2x8xf32, #tpu.memory_space<vmem>>) attributes {dimension_semantics = [#tpu.dimension_semantics<parallel>, #tpu.dimension_semantics<parallel>], iteration_bounds = array<i64: 1, 1>, scalar_prefetch = 0 : i64, scratch_operands = 0 : i64, tpu.core_type = #tpu.core_type<tc>, window_params = [{transform_indices = @transform_0, window_bounds = array<i64: 2, 32>}, {transform_indices = @transform_1, window_bounds = array<i64: 32, 8>}, {transform_indices = @transform_2, window_bounds = array<i64: 1, 8>}, {transform_indices = @transform_3, window_bounds = array<i64: 2, 8>}]} {
    %c0 = arith.constant 0 : index
    %c0_0 = arith.constant 0 : index
    %0 = vector.load %arg2[%c0, %c0_0] : memref<2x32xf32, #tpu.memory_space<vmem>>, vector<2x32xf32>
    %1 = arith.truncf %0 : vector<2x32xf32> to vector<2x32xbf16>
    %c0_1 = arith.constant 0 : index
    %c0_2 = arith.constant 0 : index
    %2 = vector.load %arg3[%c0_1, %c0_2] : memref<32x8xf32, #tpu.memory_space<vmem>>, vector<32x8xf32>
    %3 = arith.truncf %2 : vector<32x8xf32> to vector<32x8xbf16>
    %cst = arith.constant dense<0.000000e+00> : vector<2x8xf32>
    %4 = tpu.matmul %1, %3, %cst {dimension_numbers = #tpu.dot_dimension_numbers<[1], [0], [0], [1], [0, 0, 1, 1], [], []>} : vector<2x32xbf16>, vector<32x8xbf16>, vector<2x8xf32> -> vector<2x8xf32>
    %c0_3 = arith.constant 0 : index
    %c0_4 = arith.constant 0 : index
    %5 = vector.load %arg4[%c0_3, %c0_4] : memref<1x8xf32, #tpu.memory_space<vmem>>, vector<1x8xf32>
    %6 = vector.broadcast %5 : vector<1x8xf32> to vector<2x8xf32>
    %7 = arith.addf %4, %6 : vector<2x8xf32>
    %c0_5 = arith.constant 0 : index
    %c0_6 = arith.constant 0 : index
    %8 = vector.load %arg5[%c0_5, %c0_6] : memref<2x8xf32, #tpu.memory_space<vmem>>, vector<2x8xf32>
    tpu.vector_store %arg5[%c0_5, %c0_6], %7 {strides = array<i32>} : memref<2x8xf32, #tpu.memory_space<vmem>>, vector<2x8xf32>,
    return
  }
  func.func @transform_0(%arg0: i32, %arg1: i32) -> (i32, i32) {
    %c0_i32 = arith.constant 0 : i32
    %c0_i32_0 = arith.constant 0 : i32
    return %arg1, %c0_i32 : i32, i32
  }
  func.func @transform_1(%arg0: i32, %arg1: i32) -> (i32, i32) {
    %c0_i32 = arith.constant 0 : i32
    %c0_i32_0 = arith.constant 0 : i32
    return %c0_i32, %arg0 : i32, i32
  }
  func.func @transform_2(%arg0: i32, %arg1: i32) -> (i32, i32) {
    %c0_i32 = arith.constant 0 : i32
    %c0_i32_0 = arith.constant 0 : i32
    return %c0_i32, %arg0 : i32, i32
  }
  func.func @transform_3(%arg0: i32, %arg1: i32) -> (i32, i32) {
    %c0_i32 = arith.constant 0 : i32
    return %arg1, %arg0 : i32, i32
  }
}

</mosaic_0001>

<bundles_post_ra>
// kernel: timesformer_forward.27
= control target key start
LH: loop header
LB: loop body
LE: loop exit
PB: predicated region body
PF: predicated region fallthrough
CT: control target
= control target key end

     0   :  { %v119_v0 = vmov 0   ;;  %vm64_vm0 = vcmask 523264   ;;  %vm109_vm1 = vcmask 261120   ;;  %s245_s1 = inlined_call_operand.vmem [shape: f32[192,32], index: 1, kind: input, shape index: {}]   ;;  %s246_s0 = inlined_call_operand.vmem [shape: f32[16,192], index: 0, kind: input, shape index: {}]   ;;  %s247_s2 = inlined_call_operand.vmem [shape: f32[1,32], index: 2, kind: input, shape index: {}]   ;;  %s248_s3 = inlined_call_operand.vmem [shape: f32[16,32], index: 3, kind: output, shape index: {}]  }
   0x1   :  { %68 = vmatprep.subr.bf16.mxu0 %v119_v0  ;;  %v21_v1 = vld [vmem:[%s245_s1] sm:$0xff]  ;;  %v22_v2 = vld [vmem:[%s245_s1 + $0x8] sm:$0xff]  ;;  %v23_v3 = vld [vmem:[%s245_s1 + $0x10] sm:$0xff] }
   0x2   :  { %v45_v4 = vpack.c.bf16 %v22_v2, %v21_v1  ;;  %v24_v5 = vld [vmem:[%s245_s1 + $0x18] sm:$0xff]  ;;  %v25_v7 = vld [vmem:[%s245_s1 + $0x20] sm:$0xff]  ;;  %v26_v8 = vld [vmem:[%s245_s1 + $0x28] sm:$0xff] }
   0x3   :  { %v46_v6 = vpack.c.bf16 %v24_v5, %v23_v3  ;;  %v47_v9 = vpack.c.bf16 %v26_v8, %v25_v7  ;;  %v27_v10 = vld [vmem:[%s245_s1 + $0x30] sm:$0xff]  ;;  %v28_v11 = vld [vmem:[%s245_s1 + $0x38] sm:$0xff]  ;;  %v16_v12 = vld [vmem:[%s246_s0 + $0x8] sm:$0xff] }
   0x4   :  { %69 = vmatpush1.bf16.msra.mxu0 %v45_v4  ;;  %v18_v13 = vld [vmem:[%s246_s0 + $0x18] sm:$0xff]  ;;  %v48_v15 = vpack.c.bf16 %v28_v11, %v27_v10  ;;  %v29_v16 = vld [vmem:[%s245_s1 + $0x40] sm:$0xff]  ;;  %v30_v17 = vld [vmem:[%s245_s1 + $0x48] sm:$0xff] }
   0x5   :  { %70 = vmatprep.subr.bf16.mxu0 %v119_v0  ;;  %v20_v14 = vpack.c.bf16 %v18_v13, %v16_v12  ;;  %v49_v18 = vpack.c.bf16 %v30_v17, %v29_v16  ;;  %v31_v19 = vld [vmem:[%s245_s1 + $0x50] sm:$0xff]  ;;  %v32_v20 = vld [vmem:[%s245_s1 + $0x58] sm:$0xff]  ;;  %v33_v22 = vld [vmem:[%s245_s1 + $0x60] sm:$0xff] }
   0x6   :  { %v50_v21 = vpack.c.bf16 %v32_v20, %v31_v19  ;;  %v34_v23 = vld [vmem:[%s245_s1 + $0x68] sm:$0xff]  ;;  %v35_v25 = vld [vmem:[%s245_s1 + $0x70] sm:$0xff]  ;;  %v36_v26 = vld [vmem:[%s245_s1 + $0x78] sm:$0xff] }
   0x7   :  { %117 = vmatprep.mubr.msk.bf16.mxu0 %vm64_vm0, %v20_v14  ;;  %v51_v24 = vpack.c.bf16 %v34_v23, %v33_v22  ;;  %v52_v27 = vpack.c.bf16 %v36_v26, %v35_v25  ;;  %v37_v28 = vld [vmem:[%s245_s1 + $0x80] sm:$0xff]  ;;  %v38_v29 = vld [vmem:[%s245_s1 + $0x88] sm:$0xff]  ;;  %v39_v31 = vld [vmem:[%s245_s1 + $0x90] sm:$0xff] }
   0x8   :  { %71 = vmatpush1.bf16.msra.mxu0 %v46_v6  ;;  %v53_v30 = vpack.c.bf16 %v38_v29, %v37_v28  ;;  %v40_v32 = vld [vmem:[%s245_s1 + $0x98] sm:$0xff]  ;;  %v41_v34 = vld [vmem:[%s245_s1 + $0xa0] sm:$0xff]  ;;  %v42_v35 = vld [vmem:[%s245_s1 + $0xa8] sm:$0xff] }
   0x9   :  { %72 = vmatprep.subr.bf16.mxu0 %v119_v0  ;;  %v54_v33 = vpack.c.bf16 %v40_v32, %v39_v31  ;;  %v55_v36 = vpack.c.bf16 %v42_v35, %v41_v34  ;;  %v43_v37 = vld [vmem:[%s245_s1 + $0xb0] sm:$0xff]  ;;  %v44_v38 = vld [vmem:[%s245_s1 + $0xb8] sm:$0xff]  ;;  %v15_v40 = vld [vmem:[%s246_s0] sm:$0xff] }
   0xa   :  { %v56_v39 = vpack.c.bf16 %v44_v38, %v43_v37  ;;  %v17_v41 = vld [vmem:[%s246_s0 + $0x10] sm:$0xff]  ;;  %v116_v43 = vld [vmem:[%s247_s2] ss:$0 sm:$0xff] }
   0xb   :  { %v19_v42 = vpack.c.bf16 %v17_v41, %v15_v40 }
   0xc   :  { %73 = vmatpush1.bf16.msra.mxu0 %v47_v9 }
   0xd   :  { %74 = vmatprep.subr.bf16.mxu0 %v119_v0 }
  0x10   :  { %75 = vmatpush1.bf16.msra.mxu0 %v48_v15 }
  0x11   :  { %76 = vmatprep.subr.bf16.mxu0 %v119_v0 }
  0x14   :  { %77 = vmatpush1.bf16.msra.mxu0 %v49_v18 }
  0x15   :  { %78 = vmatprep.subr.bf16.mxu0 %v119_v0 }
  0x18   :  { %79 = vmatpush1.bf16.msra.mxu0 %v50_v21 }
  0x19   :  { %80 = vmatprep.subr.bf16.mxu0 %v119_v0 }
  0x1c   :  { %81 = vmatpush1.bf16.msra.mxu0 %v51_v24 }
  0x1d   :  { %82 = vmatprep.subr.bf16.mxu0 %v119_v0 }
  0x20   :  { %83 = vmatpush1.bf16.msra.mxu0 %v52_v27 }
  0x21   :  { %84 = vmatprep.subr.bf16.mxu0 %v119_v0 }
  0x24   :  { %85 = vmatpush1.bf16.msra.mxu0 %v53_v30 }
  0x25   :  { %86 = vmatprep.subr.bf16.mxu0 %v119_v0 }
  0x28   :  { %87 = vmatpush1.bf16.msra.mxu0 %v54_v33 }
  0x29   :  { %88 = vmatprep.subr.bf16.mxu0 %v119_v0 }
  0x2c   :  { %89 = vmatpush1.bf16.msra.mxu0 %v55_v36 }
  0x2d   :  { %90 = vmatprep.subr.bf16.mxu0 %v119_v0 }
  0x30   :  { %91 = vmatpush1.bf16.msra.mxu0 %v56_v39 }
  0x33   :  { %101 = vmatmul.mubr.bf16.vlgmr.msra.gmra.mrb[0].mxu0 %v19_v42 }
 0x106   :  { %v102_v44 = vpop.f32.mrb[0].mxu0 }
 0x107   :  { %v103_v45 = vadd.f32 %v116_v43, %v102_v44  ;;  %v104_v46 = vpop.f32.mrb[1].mxu0 }
 0x108   :  { %v105_v47 = vpop.f32.mrb[2].mxu0 }
 0x109   :  { %110 = vst.msk [vmem:[%s248_s3] sm:$0xff] %vm109_vm1, %v103_v45  ;;  %v106_v48 = vadd.f32 %v116_v43, %v105_v47  ;;  %v107_v49 = vpop.f32.mrb[3].mxu0 }
 0x10b   :  { %111 = vst.msk [vmem:[%s248_s3 + $0x8] sm:$0xff] %vm109_vm1, %v106_v48 }

// kernel: timesformer_forward.28
= control target key start
LH: loop header
LB: loop body
LE: loop exit
PB: predicated region body
PF: predicated region fallthrough
CT: control target
= control target key end

     0   :  { %vm16_vm0 = vcmask 261120   ;;  %s118_s0 = inlined_call_operand.vmem [shape: f32[16,32], index: 0, kind: input, shape index: {}]   ;;  %s119_s1 = inlined_call_operand.vmem [shape: f32[1,32], index: 1, kind: input, shape index: {}]   ;;  %s120_s2 = inlined_call_operand.vmem [shape: f32[1,32], index: 2, kind: input, shape index: {}]   ;;  %s121_s3 = inlined_call_operand.vmem [shape: f32[16,32], index: 3, kind: output, shape index: {}]  }
   0x1   :  { %v14_v0 = vld [vmem:[%s118_s0] sm:$0xff]  ;;  %v15_v1 = vld [vmem:[%s118_s0 + $0x8] sm:$0xff] }
   0x2   :  { %v17_v2 = vsel %vm16_vm0, %v14_v0, 0.0  ;;  %v20_v3 = vsel %vm16_vm0, %v15_v1, 0.0  ;;  %v68_v21 = vld [vmem:[%s119_s1] ss:$0 sm:$0xff] }
   0x3   :  { %18 = vadd.xlane.f32.xlu0 %v17_v2  ;;  %v69_v23 = vld [vmem:[%s120_s2] ss:$0 sm:$0xff] }
   0x7   :  { %21 = vadd.xlane.f32.xlu0 %v20_v3 }
  0x90   :  { %v19_v4 = vpop.xlane.xlu0 %18 }
  0x91   :  { %v24_v5 = vmul.f32 0.03125, %v19_v4 }
  0x93   :  { %v26_v6 = vsub.f32 %v14_v0, %v24_v5 }
  0x94   :  { %v22_v7 = vpop.xlane.xlu0 %21 }
  0x95   :  { %v25_v8 = vmul.f32 0.03125, %v22_v7  ;;  %v28_v9 = vmul.f32 %v26_v6, %v26_v6 }
  0x97   :  { %v27_v10 = vsub.f32 %v15_v1, %v25_v8  ;;  %v30_v11 = vsel %vm16_vm0, %v28_v9, 0.0 }
  0x98   :  { %31 = vadd.xlane.f32.xlu1 %v30_v11 }
  0x99   :  { %v29_v12 = vmul.f32 %v27_v10, %v27_v10 }
  0x9b   :  { %v33_v13 = vsel %vm16_vm0, %v29_v12, 0.0 }
  0x9c   :  { %34 = vadd.xlane.f32.xlu1 %v33_v13 }
 0x125   :  { %v32_v14 = vpop.xlane.xlu1 %31 }
 0x126   :  { %v36_v15 = vmul.f32 0.03125, %v32_v14 }
 0x128   :  { %v38_v16 = vadd.f32 1e-06, %v36_v15 }
 0x129   :  { %v35_v17 = vpop.xlane.xlu1 %34 }
 0x12a   :  { %70 = vrsqrt.f32 %v38_v16  ;;  %v37_v18 = vmul.f32 0.03125, %v35_v17 }
 0x12c   :  { %v39_v19 = vadd.f32 1e-06, %v37_v18 }
 0x12e   :  { %72 = vrsqrt.f32 %v39_v19 }
 0x134   :  { %v71_v20 = vpop.eup %70 }
 0x135   :  { %v42_v22 = vmul.f32 %v71_v20, %v26_v6 }
 0x137   :  { %v51_v24 = vmul.f32 %v68_v21, %v42_v22 }
 0x138   :  { %v73_v25 = vpop.eup %72 }
 0x139   :  { %v60_v26 = vadd.f32 %v69_v23, %v51_v24  ;;  %v43_v27 = vmul.f32 %v73_v25, %v27_v10 }
 0x13b   :  { %62 = vst.msk [vmem:[%s121_s3] sm:$0xff] %vm16_vm0, %v60_v26  ;;  %v52_v28 = vmul.f32 %v68_v21, %v43_v27 }
 0x13d   :  { %v61_v29 = vadd.f32 %v69_v23, %v52_v28 }
 0x13f   :  { %63 = vst.msk [vmem:[%s121_s3 + $0x8] sm:$0xff] %vm16_vm0, %v61_v29 }

// kernel: timesformer_forward.29
= control target key start
LH: loop header
LB: loop body
LE: loop exit
PB: predicated region body
PF: predicated region fallthrough
CT: control target
= control target key end

     0   :  { %v98_v0 = vmov 0.0   ;;  %vm99_vm0 = vmmov 0   ;;  %vm31_vm1 = vcmask 261120   ;;  %vm76_vm2 = vcmask 785408   ;;  %s147_s1 = inlined_call_operand.vmem [shape: f32[32,96], index: 1, kind: input, shape index: {}]   ;;  %s148_s0 = inlined_call_operand.vmem [shape: f32[16,32], index: 0, kind: input, shape index: {}]   ;;  %s149_s2 = inlined_call_operand.vmem [shape: f32[1,96], index: 2, kind: input, shape index: {}]   ;;  %s150_s3 = inlined_call_operand.vmem [shape: f32[16,96], index: 3, kind: output, shape index: {}]  }
   0x1   :  { %88 = vmatprep.subr.bf16.mxu0 %v98_v0  ;;  %v18_v1 = vld [vmem:[%s147_s1] sm:$0xff]  ;;  %v19_v2 = vld [vmem:[%s147_s1 + $0x8] sm:$0xff]  ;;  %v20_v3 = vld [vmem:[%s147_s1 + $0x10] sm:$0xff]  ;;  %92 = vmatprep.mubr.msk.bf16.mxu0 %vm99_vm0, %v98_v0 }
   0x2   :  { %v22_v4 = vpack.c.bf16 %v19_v2, %v18_v1  ;;  %v21_v5 = vld [vmem:[%s147_s1 + $0x18] sm:$0xff]  ;;  %v15_v7 = vld [vmem:[%s148_s0] sm:$0xff]  ;;  %v16_v8 = vld [vmem:[%s148_s0 + $0x8] sm:$0xff] }
   0x3   :  { %v23_v6 = vpack.c.bf16 %v21_v5, %v20_v3  ;;  %v17_v9 = vpack.c.bf16 %v16_v8, %v15_v7  ;;  %v83_v10 = vld [vmem:[%s149_s2] ss:$0 sm:$0xff] }
   0x4   :  { %89 = vmatpush3.bf16.msra.mxu0 %v22_v4 }
   0x5   :  { %90 = vmatprep.subr.bf16.mxu0 %v98_v0 }
   0x8   :  { %91 = vmatpush3.bf16.msra.mxu0 %v23_v6 }
   0xb   :  { %93 = vmatmul.mubr.msk.bf16.vlgmr.msra.gmra.mrb[0].mxu0 %vm31_vm1, %v17_v9 }
  0xde   :  { %v69_v11 = vpop.f32.mrb[0].mxu0 }
  0xdf   :  { %v70_v12 = vadd.f32 %v83_v10, %v69_v11  ;;  %v94_v13 = vpop.f32.mrb[1].mxu0 }
  0xe0   :  { %v72_v14 = vpop.f32.mrb[2].mxu0 }
  0xe1   :  { %77 = vst.msk [vmem:[%s150_s3] sm:$0xff] %vm76_vm2, %v70_v12  ;;  %v73_v15 = vadd.f32 %v83_v10, %v72_v14  ;;  %v95_v16 = vpop.f32.mrb[3].mxu0 }
  0xe3   :  { %78 = vst.msk [vmem:[%s150_s3 + $0x8] sm:$0xff] %vm76_vm2, %v73_v15 }

// kernel: timesformer_forward.31
= control target key start
LH: loop header
LB: loop body
LE: loop exit
PB: predicated region body
PF: predicated region fallthrough
CT: control target
= control target key end

     0   :  { %v97_v0 = vmov 0.0   ;;  %vm98_vm0 = vmmov 0   ;;  %vm31_vm1 = vcmask 261120   ;;  %s146_s1 = inlined_call_operand.vmem [shape: f32[32,32], index: 1, kind: input, shape index: {}]   ;;  %s147_s0 = inlined_call_operand.vmem [shape: f32[16,32], index: 0, kind: input, shape index: {}]   ;;  %s148_s2 = inlined_call_operand.vmem [shape: f32[1,32], index: 2, kind: input, shape index: {}]   ;;  %s149_s3 = inlined_call_operand.vmem [shape: f32[16,32], index: 3, kind: output, shape index: {}]  }
   0x1   :  { %87 = vmatprep.subr.bf16.mxu0 %v97_v0  ;;  %v18_v1 = vld [vmem:[%s146_s1] sm:$0xff]  ;;  %v19_v2 = vld [vmem:[%s146_s1 + $0x8] sm:$0xff]  ;;  %v20_v3 = vld [vmem:[%s146_s1 + $0x10] sm:$0xff]  ;;  %91 = vmatprep.mubr.msk.bf16.mxu0 %vm98_vm0, %v97_v0 }
   0x2   :  { %v22_v4 = vpack.c.bf16 %v19_v2, %v18_v1  ;;  %v21_v5 = vld [vmem:[%s146_s1 + $0x18] sm:$0xff]  ;;  %v15_v7 = vld [vmem:[%s147_s0] sm:$0xff]  ;;  %v16_v8 = vld [vmem:[%s147_s0 + $0x8] sm:$0xff] }
   0x3   :  { %v23_v6 = vpack.c.bf16 %v21_v5, %v20_v3  ;;  %v17_v9 = vpack.c.bf16 %v16_v8, %v15_v7  ;;  %v82_v10 = vld [vmem:[%s148_s2] ss:$0 sm:$0xff] }
   0x4   :  { %88 = vmatpush3.bf16.msra.mxu0 %v22_v4 }
   0x5   :  { %89 = vmatprep.subr.bf16.mxu0 %v97_v0 }
   0x8   :  { %90 = vmatpush3.bf16.msra.mxu0 %v23_v6 }
   0xb   :  { %92 = vmatmul.mubr.msk.bf16.vlgmr.msra.gmra.mrb[0].mxu0 %vm31_vm1, %v17_v9 }
  0xde   :  { %v69_v11 = vpop.f32.mrb[0].mxu0 }
  0xdf   :  { %v70_v12 = vadd.f32 %v82_v10, %v69_v11  ;;  %v93_v13 = vpop.f32.mrb[1].mxu0 }
  0xe0   :  { %v72_v14 = vpop.f32.mrb[2].mxu0 }
  0xe1   :  { %76 = vst.msk [vmem:[%s149_s3] sm:$0xff] %vm31_vm1, %v70_v12  ;;  %v73_v15 = vadd.f32 %v82_v10, %v72_v14  ;;  %v94_v16 = vpop.f32.mrb[3].mxu0 }
  0xe3   :  { %77 = vst.msk [vmem:[%s149_s3 + $0x8] sm:$0xff] %vm31_vm1, %v73_v15 }

// kernel: timesformer_forward.33
= control target key start
LH: loop header
LB: loop body
LE: loop exit
PB: predicated region body
PF: predicated region fallthrough
CT: control target
= control target key end

     0   :  { %vm17_vm0 = vcmask 261120   ;;  %vm24_vm1 = vcmask 257024   ;;  %s147_s0 = inlined_call_operand.vmem [shape: f32[20,32], index: 0, kind: input, shape index: {}]   ;;  %s148_s1 = inlined_call_operand.vmem [shape: f32[1,32], index: 1, kind: input, shape index: {}]   ;;  %s149_s2 = inlined_call_operand.vmem [shape: f32[1,32], index: 2, kind: input, shape index: {}]   ;;  %s150_s3 = inlined_call_operand.vmem [shape: f32[20,32], index: 3, kind: output, shape index: {}]  }
   0x1   :  { %v14_v0 = vld [vmem:[%s147_s0] sm:$0xff]  ;;  %v16_v1 = vld [vmem:[%s147_s0 + $0x10] sm:$0xf]  ;;  %v15_v2 = vld [vmem:[%s147_s0 + $0x8] sm:$0xff] }
   0x2   :  { %v18_v3 = vsel %vm17_vm0, %v14_v0, 0.0  ;;  %v25_v4 = vsel %vm24_vm1, %v16_v1, 0.0  ;;  %v21_v5 = vsel %vm17_vm0, %v15_v2, 0.0  ;;  %v86_v31 = vld [vmem:[%s148_s1] ss:$0 sm:$0xff] }
   0x3   :  { %19 = vadd.xlane.f32.xlu0 %v18_v3  ;;  %26 = vadd.xlane.f32.xlu1 %v25_v4  ;;  %v87_v33 = vld [vmem:[%s149_s2] ss:$0 sm:$0xff] }
   0x7   :  { %22 = vadd.xlane.f32.xlu0 %v21_v5 }
  0x90   :  { %v20_v6 = vpop.xlane.xlu0 %19  ;;  %v27_v7 = vpop.xlane.xlu1 %26 }
  0x91   :  { %v29_v8 = vmul.f32 0.03125, %v20_v6  ;;  %v31_v9 = vmul.f32 0.03125, %v27_v7 }
  0x93   :  { %v32_v10 = vsub.f32 %v14_v0, %v29_v8  ;;  %v34_v11 = vsub.f32 %v16_v1, %v31_v9 }
  0x94   :  { %v23_v12 = vpop.xlane.xlu0 %22 }
  0x95   :  { %v30_v13 = vmul.f32 0.03125, %v23_v12  ;;  %v35_v14 = vmul.f32 %v32_v10, %v32_v10  ;;  %v37_v15 = vmul.f32 %v34_v11, %v34_v11 }
  0x97   :  { %v33_v16 = vsub.f32 %v15_v2, %v30_v13  ;;  %v38_v17 = vsel %vm17_vm0, %v35_v14, 0.0  ;;  %v44_v18 = vsel %vm24_vm1, %v37_v15, 0.0 }
  0x98   :  { %39 = vadd.xlane.f32.xlu1 %v38_v17 }
  0x99   :  { %v36_v19 = vmul.f32 %v33_v16, %v33_v16 }
  0x9b   :  { %v41_v20 = vsel %vm17_vm0, %v36_v19, 0.0 }
  0x9c   :  { %45 = vadd.xlane.f32.xlu1 %v44_v18  ;;  %42 = vadd.xlane.f32.xlu0 %v41_v20 }
 0x125   :  { %v40_v21 = vpop.xlane.xlu1 %39 }
 0x126   :  { %v47_v22 = vmul.f32 0.03125, %v40_v21 }
 0x128   :  { %v50_v23 = vadd.f32 1e-06, %v47_v22 }
 0x129   :  { %v46_v24 = vpop.xlane.xlu1 %45  ;;  %v43_v25 = vpop.xlane.xlu0 %42 }
 0x12a   :  { %88 = vrsqrt.f32 %v50_v23  ;;  %v49_v26 = vmul.f32 0.03125, %v46_v24  ;;  %v48_v27 = vmul.f32 0.03125, %v43_v25 }
 0x12c   :  { %v52_v28 = vadd.f32 1e-06, %v49_v26  ;;  %v51_v29 = vadd.f32 1e-06, %v48_v27 }
 0x12e   :  { %90 = vrsqrt.f32 %v52_v28 }
 0x12f   :  { %92 = vrsqrt.f32 %v51_v29 }
 0x134   :  { %v89_v30 = vpop.eup %88 }
 0x135   :  { %v56_v32 = vmul.f32 %v89_v30, %v32_v10 }
 0x137   :  { %v66_v34 = vmul.f32 %v86_v31, %v56_v32 }
 0x138   :  { %v91_v35 = vpop.eup %90 }
 0x139   :  { %v93_v36 = vpop.eup %92  ;;  %v76_v37 = vadd.f32 %v87_v33, %v66_v34  ;;  %v58_v38 = vmul.f32 %v91_v35, %v34_v11 }
 0x13a   :  { %v57_v39 = vmul.f32 %v93_v36, %v33_v16 }
 0x13b   :  { %79 = vst.msk [vmem:[%s150_s3] sm:$0xff] %vm17_vm0, %v76_v37  ;;  %v68_v40 = vmul.f32 %v86_v31, %v58_v38 }
 0x13c   :  { %v67_v41 = vmul.f32 %v86_v31, %v57_v39 }
 0x13d   :  { %v78_v42 = vadd.f32 %v87_v33, %v68_v40 }
 0x13e   :  { %v77_v43 = vadd.f32 %v87_v33, %v67_v41 }
 0x13f   :  { %81 = vst.msk [vmem:[%s150_s3 + $0x10] sm:$0xf] %vm24_vm1, %v78_v42 }
 0x140   :  { %80 = vst.msk [vmem:[%s150_s3 + $0x8] sm:$0xff] %vm17_vm0, %v77_v43 }

// kernel: timesformer_forward.34
= control target key start
LH: loop header
LB: loop body
LE: loop exit
PB: predicated region body
PF: predicated region fallthrough
CT: control target
= control target key end

     0   :  { %vm33_vm0 = vcmask 261120   ;;  %vm91_vm1 = vcmask 781312   ;;  %vm88_vm2 = vcmask 785408   ;;  %s165_s1 = inlined_call_operand.vmem [shape: f32[32,96], index: 1, kind: input, shape index: {}]   ;;  %s166_s0 = inlined_call_operand.vmem [shape: f32[20,32], index: 0, kind: input, shape index: {}]   ;;  %s167_s2 = inlined_call_operand.vmem [shape: f32[1,96], index: 2, kind: input, shape index: {}]   ;;  %s168_s3 = inlined_call_operand.vmem [shape: f32[20,96], index: 3, kind: output, shape index: {}]  }
   0x1   :  { %v20_v0 = vld [vmem:[%s165_s1] sm:$0xff]  ;;  %v21_v1 = vld [vmem:[%s165_s1 + $0x8] sm:$0xff]  ;;  %v22_v2 = vld [vmem:[%s165_s1 + $0x10] sm:$0xff] }
   0x2   :  { %v24_v3 = vpack.c.bf16 %v21_v1, %v20_v0  ;;  %v23_v4 = vld [vmem:[%s165_s1 + $0x18] sm:$0xff]  ;;  %v15_v5 = vld [vmem:[%s166_s0] sm:$0xff]  ;;  %v16_v6 = vld [vmem:[%s166_s0 + $0x8] sm:$0xff] }
   0x3   :  { %v25_v7 = vpack.c.bf16 %v23_v4, %v22_v2  ;;  %v18_v8 = vpack.c.bf16 %v16_v6, %v15_v5  ;;  %v17_v9 = vld [vmem:[%s166_s0 + $0x10] sm:$0xf]  ;;  %v97_v11 = vld [vmem:[%s167_s2] ss:$0 sm:$0xff] }
   0x4   :  { %104 = vmatprep.subr.bf16.mxu0 %v24_v3  ;;  %v19_v10 = vpack.c.bf16 %v17_v9, %v17_v9 }
   0x5   :  { %105 = vmatpush3.bf16.msra.mxu0 %v24_v3  ;;  %108 = vmatprep.mubr.msk.bf16.mxu0 %vm33_vm0, %v18_v8 }
   0x6   :  { %106 = vmatprep.subr.bf16.mxu0 %v25_v7 }
   0x9   :  { %107 = vmatpush3.bf16.msra.mxu0 %v25_v7 }
   0xc   :  { %109 = vmatmul.mubr.msk.bf16.vlgmr.msra.gmra.mrb[0].mxu0 %vm33_vm0, %v19_v10 }
  0xdf   :  { %v110_v12 = vpop.f32.mrb[0].mxu0 }
  0xe0   :  { %v83_v13 = vadd.f32 %v110_v12, %v97_v11  ;;  %v74_v14 = vpop.f32.mrb[1].mxu0 }
  0xe1   :  { %v75_v15 = vadd.f32 %v97_v11, %v74_v14  ;;  %v111_v16 = vpop.f32.mrb[2].mxu0 }
  0xe2   :  { %92 = vst.msk [vmem:[%s168_s3 + $0x10] sm:$0xf] %vm91_vm1, %v83_v13  ;;  %v77_v17 = vpop.f32.mrb[3].mxu0 }
  0xe3   :  { %89 = vst.msk [vmem:[%s168_s3] sm:$0xff] %vm88_vm2, %v75_v15  ;;  %v78_v18 = vadd.f32 %v97_v11, %v77_v17 }
  0xe5   :  { %90 = vst.msk [vmem:[%s168_s3 + $0x8] sm:$0xff] %vm88_vm2, %v78_v18 }

// kernel: timesformer_forward.30
= control target key start
LH: loop header
LB: loop body
LE: loop exit
PB: predicated region body
PF: predicated region fallthrough
CT: control target
= control target key end

     0   :  { %v4556_v3 = vmov 0.0   ;;  %vm4557_vm0 = vmmov 0   ;;  %s4558_s14 = smov 96   ;;  %s4559_s23 = smov 64   ;;  %vm44_vm1 = vcmask 64512   ;;  %vm537_vm2 = vcmask 1040384   ;;  %s5594_s0 = inlined_call_operand.vmem [shape: f32[8,2,96], index: 0, kind: input, shape index: {}]   ;;  %s5595_s1 = inlined_call_operand.vmem [shape: f32[8,2,32], index: 1, kind: output, shape index: {}]  }
   0x1   :  { %v9_v0 = vld [vmem:[%s5594_s0] sm:$0x3]  ;;  %v10_v1 = vld [vmem:[%s5594_s0 + $0x2] sm:$0x3]  ;;  %v11_v2 = vld [vmem:[%s5594_s0 + $0x4] sm:$0x3]  ;;  %4028 = vmatprep.subr.bf16.mxu0 %v4556_v3  ;;  %4034 = vmatprep.subr.bf16.mxu1 %v4556_v3 }
   0x2   :  { %v33_v4 = vpack.c.bf16 %v9_v0, %v9_v0  ;;  %v12_v5 = vld [vmem:[%s5594_s0 + $0x6] sm:$0x3]  ;;  %4030 = vmatprep.mubr.msk.bf16.mxu0 %vm4557_vm0, %v4556_v3  ;;  %4036 = vmatprep.mubr.msk.bf16.mxu1 %vm4557_vm0, %v4556_v3  ;;  %v35_v6 = vpack.c.bf16 %v11_v2, %v11_v2  ;;  %v34_v7 = vpack.c.bf16 %v10_v1, %v10_v1  ;;  %v13_v9 = vld [vmem:[%s5594_s0 + $0x8] sm:$0x3]  ;;  %v14_v10 = vld [vmem:[%s5594_s0 + $0xa] sm:$0x3] }
   0x3   :  { %v36_v8 = vpack.c.bf16 %v12_v5, %v12_v5  ;;  %v4606_v11 = vpack.c.bf16 %v13_v9, %v13_v9  ;;  %v4608_v12 = vpack.c.bf16 %v14_v10, %v14_v10  ;;  %v15_v13 = vld [vmem:[%s5594_s0 + $0xc] sm:$0x3]  ;;  %v4616_v14 = vld [vmem:[%s5594_s0 + $0xe] sm:$0x3]  ;;  %v17_v18 = vmul.f32 0.35355338, %v9_v0 }
   0x4   :  { %42 = vrot.lane.b32.xlu0 %v33_v4, %s4558_s14  ;;  %141 = vrot.lane.b32.xlu1 %v35_v6, %s4558_s14  ;;  %v4619_v15 = vpack.c.bf16 %v15_v13, %v15_v13  ;;  %v4624_v16 = vpack.c.bf16 %v4616_v14, %v4616_v14  ;;  %v18_v23 = vmul.f32 0.35355338, %v10_v1  ;;  %v19_v28 = vmul.f32 0.35355338, %v11_v2  ;;  %s4560_s26 = smov 88   ;;  %s4561_s2 = smov 120  }
   0x5   :  { %v25_v22 = vpack.c.bf16 %v17_v18, %v17_v18  ;;  %v20_v32 = vmul.f32 0.35355338, %v12_v5  ;;  %v21_v36 = vmul.f32 0.35355338, %v13_v9  ;;  %v22_v40 = vmul.f32 0.35355338, %v14_v10 }
   0x6   :  { %v26_v27 = vpack.c.bf16 %v18_v23, %v18_v23  ;;  %v27_v31 = vpack.c.bf16 %v19_v28, %v19_v28  ;;  %v23_v44 = vmul.f32 0.35355338, %v15_v13  ;;  %v24_v47 = vmul.f32 0.35355338, %v4616_v14  ;;  %s4562_s13 = smov 56   ;;  %s4563_s16 = smov 80  }
   0x7   :  { %v28_v35 = vpack.c.bf16 %v20_v32, %v20_v32  ;;  %v29_v39 = vpack.c.bf16 %v21_v36, %v21_v36  ;;  %v30_v43 = vpack.c.bf16 %v22_v40, %v22_v40  ;;  %vm434_vm3 = vcmask 9216   ;;  %s4564_s21 = smov 112   ;;  %s4565_s3 = smov 48  }
   0x8   :  { %92 = vrot.lane.b32.xlu0 %v34_v7, %s4558_s14  ;;  %190 = vrot.lane.b32.xlu1 %v36_v8, %s4558_s14  ;;  %v31_v46 = vpack.c.bf16 %v23_v44, %v23_v44  ;;  %v32_v48 = vpack.c.bf16 %v24_v47, %v24_v47  ;;  %vm533_vm4 = vcmask 15360   ;;  %s4566_s6 = smov 72   ;;  %s4567_s11 = smov 104   ;;  %vm3805_vm5 = vcmask 130048  }
   0x9   :  { %s4569_s22 = smov 8   ;;  %s4571_s24 = smov 24   ;;  %vm3814_vm6 = vcmask 195584   ;;  %vm3823_vm7 = vcmask 254976  }
   0xc   :  { %239 = vrot.lane.b32.xlu0 %v4606_v11, %s4558_s14  ;;  %288 = vrot.lane.b32.xlu1 %v4608_v12, %s4558_s14 }
  0x10   :  { %337 = vrot.lane.b32.xlu0 %v4619_v15, %s4558_s14  ;;  %386 = vrot.lane.b32.xlu1 %v4624_v16, %s4558_s14 }
  0x14   :  { %531 = vrot.lane.b32.xlu1 %v33_v4, %s4559_s23  ;;  %581 = vrot.lane.b32.xlu0 %v34_v7, %s4559_s23 }
  0x18   :  { %629 = vrot.lane.b32.xlu1 %v35_v6, %s4559_s23 }
  0x1c   :  { %677 = vrot.lane.b32.xlu1 %v36_v8, %s4559_s23 }
  0x76   :  { %v43_v17 = vpop.permute.xlu0 %42  ;;  %v142_v20 = vpop.permute.xlu1 %141 }
  0x77   :  { %v49_v19 = vsel %vm44_vm1, %v43_v17, 0  ;;  %v147_v25 = vsel %vm44_vm1, %v142_v20, 0 }
  0x78   :  { %4029 = vmatpush3.bf16.xpose.msra.mxu0 %v49_v19 }
  0x79   :  { %4040 = vmatprep.subr.bf16.mxu0 %v4556_v3 }
  0x7a   :  { %v93_v21 = vpop.permute.xlu0 %92  ;;  %v191_v26 = vpop.permute.xlu1 %190 }
  0x7b   :  { %v98_v24 = vsel %vm44_vm1, %v93_v21, 0  ;;  %v196_v29 = vsel %vm44_vm1, %v191_v26, 0 }
  0x7c   :  { %4035 = vmatpush3.bf16.xpose.msra.mxu1 %v98_v24 }
  0x7d   :  { %4046 = vmatprep.subr.bf16.mxu1 %v4556_v3 }
  0x7e   :  { %v240_v30 = vpop.permute.xlu0 %239  ;;  %v289_v34 = vpop.permute.xlu1 %288 }
  0x7f   :  { %4031 = vmatmul.mubr.msk.bf16.vlgmr.msra.gmra.mrb[0].mxu0 %vm44_vm1, %v25_v22  ;;  %v245_v33 = vsel %vm44_vm1, %v240_v30, 0  ;;  %v294_v37 = vsel %vm44_vm1, %v289_v34, 0 }
  0x80   :  { %4041 = vmatpush3.bf16.xpose.msra.mxu0 %v147_v25  ;;  %4042 = vmatprep.mubr.msk.bf16.mxu0 %vm4557_vm0, %v4556_v3 }
  0x81   :  { %4052 = vmatprep.subr.bf16.mxu0 %v4556_v3 }
  0x82   :  { %v338_v38 = vpop.permute.xlu0 %337  ;;  %v387_v42 = vpop.permute.xlu1 %386 }
  0x83   :  { %4037 = vmatmul.mubr.msk.bf16.vlgmr.msra.gmra.mrb[0].mxu1 %vm44_vm1, %v26_v27  ;;  %v343_v41 = vsel %vm44_vm1, %v338_v38, 0  ;;  %v392_v45 = vsel %vm44_vm1, %v387_v42, 0 }
  0x84   :  { %4047 = vmatpush3.bf16.xpose.msra.mxu1 %v196_v29  ;;  %4048 = vmatprep.mubr.msk.bf16.mxu1 %vm4557_vm0, %v4556_v3 }
  0x85   :  { %4058 = vmatprep.subr.bf16.mxu1 %v4556_v3 }
  0x86   :  { %v532_v49 = vpop.permute.xlu1 %531  ;;  %v582_v50 = vpop.permute.xlu0 %581 }
  0x87   :  { %4043 = vmatmul.mubr.msk.bf16.vlgmr.msra.gmra.mrb[4].mxu0 %vm44_vm1, %v27_v31  ;;  %v539_v51 = vsel %vm537_vm2, %v532_v49, 0  ;;  %v587_v52 = vsel %vm537_vm2, %v582_v50, 0 }
  0x88   :  { %4053 = vmatpush3.bf16.xpose.msra.mxu0 %v245_v33  ;;  %4054 = vmatprep.mubr.msk.bf16.mxu0 %vm4557_vm0, %v4556_v3 }
  0x89   :  { %4064 = vmatprep.subr.bf16.mxu0 %v4556_v3 }
  0x8a   :  { %v4692_v34 = vpop.permute.xlu1 %629 }
  0x8b   :  { %4049 = vmatmul.mubr.msk.bf16.vlgmr.msra.gmra.mrb[4].mxu1 %vm44_vm1, %v28_v35 }
  0x8c   :  { %4059 = vmatpush3.bf16.xpose.msra.mxu1 %v294_v37  ;;  %4060 = vmatprep.mubr.msk.bf16.mxu1 %vm4557_vm0, %v4556_v3 }
  0x8d   :  { %4070 = vmatprep.subr.bf16.mxu1 %v4556_v3 }
  0x8e   :  { %v4694_v35 = vpop.permute.xlu1 %677 }
  0x8f   :  { %4055 = vmatmul.mubr.msk.bf16.vlgmr.msra.gmra.mrb[8].mxu0 %vm44_vm1, %v29_v39 }
  0x90   :  { %4065 = vmatpush3.bf16.xpose.msra.mxu0 %v343_v41  ;;  %4066 = vmatprep.mubr.msk.bf16.mxu0 %vm4557_vm0, %v4556_v3 }
  0x91   :  { %4076 = vmatprep.subr.bf16.mxu0 %v4556_v3 }
  0x93   :  { %4061 = vmatmul.mubr.msk.bf16.vlgmr.msra.gmra.mrb[8].mxu1 %vm44_vm1, %v30_v43 }
  0x94   :  { %4071 = vmatpush3.bf16.xpose.msra.mxu1 %v392_v45  ;;  %4072 = vmatprep.mubr.msk.bf16.mxu1 %vm4557_vm0, %v4556_v3 }
  0x95   :  { %4082 = vmatprep.subr.bf16.mxu1 %v4556_v3 }
  0x97   :  { %4067 = vmatmul.mubr.msk.bf16.vlgmr.msra.gmra.mrb[12].mxu0 %vm44_vm1, %v31_v46 }
  0x98   :  { %4078 = vmatprep.mubr.msk.bf16.mxu0 %vm4557_vm0, %v4556_v3  ;;  %4077 = vmatpush3.bf16.msra.mxu0 %v539_v51 }
  0x99   :  { %4088 = vmatprep.subr.bf16.mxu0 %v4556_v3 }
  0x9b   :  { %4073 = vmatmul.mubr.msk.bf16.vlgmr.msra.gmra.mrb[12].mxu1 %vm44_vm1, %v32_v48 }
  0x9c   :  { %4084 = vmatprep.mubr.msk.bf16.mxu1 %vm4557_vm0, %v4556_v3  ;;  %4083 = vmatpush3.bf16.msra.mxu1 %v587_v52 }
  0x9d   :  { %4094 = vmatprep.subr.bf16.mxu1 %v4556_v3 }
 0x152   :  { %v85_v53 = vpop.f32.mrb[0].mxu0 }
 0x153   :  { %v4032_v54 = vpop.f32.mrb[1].mxu0  ;;  %v435_v55 = vsel %vm434_vm3, %v85_v53, -inf }
 0x154   :  { %436 = vmax.xlane.f32.xlu0 %v435_v55  ;;  %v88_v56 = vpop.f32.mrb[2].mxu0 }
 0x155   :  { %v4033_v57 = vpop.f32.mrb[3].mxu0 }
 0x156   :  { %v134_v58 = vpop.f32.mrb[0].mxu1 }
 0x157   :  { %v4038_v59 = vpop.f32.mrb[1].mxu1  ;;  %v438_v60 = vsel %vm434_vm3, %v134_v58, -inf }
 0x158   :  { %439 = vmax.xlane.f32.xlu1 %v438_v60  ;;  %v137_v61 = vpop.f32.mrb[2].mxu1 }
 0x159   :  { %v4039_v62 = vpop.f32.mrb[3].mxu1 }
 0x15a   :  { %v183_v63 = vpop.f32.mrb[4].mxu0 }
 0x15b   :  { %v4044_v0 = vpop.f32.mrb[5].mxu0  ;;  %v441_v1 = vsel %vm434_vm3, %v183_v63, -inf }
 0x15c   :  { %442 = vmax.xlane.f32.xlu0 %v441_v1  ;;  %v186_v2 = vpop.f32.mrb[6].mxu0 }
 0x15d   :  { %v4045_v4 = vpop.f32.mrb[7].mxu0 }
 0x15e   :  { %v232_v5 = vpop.f32.mrb[4].mxu1 }
 0x15f   :  { %v4050_v6 = vpop.f32.mrb[5].mxu1  ;;  %v444_v7 = vsel %vm434_vm3, %v232_v5, -inf }
 0x160   :  { %v235_v8 = vpop.f32.mrb[6].mxu1  ;;  %445 = vmax.xlane.f32.xlu0 %v444_v7 }
 0x161   :  { %v4051_v9 = vpop.f32.mrb[7].mxu1 }
 0x162   :  { %v281_v10 = vpop.f32.mrb[8].mxu0 }
 0x163   :  { %v4056_v13 = vpop.f32.mrb[9].mxu0  ;;  %v447_v14 = vsel %vm434_vm3, %v281_v10, -inf }
 0x164   :  { %448 = vmax.xlane.f32.xlu1 %v447_v14  ;;  %v284_v17 = vpop.f32.mrb[10].mxu0 }
 0x165   :  { %v4057_v18 = vpop.f32.mrb[11].mxu0  ;;  %v920_v17 = vld [vmem:[%s5594_s0 + $0x6] sm:$0x3] }
 0x166   :  { %v330_v19 = vpop.f32.mrb[8].mxu1  ;;  %v917_v18 = vld [vmem:[%s5594_s0] sm:$0x3] }
 0x167   :  { %v4062_v20 = vpop.f32.mrb[9].mxu1  ;;  %v450_v21 = vsel %vm434_vm3, %v330_v19, -inf }
 0x168   :  { %v333_v22 = vpop.f32.mrb[10].mxu1  ;;  %451 = vmax.xlane.f32.xlu0 %v450_v21  ;;  %v928_v20 = vmul.f32 0.35355338, %v920_v17  ;;  %v4749_v21 = vpack.c.bf16 %v917_v18, %v917_v18 }
 0x169   :  { %v4063_v23 = vpop.f32.mrb[11].mxu1  ;;  %v925_v22 = vmul.f32 0.35355338, %v917_v18 }
 0x16a   :  { %v4683_v24 = vpop.f32.mrb[12].mxu0  ;;  %v936_v23 = vpack.c.bf16 %v928_v20, %v928_v20 }
 0x16b   :  { %v453_v25 = vsel %vm434_vm3, %v4683_v24, -inf  ;;  %v4068_v26 = vpop.f32.mrb[13].mxu0 }
 0x16c   :  { %454 = vmax.xlane.f32.xlu1 %v453_v25  ;;  %v382_v27 = vpop.f32.mrb[14].mxu0  ;;  %v922_v25 = vld [vmem:[%s5594_s0 + $0xa] sm:$0x3]  ;;  %v919_v26 = vld [vmem:[%s5594_s0 + $0x4] sm:$0x3] }
 0x16d   :  { %v4069_v28 = vpop.f32.mrb[15].mxu0  ;;  %v4762_v27 = vpack.c.bf16 %v922_v25, %v922_v25 }
 0x16e   :  { %v428_v29 = vpop.f32.mrb[12].mxu1  ;;  %v930_v28 = vmul.f32 0.35355338, %v922_v25 }
 0x16f   :  { %v456_v30 = vsel %vm434_vm3, %v428_v29, -inf  ;;  %v4074_v31 = vpop.f32.mrb[13].mxu1 }
 0x170   :  { %457 = vmax.xlane.f32.xlu0 %v456_v30  ;;  %v431_v32 = vpop.f32.mrb[14].mxu1  ;;  %v927_v30 = vmul.f32 0.35355338, %v919_v26  ;;  %v938_v31 = vpack.c.bf16 %v930_v28, %v930_v28 }
 0x171   :  { %v4075_v33 = vpop.f32.mrb[15].mxu1 }
 0x172   :  { %v935_v32 = vpack.c.bf16 %v927_v30, %v927_v30  ;;  %v924_v33 = vld [vmem:[%s5594_s0 + $0xe] sm:$0x3] }
 0x17d   :  { %773 = vrot.lane.b32.xlu1 %v4608_v12, %s4559_s23 }
 0x186   :  { %725 = vrot.lane.b32.xlu0 %v4606_v11, %s4559_s23 }
 0x1e1   :  { %v437_v36 = vpop.xlane.xlu0 %436 }
 0x1e2   :  { %v459_v37 = vsub.f32 %v85_v53, %v437_v36  ;;  %v921_v36 = vld [vmem:[%s5594_s0 + $0x8] sm:$0x3] }
 0x1e4   :  { %v467_v38 = vmul.f32 1.442695, %v459_v37  ;;  %v4778_v37 = vpack.c.bf16 %v924_v33, %v924_v33 }
 0x1e5   :  { %v440_v39 = vpop.xlane.xlu1 %439 }
 0x1e6   :  { %4428 = vpow2.f32 %v467_v38  ;;  %v460_v40 = vsub.f32 %v134_v58, %v440_v39  ;;  %v932_v38 = vmul.f32 0.35355338, %v924_v33  ;;  %v4781_v39 = vpack.c.bf16 %v921_v36, %v921_v36 }
 0x1e8   :  { %v469_v41 = vmul.f32 1.442695, %v460_v40  ;;  %v929_v40 = vmul.f32 0.35355338, %v921_v36 }
 0x1e9   :  { %v443_v42 = vpop.xlane.xlu0 %442 }
 0x1ea   :  { %4430 = vpow2.f32 %v469_v41  ;;  %v461_v43 = vsub.f32 %v183_v63, %v443_v42  ;;  %v940_v41 = vpack.c.bf16 %v932_v38, %v932_v38  ;;  %v937_v42 = vpack.c.bf16 %v929_v40, %v929_v40 }
 0x1ec   :  { %v471_v44 = vmul.f32 1.442695, %v461_v43  ;;  %v923_v43 = vld [vmem:[%s5594_s0 + $0xc] sm:$0x3] }
 0x1ed   :  { %v446_v45 = vpop.xlane.xlu0 %445 }
 0x1ee   :  { %4432 = vpow2.f32 %v471_v44  ;;  %v462_v12 = vsub.f32 %v232_v5, %v446_v45  ;;  %v4792_v44 = vpack.c.bf16 %v923_v43, %v923_v43  ;;  %v931_v45 = vmul.f32 0.35355338, %v923_v43 }
 0x1f0   :  { %v4696_v46 = vpop.eup %4428  ;;  %v473_v11 = vmul.f32 1.442695, %v462_v12  ;;  %v939_v12 = vpack.c.bf16 %v931_v45, %v931_v45 }
 0x1f1   :  { %v449_v47 = vpop.xlane.xlu1 %448  ;;  %v483_v48 = vsel %vm434_vm3, %v4696_v46, 0.0 }
 0x1f2   :  { %4434 = vpow2.f32 %v473_v11  ;;  %v463_v49 = vsub.f32 %v281_v10, %v449_v47  ;;  %484 = vadd.xlane.f32.xlu1 %v483_v48 }
 0x1f4   :  { %v4700_v50 = vpop.eup %4430  ;;  %v475_v51 = vmul.f32 1.442695, %v463_v49 }
 0x1f5   :  { %v452_v52 = vpop.xlane.xlu0 %451  ;;  %v486_v53 = vsel %vm434_vm3, %v4700_v50, 0.0 }
 0x1f6   :  { %4436 = vpow2.f32 %v475_v51  ;;  %v464_v54 = vsub.f32 %v330_v19, %v452_v52  ;;  %487 = vadd.xlane.f32.xlu0 %v486_v53  ;;  %v4747_v19 = vpack.c.bf16 %v920_v17, %v920_v17 }
 0x1f8   :  { %v4704_v55 = vpop.eup %4432  ;;  %v477_v56 = vmul.f32 1.442695, %v464_v54 }
 0x1f9   :  { %v489_v57 = vsel %vm434_vm3, %v4704_v55, 0.0  ;;  %v455_v0 = vpop.xlane.xlu1 %454 }
 0x1fa   :  { %4438 = vpow2.f32 %v477_v56  ;;  %490 = vadd.xlane.f32.xlu1 %v489_v57  ;;  %v465_v1 = vsub.f32 %v4683_v24, %v455_v0  ;;  %v933_v24 = vpack.c.bf16 %v925_v22, %v925_v22 }
 0x1fc   :  { %v4708_v58 = vpop.eup %4434  ;;  %v479_v4 = vmul.f32 1.442695, %v465_v1  ;;  %v683_v1 = vsel %vm537_vm2, %v4694_v35, 0 }
 0x1fd   :  { %v492_v59 = vsel %vm434_vm3, %v4708_v58, 0.0  ;;  %v458_v2 = vpop.xlane.xlu0 %457  ;;  %v774_v11 = vpop.permute.xlu1 %773 }
 0x1fe   :  { %493 = vadd.xlane.f32.xlu0 %v492_v59  ;;  %v466_v5 = vsub.f32 %v428_v29, %v458_v2  ;;  %4440 = vpow2.f32 %v479_v4  ;;  %v4765_v29 = vpack.c.bf16 %v919_v26, %v919_v26  ;;  %v635_v59 = vsel %vm537_vm2, %v4692_v34, 0 }
 0x200   :  { %v4712_v60 = vpop.eup %4436  ;;  %v481_v6 = vmul.f32 1.442695, %v466_v5 }
 0x201   :  { %v495_v61 = vsel %vm434_vm3, %v4712_v60, 0.0  ;;  %v726_v47 = vpop.permute.xlu0 %725 }
 0x202   :  { %496 = vadd.xlane.f32.xlu1 %v495_v61  ;;  %4442 = vpow2.f32 %v481_v6  ;;  %v731_v5 = vsel %vm537_vm2, %v726_v47, 0 }
 0x204   :  { %v4716_v62 = vpop.eup %4438 }
 0x205   :  { %v498_v63 = vsel %vm434_vm3, %v4716_v62, 0.0 }
 0x206   :  { %499 = vadd.xlane.f32.xlu0 %v498_v63 }
 0x208   :  { %v4725_v7 = vpop.eup %4440 }
 0x209   :  { %v501_v8 = vsel %vm434_vm3, %v4725_v7, 0.0 }
 0x20c   :  { %v4729_v9 = vpop.eup %4442 }
 0x213   :  { %869 = vrot.lane.b32.xlu1 %v4624_v16, %s4559_s23  ;;  %v918_v16 = vld [vmem:[%s5594_s0 + $0x2] sm:$0x3] }
 0x214   :  { %v4736_v10 = vpack.c.bf16 %v918_v16, %v918_v16  ;;  %v926_v13 = vmul.f32 0.35355338, %v918_v16 }
 0x216   :  { %v934_v14 = vpack.c.bf16 %v926_v13, %v926_v13 }
 0x21c   :  { %821 = vrot.lane.b32.xlu0 %v4619_v15, %s4559_s23  ;;  %v504_v15 = vsel %vm434_vm3, %v4729_v9, 0.0  ;;  %s4570_s23 = smov 16  }
 0x237   :  { %502 = vadd.xlane.f32.xlu1 %v501_v8  ;;  %v779_v8 = vsel %vm537_vm2, %v774_v11, 0 }
 0x23b   :  { %505 = vadd.xlane.f32.xlu0 %v504_v15 }
 0x248   :  { %1005 = vrot.lane.b32.xlu1 %v4736_v10, %s4560_s26 }
 0x24c   :  { %1002 = vrot.lane.b32.xlu1 %v934_v14, %s4561_s2 }
 0x250   :  { %1109 = vrot.lane.b32.xlu1 %v4747_v19, %s4560_s26 }
 0x251   :  { %953 = vrot.lane.b32.xlu0 %v4749_v21, %s4560_s26 }
 0x254   :  { %1106 = vrot.lane.b32.xlu1 %v936_v23, %s4561_s2 }
 0x255   :  { %950 = vrot.lane.b32.xlu0 %v933_v24, %s4561_s2 }
 0x258   :  { %1213 = vrot.lane.b32.xlu1 %v4762_v27, %s4560_s26 }
 0x259   :  { %1057 = vrot.lane.b32.xlu0 %v4765_v29, %s4560_s26 }
 0x25c   :  { %1210 = vrot.lane.b32.xlu1 %v938_v31, %s4561_s2 }
 0x25d   :  { %1054 = vrot.lane.b32.xlu0 %v935_v32, %s4561_s2 }
 0x260   :  { %1317 = vrot.lane.b32.xlu1 %v4778_v37, %s4560_s26 }
 0x261   :  { %1161 = vrot.lane.b32.xlu0 %v4781_v39, %s4560_s26 }
 0x264   :  { %1314 = vrot.lane.b32.xlu1 %v940_v41, %s4561_s2 }
 0x265   :  { %1158 = vrot.lane.b32.xlu0 %v937_v42, %s4561_s2 }
 0x268   :  { %1461 = vrot.lane.b32.xlu1 %v4749_v21, %s4562_s13 }
 0x269   :  { %1265 = vrot.lane.b32.xlu0 %v4792_v44, %s4560_s26 }
 0x26c   :  { %1557 = vrot.lane.b32.xlu1 %v4765_v29, %s4562_s13 }
 0x26d   :  { %1262 = vrot.lane.b32.xlu0 %v939_v12, %s4561_s2 }
 0x270   :  { %1605 = vrot.lane.b32.xlu1 %v4747_v19, %s4562_s13 }
 0x271   :  { %1509 = vrot.lane.b32.xlu0 %v4736_v10, %s4562_s13 }
 0x27f   :  { %v485_v48 = vpop.xlane.xlu1 %484 }
 0x280   :  { %4444 = vrcp.f32 %v485_v48 }
 0x283   :  { %v488_v49 = vpop.xlane.xlu0 %487 }
 0x284   :  { %4446 = vrcp.f32 %v488_v49 }
 0x287   :  { %v491_v51 = vpop.xlane.xlu1 %490 }
 0x288   :  { %4448 = vrcp.f32 %v491_v51 }
 0x28a   :  { %v4445_v52 = vpop.eup %4444 }
 0x28b   :  { %v494_v53 = vpop.xlane.xlu0 %493  ;;  %v515_v54 = vmul.f32 %v4445_v52, %v4696_v46 }
 0x28c   :  { %4450 = vrcp.f32 %v494_v53 }
 0x28d   :  { %v523_v56 = vpack.c.bf16 %v515_v54, %v515_v54 }
 0x28e   :  { %v4447_v57 = vpop.eup %4446 }
 0x28f   :  { %4079 = vmatmul.mubr.msk.bf16.vlgmr.msra.gmra.mrb[16].mxu0 %vm533_vm4, %v523_v56  ;;  %v497_v61 = vpop.xlane.xlu1 %496  ;;  %v516_v63 = vmul.f32 %v4447_v57, %v4700_v50 }
 0x290   :  { %4089 = vmatpush3.bf16.msra.mxu0 %v635_v59  ;;  %4452 = vrcp.f32 %v497_v61  ;;  %4090 = vmatprep.mubr.msk.bf16.mxu0 %vm4557_vm0, %v4556_v3 }
 0x291   :  { %v524_v0 = vpack.c.bf16 %v516_v63, %v516_v63  ;;  %4100 = vmatprep.subr.bf16.mxu0 %v4556_v3 }
 0x292   :  { %v4449_v46 = vpop.eup %4448 }
 0x293   :  { %4085 = vmatmul.mubr.msk.bf16.vlgmr.msra.gmra.mrb[16].mxu1 %vm533_vm4, %v524_v0  ;;  %v500_v34 = vpop.xlane.xlu0 %499  ;;  %v517_v2 = vmul.f32 %v4449_v46, %v4704_v55  ;;  %v870_v18 = vpop.permute.xlu1 %869 }
 0x294   :  { %4095 = vmatpush3.bf16.msra.mxu1 %v683_v1  ;;  %4454 = vrcp.f32 %v500_v34  ;;  %4096 = vmatprep.mubr.msk.bf16.mxu1 %vm4557_vm0, %v4556_v3  ;;  %v875_v20 = vsel %vm537_vm2, %v870_v18, 0 }
 0x295   :  { %v525_v50 = vpack.c.bf16 %v517_v2, %v517_v2  ;;  %4106 = vmatprep.subr.bf16.mxu1 %v4556_v3 }
 0x296   :  { %v4451_v4 = vpop.eup %4450 }
 0x297   :  { %4091 = vmatmul.mubr.msk.bf16.vlgmr.msra.gmra.mrb[20].mxu0 %vm533_vm4, %v525_v50  ;;  %v518_v35 = vmul.f32 %v4451_v4, %v4708_v58  ;;  %v822_v16 = vpop.permute.xlu0 %821 }
 0x298   :  { %4101 = vmatpush3.bf16.msra.mxu0 %v731_v5  ;;  %4102 = vmatprep.mubr.msk.bf16.mxu0 %vm4557_vm0, %v4556_v3  ;;  %v827_v14 = vsel %vm537_vm2, %v822_v16, 0 }
 0x299   :  { %v526_v55 = vpack.c.bf16 %v518_v35, %v518_v35  ;;  %4112 = vmatprep.subr.bf16.mxu0 %v4556_v3 }
 0x29a   :  { %v4453_v6 = vpop.eup %4452 }
 0x29b   :  { %4097 = vmatmul.mubr.msk.bf16.vlgmr.msra.gmra.mrb[20].mxu1 %vm533_vm4, %v526_v55  ;;  %v519_v15 = vmul.f32 %v4453_v6, %v4712_v60 }
 0x29c   :  { %4107 = vmatpush3.bf16.msra.mxu1 %v779_v8  ;;  %4108 = vmatprep.mubr.msk.bf16.mxu1 %vm4557_vm0, %v4556_v3 }
 0x29d   :  { %v527_v58 = vpack.c.bf16 %v519_v15, %v519_v15  ;;  %4118 = vmatprep.subr.bf16.mxu1 %v4556_v3 }
 0x29e   :  { %v4455_v13 = vpop.eup %4454 }
 0x29f   :  { %4103 = vmatmul.mubr.msk.bf16.vlgmr.msra.gmra.mrb[24].mxu0 %vm533_vm4, %v527_v58  ;;  %v520_v17 = vmul.f32 %v4455_v13, %v4716_v62 }
 0x2a0   :  { %4113 = vmatpush3.bf16.msra.mxu0 %v827_v14  ;;  %4114 = vmatprep.mubr.msk.bf16.mxu0 %vm4557_vm0, %v4556_v3 }
 0x2a1   :  { %v528_v60 = vpack.c.bf16 %v520_v17, %v520_v17  ;;  %4124 = vmatprep.subr.bf16.mxu0 %v4556_v3 }
 0x2a3   :  { %4109 = vmatmul.mubr.msk.bf16.vlgmr.msra.gmra.mrb[24].mxu1 %vm533_vm4, %v528_v60 }
 0x2a4   :  { %4119 = vmatpush3.bf16.msra.mxu1 %v875_v20  ;;  %4120 = vmatprep.mubr.msk.bf16.mxu1 %vm4557_vm0, %v4556_v3 }
 0x2a5   :  { %4130 = vmatprep.subr.bf16.mxu1 %v4556_v3 }
 0x2c4   :  { %v503_v22 = vpop.xlane.xlu1 %502 }
 0x2c5   :  { %4456 = vrcp.f32 %v503_v22 }
 0x2c8   :  { %v506_v62 = vpop.xlane.xlu0 %505  ;;  %v1006_v23 = vpop.permute.xlu1 %1005 }
 0x2c9   :  { %4458 = vrcp.f32 %v506_v62  ;;  %v1011_v41 = vsel %vm44_vm1, %v1006_v23, 0 }
 0x2cc   :  { %v954_v24 = vpop.permute.xlu0 %953  ;;  %v1003_v25 = vpop.permute.xlu1 %1002 }
 0x2cd   :  { %v959_v31 = vsel %vm44_vm1, %v954_v24, 0 }
 0x2cf   :  { %v4457_v26 = vpop.eup %4456 }
 0x2d0   :  { %v521_v28 = vmul.f32 %v4457_v26, %v4725_v7  ;;  %v951_v30 = vpop.permute.xlu0 %950  ;;  %v1110_v36 = vpop.permute.xlu1 %1109 }
 0x2d1   :  { %v1115_v12 = vsel %vm44_vm1, %v1110_v36, 0 }
 0x2d2   :  { %v529_v32 = vpack.c.bf16 %v521_v28, %v521_v28 }
 0x2d3   :  { %v4459_v33 = vpop.eup %4458 }
 0x2d4   :  { %4115 = vmatmul.mubr.msk.bf16.vlgmr.msra.gmra.mrb[28].mxu0 %vm533_vm4, %v529_v32  ;;  %v522_v38 = vmul.f32 %v4459_v33, %v4729_v9  ;;  %v1058_v40 = vpop.permute.xlu0 %1057  ;;  %v1107_v43 = vpop.permute.xlu1 %1106 }
 0x2d5   :  { %4125 = vmatpush3.bf16.xpose.msra.mxu0 %v959_v31  ;;  %4126 = vmatprep.mubr.msk.bf16.mxu0 %vm4557_vm0, %v4556_v3  ;;  %v1063_v9 = vsel %vm44_vm1, %v1058_v40, 0 }
 0x2d6   :  { %v530_v42 = vpack.c.bf16 %v522_v38, %v522_v38  ;;  %4136 = vmatprep.subr.bf16.mxu0 %v4556_v3 }
 0x2d8   :  { %4121 = vmatmul.mubr.msk.bf16.vlgmr.msra.gmra.mrb[28].mxu1 %vm533_vm4, %v530_v42  ;;  %v1055_v7 = vpop.permute.xlu0 %1054  ;;  %v1214_v11 = vpop.permute.xlu1 %1213 }
 0x2d9   :  { %4131 = vmatpush3.bf16.xpose.msra.mxu1 %v1011_v41  ;;  %4132 = vmatprep.mubr.msk.bf16.mxu1 %vm4557_vm0, %v4556_v3  ;;  %v1219_v51 = vsel %vm44_vm1, %v1214_v11, 0 }
 0x2da   :  { %4142 = vmatprep.subr.bf16.mxu1 %v4556_v3 }
 0x2dc   :  { %4127 = vmatmul.mubr.msk.bf16.vlgmr.msra.gmra.mrb[32].mxu0 %vm44_vm1, %v951_v30  ;;  %v1162_v45 = vpop.permute.xlu0 %1161  ;;  %v1211_v49 = vpop.permute.xlu1 %1210 }
 0x2dd   :  { %4137 = vmatpush3.bf16.xpose.msra.mxu0 %v1063_v9  ;;  %4138 = vmatprep.mubr.msk.bf16.mxu0 %vm4557_vm0, %v4556_v3  ;;  %v1167_v48 = vsel %vm44_vm1, %v1162_v45, 0 }
 0x2de   :  { %4148 = vmatprep.subr.bf16.mxu0 %v4556_v3 }
 0x2e0   :  { %4133 = vmatmul.mubr.msk.bf16.vlgmr.msra.gmra.mrb[32].mxu1 %vm44_vm1, %v1003_v25  ;;  %v1159_v47 = vpop.permute.xlu0 %1158  ;;  %v1318_v54 = vpop.permute.xlu1 %1317 }
 0x2e1   :  { %4143 = vmatpush3.bf16.xpose.msra.mxu1 %v1115_v12  ;;  %4144 = vmatprep.mubr.msk.bf16.mxu1 %vm4557_vm0, %v4556_v3  ;;  %v1323_v56 = vsel %vm44_vm1, %v1318_v54, 0 }
 0x2e2   :  { %4154 = vmatprep.subr.bf16.mxu1 %v4556_v3 }
 0x2e4   :  { %4139 = vmatmul.mubr.msk.bf16.vlgmr.msra.gmra.mrb[36].mxu0 %vm44_vm1, %v1055_v7  ;;  %v1266_v52 = vpop.permute.xlu0 %1265  ;;  %v1315_v59 = vpop.permute.xlu1 %1314 }
 0x2e5   :  { %4149 = vmatpush3.bf16.xpose.msra.mxu0 %v1167_v48  ;;  %4150 = vmatprep.mubr.msk.bf16.mxu0 %vm4557_vm0, %v4556_v3  ;;  %v1271_v53 = vsel %vm44_vm1, %v1266_v52, 0 }
 0x2e6   :  { %4160 = vmatprep.subr.bf16.mxu0 %v4556_v3 }
 0x2e8   :  { %4145 = vmatmul.mubr.msk.bf16.vlgmr.msra.gmra.mrb[36].mxu1 %vm44_vm1, %v1107_v43  ;;  %v1263_v57 = vpop.permute.xlu0 %1262  ;;  %v1462_v5 = vpop.permute.xlu1 %1461 }
 0x2e9   :  { %4155 = vmatpush3.bf16.xpose.msra.mxu1 %v1219_v51  ;;  %4156 = vmatprep.mubr.msk.bf16.mxu1 %vm4557_vm0, %v4556_v3  ;;  %v1467_v29 = vsel %vm537_vm2, %v1462_v5, 0 }
 0x2ea   :  { %4166 = vmatprep.subr.bf16.mxu1 %v4556_v3 }
 0x2ec   :  { %4151 = vmatmul.mubr.msk.bf16.vlgmr.msra.gmra.mrb[40].mxu0 %vm44_vm1, %v1159_v47  ;;  %v1510_v55 = vpop.permute.xlu0 %1509 }
 0x2ed   :  { %4161 = vmatpush3.bf16.xpose.msra.mxu0 %v1271_v53  ;;  %4162 = vmatprep.mubr.msk.bf16.mxu0 %vm4557_vm0, %v4556_v3  ;;  %v1515_v6 = vsel %vm537_vm2, %v1510_v55, 0 }
 0x2ee   :  { %4172 = vmatprep.subr.bf16.mxu0 %v4556_v3 }
 0x2f0   :  { %4157 = vmatmul.mubr.msk.bf16.vlgmr.msra.gmra.mrb[40].mxu1 %vm44_vm1, %v1211_v49 }
 0x2f1   :  { %4167 = vmatpush3.bf16.xpose.msra.mxu1 %v1323_v56  ;;  %4168 = vmatprep.mubr.msk.bf16.mxu1 %vm4557_vm0, %v4556_v3 }
 0x2f2   :  { %4178 = vmatprep.subr.bf16.mxu1 %v4556_v3 }
 0x2f4   :  { %4163 = vmatmul.mubr.msk.bf16.vlgmr.msra.gmra.mrb[44].mxu0 %vm44_vm1, %v1263_v57 }
 0x2f5   :  { %4174 = vmatprep.mubr.msk.bf16.mxu0 %vm4557_vm0, %v4556_v3  ;;  %4173 = vmatpush3.bf16.msra.mxu0 %v1467_v29 }
 0x2f6   :  { %4184 = vmatprep.subr.bf16.mxu0 %v4556_v3 }
 0x2f8   :  { %4169 = vmatmul.mubr.msk.bf16.vlgmr.msra.gmra.mrb[44].mxu1 %vm44_vm1, %v1315_v59 }
 0x2f9   :  { %4180 = vmatprep.mubr.msk.bf16.mxu1 %vm4557_vm0, %v4556_v3  ;;  %4179 = vmatpush3.bf16.msra.mxu1 %v1515_v6 }
 0x2fa   :  { %4190 = vmatprep.subr.bf16.mxu1 %v4556_v3 }
 0x362   :  { %v4891_v61 = vpop.f32.mrb[16].mxu0 }
 0x363   :  { %v4080_v63 = vpop.f32.mrb[17].mxu0 }
 0x364   :  { %v578_v0 = vpop.f32.mrb[18].mxu0 }
 0x365   :  { %v4081_v46 = vpop.f32.mrb[19].mxu0 }
 0x366   :  { %v4893_v1 = vpop.f32.mrb[16].mxu1 }
 0x367   :  { %v4086_v34 = vpop.f32.mrb[17].mxu1 }
 0x368   :  { %v626_v2 = vpop.f32.mrb[18].mxu1 }
 0x369   :  { %v4087_v50 = vpop.f32.mrb[19].mxu1 }
 0x36a   :  { %v4895_v21 = vpop.f32.mrb[20].mxu0 }
 0x36b   :  { %v4092_v4 = vpop.f32.mrb[21].mxu0 }
 0x36c   :  { %v674_v10 = vpop.f32.mrb[22].mxu0 }
 0x36d   :  { %v4093_v35 = vpop.f32.mrb[23].mxu0 }
 0x36e   :  { %v4898_v19 = vpop.f32.mrb[20].mxu1 }
 0x36f   :  { %v4098_v8 = vpop.f32.mrb[21].mxu1 }
 0x370   :  { %v722_v15 = vpop.f32.mrb[22].mxu1 }
 0x371   :  { %v4099_v16 = vpop.f32.mrb[23].mxu1 }
 0x372   :  { %v4903_v58 = vpop.f32.mrb[24].mxu0 }
 0x373   :  { %v4104_v13 = vpop.f32.mrb[25].mxu0 }
 0x374   :  { %v770_v14 = vpop.f32.mrb[26].mxu0 }
 0x375   :  { %v4105_v17 = vpop.f32.mrb[27].mxu0  ;;  %v4926_v14 = vpop.permute.xlu1 %1557 }
 0x376   :  { %v4905_v18 = vpop.f32.mrb[24].mxu1 }
 0x377   :  { %v4110_v60 = vpop.f32.mrb[25].mxu1 }
 0x378   :  { %v818_v20 = vpop.f32.mrb[26].mxu1 }
 0x379   :  { %v4111_v22 = vpop.f32.mrb[27].mxu1  ;;  %v4928_v17 = vpop.permute.xlu1 %1605 }
 0x3a7   :  { %v4907_v62 = vpop.f32.mrb[28].mxu0 }
 0x3a8   :  { %v4116_v23 = vpop.f32.mrb[29].mxu0 }
 0x3a9   :  { %v866_v24 = vpop.f32.mrb[30].mxu0 }
 0x3aa   :  { %v4117_v25 = vpop.f32.mrb[31].mxu0 }
 0x3ab   :  { %v4909_v26 = vpop.f32.mrb[28].mxu1 }
 0x3ac   :  { %v4122_v28 = vpop.f32.mrb[29].mxu1 }
 0x3ad   :  { %v914_v30 = vpop.f32.mrb[30].mxu1 }
 0x3ae   :  { %v4123_v31 = vpop.f32.mrb[31].mxu1 }
 0x3af   :  { %v995_v32 = vpop.f32.mrb[32].mxu0 }
 0x3b0   :  { %v4128_v33 = vpop.f32.mrb[33].mxu0  ;;  %v1365_v36 = vsel %vm434_vm3, %v995_v32, -inf }
 0x3b1   :  { %1366 = vmax.xlane.f32.xlu0 %v1365_v36  ;;  %v998_v38 = vpop.f32.mrb[34].mxu0 }
 0x3b2   :  { %v4129_v40 = vpop.f32.mrb[35].mxu0 }
 0x3b3   :  { %v1047_v41 = vpop.f32.mrb[32].mxu1 }
 0x3b4   :  { %v4134_v42 = vpop.f32.mrb[33].mxu1  ;;  %v1368_v7 = vsel %vm434_vm3, %v1047_v41, -inf }
 0x3b5   :  { %1369 = vmax.xlane.f32.xlu1 %v1368_v7  ;;  %v1050_v43 = vpop.f32.mrb[34].mxu1 }
 0x3b6   :  { %v4135_v9 = vpop.f32.mrb[35].mxu1 }
 0x3b7   :  { %v1099_v45 = vpop.f32.mrb[36].mxu0 }
 0x3b8   :  { %v4140_v12 = vpop.f32.mrb[37].mxu0  ;;  %v1371_v11 = vsel %vm434_vm3, %v1099_v45, -inf }
 0x3b9   :  { %1372 = vmax.xlane.f32.xlu0 %v1371_v11  ;;  %v1102_v47 = vpop.f32.mrb[38].mxu0 }
 0x3ba   :  { %v4141_v48 = vpop.f32.mrb[39].mxu0 }
 0x3bb   :  { %v1151_v49 = vpop.f32.mrb[36].mxu1 }
 0x3bc   :  { %v4146_v51 = vpop.f32.mrb[37].mxu1  ;;  %v1374_v52 = vsel %vm434_vm3, %v1151_v49, -inf }
 0x3bd   :  { %v1154_v53 = vpop.f32.mrb[38].mxu1  ;;  %1375 = vmax.xlane.f32.xlu0 %v1374_v52 }
 0x3be   :  { %v4147_v54 = vpop.f32.mrb[39].mxu1 }
 0x3bf   :  { %v1203_v56 = vpop.f32.mrb[40].mxu0 }
 0x3c0   :  { %v4152_v57 = vpop.f32.mrb[41].mxu0  ;;  %v1377_v59 = vsel %vm434_vm3, %v1203_v56, -inf }
 0x3c1   :  { %1378 = vmax.xlane.f32.xlu1 %v1377_v59  ;;  %v1206_v63 = vpop.f32.mrb[42].mxu0 }
 0x3c2   :  { %v4153_v0 = vpop.f32.mrb[43].mxu0 }
 0x3c3   :  { %v1255_v46 = vpop.f32.mrb[40].mxu1 }
 0x3c4   :  { %v4158_v34 = vpop.f32.mrb[41].mxu1  ;;  %v1380_v2 = vsel %vm434_vm3, %v1255_v46, -inf }
 0x3c5   :  { %v1258_v50 = vpop.f32.mrb[42].mxu1  ;;  %1381 = vmax.xlane.f32.xlu0 %v1380_v2 }
 0x3c6   :  { %v4159_v4 = vpop.f32.mrb[43].mxu1 }
 0x3c7   :  { %v4917_v10 = vpop.f32.mrb[44].mxu0 }
 0x3c8   :  { %v1383_v5 = vsel %vm434_vm3, %v4917_v10, -inf  ;;  %v4164_v35 = vpop.f32.mrb[45].mxu0 }
 0x3c9   :  { %1384 = vmax.xlane.f32.xlu1 %v1383_v5  ;;  %v1310_v29 = vpop.f32.mrb[46].mxu0  ;;  %v1848_v5 = vld [vmem:[%s5594_s0 + $0x6] sm:$0x3]  ;;  %v1845_v35 = vld [vmem:[%s5594_s0] sm:$0x3] }
 0x3ca   :  { %v4165_v55 = vpop.f32.mrb[47].mxu0  ;;  %v4981_v29 = vpack.c.bf16 %v1848_v5, %v1848_v5 }
 0x3cb   :  { %v1359_v6 = vpop.f32.mrb[44].mxu1  ;;  %v1856_v55 = vmul.f32 0.35355338, %v1848_v5 }
 0x3cc   :  { %v1386_v8 = vsel %vm434_vm3, %v1359_v6, -inf  ;;  %v4170_v15 = vpop.f32.mrb[45].mxu1 }
 0x3cd   :  { %1387 = vmax.xlane.f32.xlu0 %v1386_v8  ;;  %v1362_v16 = vpop.f32.mrb[46].mxu1  ;;  %v1853_v8 = vmul.f32 0.35355338, %v1845_v35  ;;  %v1864_v15 = vpack.c.bf16 %v1856_v55, %v1856_v55 }
 0x3ce   :  { %v4171_v13 = vpop.f32.mrb[47].mxu1 }
 0x3cf   :  { %v1861_v16 = vpack.c.bf16 %v1853_v8, %v1853_v8  ;;  %v1850_v13 = vld [vmem:[%s5594_s0 + $0xa] sm:$0x3] }
 0x3da   :  { %1701 = vrot.lane.b32.xlu1 %v4762_v27, %s4562_s13 }
 0x3e3   :  { %1653 = vrot.lane.b32.xlu0 %v4781_v39, %s4562_s13 }
 0x43e   :  { %v1367_v60 = vpop.xlane.xlu0 %1366 }
 0x43f   :  { %v1389_v20 = vsub.f32 %v995_v32, %v1367_v60  ;;  %v1847_v60 = vld [vmem:[%s5594_s0 + $0x4] sm:$0x3] }
 0x441   :  { %v1397_v22 = vmul.f32 1.442695, %v1389_v20  ;;  %v4996_v20 = vpack.c.bf16 %v1850_v13, %v1850_v13 }
 0x442   :  { %v1370_v23 = vpop.xlane.xlu1 %1369 }
 0x443   :  { %4460 = vpow2.f32 %v1397_v22  ;;  %v1390_v24 = vsub.f32 %v1047_v41, %v1370_v23  ;;  %v1858_v22 = vmul.f32 0.35355338, %v1850_v13  ;;  %v4999_v23 = vpack.c.bf16 %v1847_v60, %v1847_v60 }
 0x445   :  { %v1399_v25 = vmul.f32 1.442695, %v1390_v24  ;;  %v1855_v24 = vmul.f32 0.35355338, %v1847_v60 }
 0x446   :  { %v1373_v28 = vpop.xlane.xlu0 %1372 }
 0x447   :  { %4462 = vpow2.f32 %v1399_v25  ;;  %v1391_v30 = vsub.f32 %v1099_v45, %v1373_v28  ;;  %v1866_v25 = vpack.c.bf16 %v1858_v22, %v1858_v22  ;;  %v1863_v28 = vpack.c.bf16 %v1855_v24, %v1855_v24 }
 0x449   :  { %v1401_v31 = vmul.f32 1.442695, %v1391_v30  ;;  %v1852_v30 = vld [vmem:[%s5594_s0 + $0xe] sm:$0x3] }
 0x44a   :  { %v1376_v33 = vpop.xlane.xlu0 %1375 }
 0x44b   :  { %4464 = vpow2.f32 %v1401_v31  ;;  %v1392_v27 = vsub.f32 %v1151_v49, %v1376_v33  ;;  %v1849_v31 = vld [vmem:[%s5594_s0 + $0x8] sm:$0x3]  ;;  %v5012_v33 = vpack.c.bf16 %v1852_v30, %v1852_v30 }
 0x44d   :  { %v4930_v36 = vpop.eup %4460  ;;  %v1403_v39 = vmul.f32 1.442695, %v1392_v27  ;;  %v1860_v27 = vmul.f32 0.35355338, %v1852_v30 }
 0x44e   :  { %v1379_v38 = vpop.xlane.xlu1 %1378  ;;  %v1413_v40 = vsel %vm434_vm3, %v4930_v36, 0.0 }
 0x44f   :  { %4466 = vpow2.f32 %v1403_v39  ;;  %v1393_v32 = vsub.f32 %v1203_v56, %v1379_v38  ;;  %1414 = vadd.xlane.f32.xlu1 %v1413_v40  ;;  %v5015_v39 = vpack.c.bf16 %v1849_v31, %v1849_v31  ;;  %v1857_v38 = vmul.f32 0.35355338, %v1849_v31 }
 0x450   :  { %v1868_v40 = vpack.c.bf16 %v1860_v27, %v1860_v27 }
 0x451   :  { %v4934_v42 = vpop.eup %4462  ;;  %v1405_v41 = vmul.f32 1.442695, %v1393_v32  ;;  %v1865_v32 = vpack.c.bf16 %v1857_v38, %v1857_v38 }
 0x452   :  { %v1382_v7 = vpop.xlane.xlu0 %1381  ;;  %v1416_v43 = vsel %vm434_vm3, %v4934_v42, 0.0 }
 0x453   :  { %4468 = vpow2.f32 %v1405_v41  ;;  %v1394_v9 = vsub.f32 %v1255_v46, %v1382_v7  ;;  %1417 = vadd.xlane.f32.xlu0 %v1416_v43  ;;  %v1851_v41 = vld [vmem:[%s5594_s0 + $0xc] sm:$0x3] }
 0x454   :  { %v5026_v7 = vpack.c.bf16 %v1851_v41, %v1851_v41  ;;  %v1859_v43 = vmul.f32 0.35355338, %v1851_v41 }
 0x455   :  { %v4938_v45 = vpop.eup %4464  ;;  %v1407_v12 = vmul.f32 1.442695, %v1394_v9 }
 0x456   :  { %v1419_v11 = vsel %vm434_vm3, %v4938_v45, 0.0  ;;  %v1385_v54 = vpop.xlane.xlu1 %1384  ;;  %v1867_v9 = vpack.c.bf16 %v1859_v43, %v1859_v43 }
 0x457   :  { %4470 = vpow2.f32 %v1407_v12  ;;  %1420 = vadd.xlane.f32.xlu1 %v1419_v11  ;;  %v1395_v56 = vsub.f32 %v4917_v10, %v1385_v54 }
 0x459   :  { %v4942_v47 = vpop.eup %4466  ;;  %v1409_v59 = vmul.f32 1.442695, %v1395_v56 }
 0x45a   :  { %v1422_v48 = vsel %vm434_vm3, %v4942_v47, 0.0  ;;  %v1388_v57 = vpop.xlane.xlu0 %1387  ;;  %v1702_v12 = vpop.permute.xlu1 %1701 }
 0x45b   :  { %1423 = vadd.xlane.f32.xlu0 %v1422_v48  ;;  %v1396_v63 = vsub.f32 %v1359_v6, %v1388_v57  ;;  %4472 = vpow2.f32 %v1409_v59  ;;  %v4983_v6 = vpack.c.bf16 %v1845_v35, %v1845_v35  ;;  %v1707_v8 = vsel %vm537_vm2, %v1702_v12, 0 }
 0x45d   :  { %v4946_v49 = vpop.eup %4468  ;;  %v1411_v0 = vmul.f32 1.442695, %v1396_v63 }
 0x45e   :  { %v1425_v51 = vsel %vm434_vm3, %v4946_v49, 0.0  ;;  %v1654_v11 = vpop.permute.xlu0 %1653 }
 0x45f   :  { %1426 = vadd.xlane.f32.xlu1 %v1425_v51  ;;  %4474 = vpow2.f32 %v1411_v0  ;;  %v1563_v0 = vsel %vm537_vm2, %v4926_v14, 0  ;;  %v1659_v35 = vsel %vm537_vm2, %v1654_v11, 0 }
 0x461   :  { %v4950_v52 = vpop.eup %4470 }
 0x462   :  { %v1428_v53 = vsel %vm434_vm3, %v4950_v52, 0.0 }
 0x463   :  { %1429 = vadd.xlane.f32.xlu0 %v1428_v53 }
 0x465   :  { %v4959_v46 = vpop.eup %4472 }
 0x466   :  { %v1431_v34 = vsel %vm434_vm3, %v4959_v46, 0.0 }
 0x469   :  { %v4963_v2 = vpop.eup %4474 }
 0x470   :  { %1797 = vrot.lane.b32.xlu1 %v4778_v37, %s4562_s13  ;;  %v1434_v37 = vsel %vm434_vm3, %v4963_v2, 0.0 }
 0x479   :  { %1749 = vrot.lane.b32.xlu0 %v4792_v44, %s4562_s13  ;;  %v1846_v44 = vld [vmem:[%s5594_s0 + $0x2] sm:$0x3] }
 0x47a   :  { %v4970_v50 = vpack.c.bf16 %v1846_v44, %v1846_v44  ;;  %v1854_v4 = vmul.f32 0.35355338, %v1846_v44 }
 0x47c   :  { %v1862_v10 = vpack.c.bf16 %v1854_v4, %v1854_v4  ;;  %v1611_v4 = vsel %vm537_vm2, %v4928_v17, 0 }
 0x494   :  { %1432 = vadd.xlane.f32.xlu1 %v1431_v34 }
 0x498   :  { %1435 = vadd.xlane.f32.xlu0 %v1434_v37 }
 0x4a5   :  { %1933 = vrot.lane.b32.xlu1 %v4970_v50, %s4563_s16 }
 0x4a9   :  { %1930 = vrot.lane.b32.xlu1 %v1862_v10, %s4564_s21 }
 0x4ad   :  { %2037 = vrot.lane.b32.xlu1 %v4981_v29, %s4563_s16 }
 0x4ae   :  { %1881 = vrot.lane.b32.xlu0 %v4983_v6, %s4563_s16 }
 0x4b1   :  { %2034 = vrot.lane.b32.xlu1 %v1864_v15, %s4564_s21 }
 0x4b2   :  { %1878 = vrot.lane.b32.xlu0 %v1861_v16, %s4564_s21 }
 0x4b5   :  { %2141 = vrot.lane.b32.xlu1 %v4996_v20, %s4563_s16 }
 0x4b6   :  { %1985 = vrot.lane.b32.xlu0 %v4999_v23, %s4563_s16 }
 0x4b9   :  { %2138 = vrot.lane.b32.xlu1 %v1866_v25, %s4564_s21 }
 0x4ba   :  { %1982 = vrot.lane.b32.xlu0 %v1863_v28, %s4564_s21 }
 0x4bd   :  { %2245 = vrot.lane.b32.xlu1 %v5012_v33, %s4563_s16 }
 0x4be   :  { %2089 = vrot.lane.b32.xlu0 %v5015_v39, %s4563_s16 }
 0x4c1   :  { %2242 = vrot.lane.b32.xlu1 %v1868_v40, %s4564_s21 }
 0x4c2   :  { %2086 = vrot.lane.b32.xlu0 %v1865_v32, %s4564_s21 }
 0x4c5   :  { %2389 = vrot.lane.b32.xlu1 %v4983_v6, %s4565_s3 }
 0x4c6   :  { %2193 = vrot.lane.b32.xlu0 %v5026_v7, %s4563_s16 }
 0x4c9   :  { %2485 = vrot.lane.b32.xlu1 %v4999_v23, %s4565_s3 }
 0x4ca   :  { %2190 = vrot.lane.b32.xlu0 %v1867_v9, %s4564_s21 }
 0x4cd   :  { %2533 = vrot.lane.b32.xlu1 %v4981_v29, %s4565_s3 }
 0x4ce   :  { %2437 = vrot.lane.b32.xlu0 %v4970_v50, %s4565_s3 }
 0x4dc   :  { %v1415_v48 = vpop.xlane.xlu1 %1414 }
 0x4dd   :  { %4476 = vrcp.f32 %v1415_v48 }
 0x4e0   :  { %v1418_v51 = vpop.xlane.xlu0 %1417 }
 0x4e1   :  { %4478 = vrcp.f32 %v1418_v51 }
 0x4e4   :  { %v1421_v53 = vpop.xlane.xlu1 %1420 }
 0x4e5   :  { %4480 = vrcp.f32 %v1421_v53 }
 0x4e7   :  { %v4477_v54 = vpop.eup %4476 }
 0x4e8   :  { %v1424_v56 = vpop.xlane.xlu0 %1423  ;;  %v1445_v57 = vmul.f32 %v4477_v54, %v4930_v36 }
 0x4e9   :  { %4482 = vrcp.f32 %v1424_v56 }
 0x4ea   :  { %v1453_v59 = vpack.c.bf16 %v1445_v57, %v1445_v57 }
 0x4eb   :  { %v4479_v63 = vpop.eup %4478 }
 0x4ec   :  { %4175 = vmatmul.mubr.msk.bf16.vlgmr.msra.gmra.mrb[48].mxu0 %vm533_vm4, %v1453_v59  ;;  %v1427_v34 = vpop.xlane.xlu1 %1426  ;;  %v1446_v37 = vmul.f32 %v4479_v63, %v4934_v42 }
 0x4ed   :  { %4185 = vmatpush3.bf16.msra.mxu0 %v1563_v0  ;;  %4484 = vrcp.f32 %v1427_v34  ;;  %4186 = vmatprep.mubr.msk.bf16.mxu0 %vm4557_vm0, %v4556_v3 }
 0x4ee   :  { %v1454_v44 = vpack.c.bf16 %v1446_v37, %v1446_v37  ;;  %4196 = vmatprep.subr.bf16.mxu0 %v4556_v3 }
 0x4ef   :  { %v4481_v36 = vpop.eup %4480 }
 0x4f0   :  { %4181 = vmatmul.mubr.msk.bf16.vlgmr.msra.gmra.mrb[48].mxu1 %vm533_vm4, %v1454_v44  ;;  %v1430_v14 = vpop.xlane.xlu0 %1429  ;;  %v1447_v10 = vmul.f32 %v4481_v36, %v4938_v45  ;;  %v1798_v24 = vpop.permute.xlu1 %1797 }
 0x4f1   :  { %4191 = vmatpush3.bf16.msra.mxu1 %v1611_v4  ;;  %4486 = vrcp.f32 %v1430_v14  ;;  %4192 = vmatprep.mubr.msk.bf16.mxu1 %vm4557_vm0, %v4556_v3  ;;  %v1803_v25 = vsel %vm537_vm2, %v1798_v24, 0 }
 0x4f2   :  { %v1455_v42 = vpack.c.bf16 %v1447_v10, %v1447_v10  ;;  %4202 = vmatprep.subr.bf16.mxu1 %v4556_v3 }
 0x4f3   :  { %v4483_v5 = vpop.eup %4482 }
 0x4f4   :  { %4187 = vmatmul.mubr.msk.bf16.vlgmr.msra.gmra.mrb[52].mxu0 %vm533_vm4, %v1455_v42  ;;  %v1448_v17 = vmul.f32 %v4483_v5, %v4942_v47  ;;  %v1750_v16 = vpop.permute.xlu0 %1749 }
 0x4f5   :  { %4197 = vmatpush3.bf16.msra.mxu0 %v1659_v35  ;;  %4198 = vmatprep.mubr.msk.bf16.mxu0 %vm4557_vm0, %v4556_v3  ;;  %v1755_v60 = vsel %vm537_vm2, %v1750_v16, 0 }
 0x4f6   :  { %v1456_v45 = vpack.c.bf16 %v1448_v17, %v1448_v17  ;;  %4208 = vmatprep.subr.bf16.mxu0 %v4556_v3 }
 0x4f7   :  { %v4485_v55 = vpop.eup %4484 }
 0x4f8   :  { %4193 = vmatmul.mubr.msk.bf16.vlgmr.msra.gmra.mrb[52].mxu1 %vm533_vm4, %v1456_v45  ;;  %v1449_v15 = vmul.f32 %v4485_v55, %v4946_v49 }
 0x4f9   :  { %4203 = vmatpush3.bf16.msra.mxu1 %v1707_v8  ;;  %4204 = vmatprep.mubr.msk.bf16.mxu1 %vm4557_vm0, %v4556_v3 }
 0x4fa   :  { %v1457_v47 = vpack.c.bf16 %v1449_v15, %v1449_v15  ;;  %4214 = vmatprep.subr.bf16.mxu1 %v4556_v3 }
 0x4fb   :  { %v4487_v13 = vpop.eup %4486 }
 0x4fc   :  { %4199 = vmatmul.mubr.msk.bf16.vlgmr.msra.gmra.mrb[56].mxu0 %vm533_vm4, %v1457_v47  ;;  %v1450_v22 = vmul.f32 %v4487_v13, %v4950_v52 }
 0x4fd   :  { %4209 = vmatpush3.bf16.msra.mxu0 %v1755_v60  ;;  %4210 = vmatprep.mubr.msk.bf16.mxu0 %vm4557_vm0, %v4556_v3 }
 0x4fe   :  { %v1458_v49 = vpack.c.bf16 %v1450_v22, %v1450_v22  ;;  %4220 = vmatprep.subr.bf16.mxu0 %v4556_v3 }
 0x500   :  { %4205 = vmatmul.mubr.msk.bf16.vlgmr.msra.gmra.mrb[56].mxu1 %vm533_vm4, %v1458_v49 }
 0x501   :  { %4215 = vmatpush3.bf16.msra.mxu1 %v1803_v25  ;;  %4216 = vmatprep.mubr.msk.bf16.mxu1 %vm4557_vm0, %v4556_v3 }
 0x502   :  { %4226 = vmatprep.subr.bf16.mxu1 %v4556_v3 }
 0x521   :  { %v1433_v28 = vpop.xlane.xlu1 %1432 }
 0x522   :  { %4488 = vrcp.f32 %v1433_v28 }
 0x525   :  { %v1436_v52 = vpop.xlane.xlu0 %1435  ;;  %v1934_v30 = vpop.permute.xlu1 %1933 }
 0x526   :  { %4490 = vrcp.f32 %v1436_v52  ;;  %v1939_v51 = vsel %vm44_vm1, %v1934_v30, 0 }
 0x529   :  { %v1882_v31 = vpop.permute.xlu0 %1881  ;;  %v1931_v27 = vpop.permute.xlu1 %1930 }
 0x52a   :  { %v1887_v41 = vsel %vm44_vm1, %v1882_v31, 0 }
 0x52c   :  { %v4489_v38 = vpop.eup %4488 }
 0x52d   :  { %v1451_v40 = vmul.f32 %v4489_v38, %v4959_v46  ;;  %v1879_v32 = vpop.permute.xlu0 %1878  ;;  %v2038_v12 = vpop.permute.xlu1 %2037 }
 0x52e   :  { %v2043_v57 = vsel %vm44_vm1, %v2038_v12, 0 }
 0x52f   :  { %v1459_v43 = vpack.c.bf16 %v1451_v40, %v1451_v40 }
 0x530   :  { %v4491_v9 = vpop.eup %4490 }
 0x531   :  { %4211 = vmatmul.mubr.msk.bf16.vlgmr.msra.gmra.mrb[60].mxu0 %vm533_vm4, %v1459_v43  ;;  %v1452_v11 = vmul.f32 %v4491_v9, %v4963_v2  ;;  %v1986_v48 = vpop.permute.xlu0 %1985  ;;  %v2035_v54 = vpop.permute.xlu1 %2034 }
 0x532   :  { %4221 = vmatpush3.bf16.xpose.msra.mxu0 %v1887_v41  ;;  %4222 = vmatprep.mubr.msk.bf16.mxu0 %vm4557_vm0, %v4556_v3  ;;  %v1991_v2 = vsel %vm44_vm1, %v1986_v48, 0 }
 0x533   :  { %v1460_v53 = vpack.c.bf16 %v1452_v11, %v1452_v11  ;;  %4232 = vmatprep.subr.bf16.mxu0 %v4556_v3 }
 0x535   :  { %4217 = vmatmul.mubr.msk.bf16.vlgmr.msra.gmra.mrb[60].mxu1 %vm533_vm4, %v1460_v53  ;;  %v1983_v46 = vpop.permute.xlu0 %1982  ;;  %v2142_v59 = vpop.permute.xlu1 %2141 }
 0x536   :  { %4227 = vmatpush3.bf16.xpose.msra.mxu1 %v1939_v51  ;;  %4228 = vmatprep.mubr.msk.bf16.mxu1 %vm4557_vm0, %v4556_v3  ;;  %v2147_v37 = vsel %vm44_vm1, %v2142_v59, 0 }
 0x537   :  { %4238 = vmatprep.subr.bf16.mxu1 %v4556_v3 }
 0x539   :  { %4223 = vmatmul.mubr.msk.bf16.vlgmr.msra.gmra.mrb[64].mxu0 %vm44_vm1, %v1879_v32  ;;  %v2090_v56 = vpop.permute.xlu0 %2089  ;;  %v2139_v34 = vpop.permute.xlu1 %2138 }
 0x53a   :  { %4233 = vmatpush3.bf16.xpose.msra.mxu0 %v1991_v2  ;;  %4234 = vmatprep.mubr.msk.bf16.mxu0 %vm4557_vm0, %v4556_v3  ;;  %v2095_v0 = vsel %vm44_vm1, %v2090_v56, 0 }
 0x53b   :  { %4244 = vmatprep.subr.bf16.mxu0 %v4556_v3 }
 0x53d   :  { %4229 = vmatmul.mubr.msk.bf16.vlgmr.msra.gmra.mrb[64].mxu1 %vm44_vm1, %v1931_v27  ;;  %v2087_v63 = vpop.permute.xlu0 %2086  ;;  %v2246_v4 = vpop.permute.xlu1 %2245 }
 0x53e   :  { %4239 = vmatpush3.bf16.xpose.msra.mxu1 %v2043_v57  ;;  %4240 = vmatprep.mubr.msk.bf16.mxu1 %vm4557_vm0, %v4556_v3  ;;  %v2251_v14 = vsel %vm44_vm1, %v2246_v4, 0 }
 0x53f   :  { %4250 = vmatprep.subr.bf16.mxu1 %v4556_v3 }
 0x541   :  { %4235 = vmatmul.mubr.msk.bf16.vlgmr.msra.gmra.mrb[68].mxu0 %vm44_vm1, %v1983_v46  ;;  %v2194_v44 = vpop.permute.xlu0 %2193  ;;  %v2243_v42 = vpop.permute.xlu1 %2242 }
 0x542   :  { %4245 = vmatpush3.bf16.xpose.msra.mxu0 %v2095_v0  ;;  %4246 = vmatprep.mubr.msk.bf16.mxu0 %vm4557_vm0, %v4556_v3  ;;  %v2199_v36 = vsel %vm44_vm1, %v2194_v44, 0 }
 0x543   :  { %4256 = vmatprep.subr.bf16.mxu0 %v4556_v3 }
 0x545   :  { %4241 = vmatmul.mubr.msk.bf16.vlgmr.msra.gmra.mrb[68].mxu1 %vm44_vm1, %v2035_v54  ;;  %v2191_v10 = vpop.permute.xlu0 %2190  ;;  %v2390_v13 = vpop.permute.xlu1 %2389 }
 0x546   :  { %4251 = vmatpush3.bf16.xpose.msra.mxu1 %v2147_v37  ;;  %4252 = vmatprep.mubr.msk.bf16.mxu1 %vm4557_vm0, %v4556_v3  ;;  %v2395_v23 = vsel %vm537_vm2, %v2390_v13, 0 }
 0x547   :  { %4262 = vmatprep.subr.bf16.mxu1 %v4556_v3 }
 0x549   :  { %4247 = vmatmul.mubr.msk.bf16.vlgmr.msra.gmra.mrb[72].mxu0 %vm44_vm1, %v2087_v63  ;;  %v2438_v22 = vpop.permute.xlu0 %2437 }
 0x54a   :  { %4257 = vmatpush3.bf16.xpose.msra.mxu0 %v2199_v36  ;;  %4258 = vmatprep.mubr.msk.bf16.mxu0 %vm4557_vm0, %v4556_v3  ;;  %v2443_v24 = vsel %vm537_vm2, %v2438_v22, 0 }
 0x54b   :  { %4268 = vmatprep.subr.bf16.mxu0 %v4556_v3 }
 0x54d   :  { %4253 = vmatmul.mubr.msk.bf16.vlgmr.msra.gmra.mrb[72].mxu1 %vm44_vm1, %v2139_v34 }
 0x54e   :  { %4263 = vmatpush3.bf16.xpose.msra.mxu1 %v2251_v14  ;;  %4264 = vmatprep.mubr.msk.bf16.mxu1 %vm4557_vm0, %v4556_v3 }
 0x54f   :  { %4274 = vmatprep.subr.bf16.mxu1 %v4556_v3 }
 0x551   :  { %4259 = vmatmul.mubr.msk.bf16.vlgmr.msra.gmra.mrb[76].mxu0 %vm44_vm1, %v2191_v10 }
 0x552   :  { %4270 = vmatprep.mubr.msk.bf16.mxu0 %vm4557_vm0, %v4556_v3  ;;  %4269 = vmatpush3.bf16.msra.mxu0 %v2395_v23 }
 0x553   :  { %4280 = vmatprep.subr.bf16.mxu0 %v4556_v3 }
 0x555   :  { %4265 = vmatmul.mubr.msk.bf16.vlgmr.msra.gmra.mrb[76].mxu1 %vm44_vm1, %v2243_v42 }
 0x556   :  { %4276 = vmatprep.mubr.msk.bf16.mxu1 %vm4557_vm0, %v4556_v3  ;;  %4275 = vmatpush3.bf16.msra.mxu1 %v2443_v24 }
 0x557   :  { %4286 = vmatprep.subr.bf16.mxu1 %v4556_v3 }
 0x5bf   :  { %v5125_v5 = vpop.f32.mrb[48].mxu0 }
 0x5c0   :  { %v4176_v35 = vpop.f32.mrb[49].mxu0 }
 0x5c1   :  { %v1506_v17 = vpop.f32.mrb[50].mxu0 }
 0x5c2   :  { %v4177_v45 = vpop.f32.mrb[51].mxu0 }
 0x5c3   :  { %v5127_v55 = vpop.f32.mrb[48].mxu1 }
 0x5c4   :  { %v4182_v8 = vpop.f32.mrb[49].mxu1 }
 0x5c5   :  { %v1554_v15 = vpop.f32.mrb[50].mxu1 }
 0x5c6   :  { %v4183_v16 = vpop.f32.mrb[51].mxu1 }
 0x5c7   :  { %v5129_v6 = vpop.f32.mrb[52].mxu0 }
 0x5c8   :  { %v4188_v47 = vpop.f32.mrb[53].mxu0 }
 0x5c9   :  { %v1602_v50 = vpop.f32.mrb[54].mxu0 }
 0x5ca   :  { %v4189_v60 = vpop.f32.mrb[55].mxu0 }
 0x5cb   :  { %v5132_v29 = vpop.f32.mrb[52].mxu1 }
 0x5cc   :  { %v4194_v49 = vpop.f32.mrb[53].mxu1 }
 0x5cd   :  { %v1650_v25 = vpop.f32.mrb[54].mxu1 }
 0x5ce   :  { %v4195_v28 = vpop.f32.mrb[55].mxu1 }
 0x5cf   :  { %v5137_v52 = vpop.f32.mrb[56].mxu0 }
 0x5d0   :  { %v4200_v30 = vpop.f32.mrb[57].mxu0 }
 0x5d1   :  { %v1698_v31 = vpop.f32.mrb[58].mxu0 }
 0x5d2   :  { %v4201_v27 = vpop.f32.mrb[59].mxu0 }
 0x5d3   :  { %v5139_v38 = vpop.f32.mrb[56].mxu1 }
 0x5d4   :  { %v4206_v40 = vpop.f32.mrb[57].mxu1 }
 0x5d5   :  { %v1746_v32 = vpop.f32.mrb[58].mxu1 }
 0x5d6   :  { %v4207_v41 = vpop.f32.mrb[59].mxu1 }
 0x604   :  { %v5141_v43 = vpop.f32.mrb[60].mxu0 }
 0x605   :  { %v4212_v9 = vpop.f32.mrb[61].mxu0 }
 0x606   :  { %v1794_v12 = vpop.f32.mrb[62].mxu0 }
 0x607   :  { %v4213_v11 = vpop.f32.mrb[63].mxu0 }
 0x608   :  { %v5143_v48 = vpop.f32.mrb[60].mxu1 }
 0x609   :  { %v4218_v51 = vpop.f32.mrb[61].mxu1 }
 0x60a   :  { %v1842_v53 = vpop.f32.mrb[62].mxu1  ;;  %v5160_v51 = vpop.permute.xlu1 %2485 }
 0x60b   :  { %v4219_v46 = vpop.f32.mrb[63].mxu1 }
 0x60c   :  { %v1923_v54 = vpop.f32.mrb[64].mxu0 }
 0x60d   :  { %v4224_v2 = vpop.f32.mrb[65].mxu0  ;;  %v2293_v56 = vsel %vm434_vm3, %v1923_v54, -inf }
 0x60e   :  { %2294 = vmax.xlane.f32.xlu0 %v2293_v56  ;;  %v1926_v57 = vpop.f32.mrb[66].mxu0  ;;  %v5162_v53 = vpop.permute.xlu1 %2533 }
 0x60f   :  { %v4225_v59 = vpop.f32.mrb[67].mxu0 }
 0x610   :  { %v1975_v63 = vpop.f32.mrb[64].mxu1 }
 0x611   :  { %v4230_v0 = vpop.f32.mrb[65].mxu1  ;;  %v2296_v34 = vsel %vm434_vm3, %v1975_v63, -inf }
 0x612   :  { %2297 = vmax.xlane.f32.xlu1 %v2296_v34  ;;  %v1978_v37 = vpop.f32.mrb[66].mxu1 }
 0x613   :  { %v4231_v44 = vpop.f32.mrb[67].mxu1 }
 0x614   :  { %v2027_v36 = vpop.f32.mrb[68].mxu0 }
 0x615   :  { %v4236_v4 = vpop.f32.mrb[69].mxu0  ;;  %v2299_v14 = vsel %vm434_vm3, %v2027_v36, -inf }
 0x616   :  { %2300 = vmax.xlane.f32.xlu0 %v2299_v14  ;;  %v2030_v10 = vpop.f32.mrb[70].mxu0 }
 0x617   :  { %v4237_v42 = vpop.f32.mrb[71].mxu0 }
 0x618   :  { %v2079_v35 = vpop.f32.mrb[68].mxu1 }
 0x619   :  { %v4242_v17 = vpop.f32.mrb[69].mxu1  ;;  %v2302_v45 = vsel %vm434_vm3, %v2079_v35, -inf }
 0x61a   :  { %v2082_v8 = vpop.f32.mrb[70].mxu1  ;;  %2303 = vmax.xlane.f32.xlu0 %v2302_v45 }
 0x61b   :  { %v4243_v15 = vpop.f32.mrb[71].mxu1 }
 0x61c   :  { %v2131_v16 = vpop.f32.mrb[72].mxu0 }
 0x61d   :  { %v4248_v47 = vpop.f32.mrb[73].mxu0  ;;  %v2305_v50 = vsel %vm434_vm3, %v2131_v16, -inf }
 0x61e   :  { %2306 = vmax.xlane.f32.xlu1 %v2305_v50  ;;  %v2134_v13 = vpop.f32.mrb[74].mxu0 }
 0x61f   :  { %v4249_v60 = vpop.f32.mrb[75].mxu0 }
 0x620   :  { %v2183_v23 = vpop.f32.mrb[72].mxu1 }
 0x621   :  { %v4254_v22 = vpop.f32.mrb[73].mxu1  ;;  %v2308_v24 = vsel %vm434_vm3, %v2183_v23, -inf }
 0x622   :  { %v2186_v49 = vpop.f32.mrb[74].mxu1  ;;  %2309 = vmax.xlane.f32.xlu0 %v2308_v24 }
 0x623   :  { %v4255_v25 = vpop.f32.mrb[75].mxu1 }
 0x624   :  { %v5151_v28 = vpop.f32.mrb[76].mxu0 }
 0x625   :  { %v2311_v30 = vsel %vm434_vm3, %v5151_v28, -inf  ;;  %v4260_v31 = vpop.f32.mrb[77].mxu0 }
 0x626   :  { %2312 = vmax.xlane.f32.xlu1 %v2311_v30  ;;  %v2238_v27 = vpop.f32.mrb[78].mxu0 }
 0x627   :  { %v4261_v40 = vpop.f32.mrb[79].mxu0 }
 0x628   :  { %v2287_v32 = vpop.f32.mrb[76].mxu1 }
 0x629   :  { %v2314_v41 = vsel %vm434_vm3, %v2287_v32, -inf  ;;  %v4266_v9 = vpop.f32.mrb[77].mxu1 }
 0x62a   :  { %2315 = vmax.xlane.f32.xlu0 %v2314_v41  ;;  %v2290_v12 = vpop.f32.mrb[78].mxu1 }
 0x62b   :  { %v4267_v11 = vpop.f32.mrb[79].mxu1 }
 0x62c   :  { %v2776_v11 = vld [vmem:[%s5594_s0 + $0x6] sm:$0x3] }
 0x637   :  { %2629 = vrot.lane.b32.xlu1 %v4996_v20, %s4565_s3 }
 0x640   :  { %2581 = vrot.lane.b32.xlu0 %v5015_v39, %s4565_s3 }
 0x69b   :  { %v2295_v46 = vpop.xlane.xlu0 %2294 }
 0x69c   :  { %v2317_v2 = vsub.f32 %v1923_v54, %v2295_v46  ;;  %v2773_v46 = vld [vmem:[%s5594_s0] sm:$0x3] }
 0x69e   :  { %v2325_v56 = vmul.f32 1.442695, %v2317_v2  ;;  %v5215_v2 = vpack.c.bf16 %v2776_v11, %v2776_v11 }
 0x69f   :  { %v2298_v57 = vpop.xlane.xlu1 %2297 }
 0x6a0   :  { %4492 = vpow2.f32 %v2325_v56  ;;  %v2318_v59 = vsub.f32 %v1975_v63, %v2298_v57  ;;  %v2784_v56 = vmul.f32 0.35355338, %v2776_v11  ;;  %v5217_v57 = vpack.c.bf16 %v2773_v46, %v2773_v46 }
 0x6a2   :  { %v2327_v0 = vmul.f32 1.442695, %v2318_v59  ;;  %v2781_v59 = vmul.f32 0.35355338, %v2773_v46 }
 0x6a3   :  { %v2301_v34 = vpop.xlane.xlu0 %2300 }
 0x6a4   :  { %4494 = vpow2.f32 %v2327_v0  ;;  %v2319_v37 = vsub.f32 %v2027_v36, %v2301_v34  ;;  %v2792_v0 = vpack.c.bf16 %v2784_v56, %v2784_v56  ;;  %v2789_v34 = vpack.c.bf16 %v2781_v59, %v2781_v59 }
 0x6a5   :  { %v2491_v56 = vsel %vm537_vm2, %v5160_v51, 0 }
 0x6a6   :  { %v2329_v44 = vmul.f32 1.442695, %v2319_v37  ;;  %v2778_v37 = vld [vmem:[%s5594_s0 + $0xa] sm:$0x3] }
 0x6a7   :  { %v2304_v4 = vpop.xlane.xlu0 %2303 }
 0x6a8   :  { %4496 = vpow2.f32 %v2329_v44  ;;  %v2320_v20 = vsub.f32 %v2079_v35, %v2304_v4  ;;  %v2775_v44 = vld [vmem:[%s5594_s0 + $0x4] sm:$0x3]  ;;  %v5230_v4 = vpack.c.bf16 %v2778_v37, %v2778_v37 }
 0x6aa   :  { %v5164_v14 = vpop.eup %4492  ;;  %v2331_v39 = vmul.f32 1.442695, %v2320_v20  ;;  %v2786_v20 = vmul.f32 0.35355338, %v2778_v37  ;;  %v2539_v37 = vsel %vm537_vm2, %v5162_v53, 0 }
 0x6ab   :  { %v2307_v10 = vpop.xlane.xlu1 %2306  ;;  %v2341_v42 = vsel %vm434_vm3, %v5164_v14, 0.0 }
 0x6ac   :  { %4498 = vpow2.f32 %v2331_v39  ;;  %v2321_v54 = vsub.f32 %v2131_v16, %v2307_v10  ;;  %2342 = vadd.xlane.f32.xlu1 %v2341_v42  ;;  %v5233_v39 = vpack.c.bf16 %v2775_v44, %v2775_v44  ;;  %v2783_v10 = vmul.f32 0.35355338, %v2775_v44 }
 0x6ad   :  { %v2794_v42 = vpack.c.bf16 %v2786_v20, %v2786_v20 }
 0x6ae   :  { %v5168_v17 = vpop.eup %4494  ;;  %v2333_v63 = vmul.f32 1.442695, %v2321_v54  ;;  %v2791_v54 = vpack.c.bf16 %v2783_v10, %v2783_v10 }
 0x6af   :  { %v2310_v45 = vpop.xlane.xlu0 %2309  ;;  %v2344_v36 = vsel %vm434_vm3, %v5168_v17, 0.0 }
 0x6b0   :  { %4500 = vpow2.f32 %v2333_v63  ;;  %v2322_v8 = vsub.f32 %v2183_v23, %v2310_v45  ;;  %2345 = vadd.xlane.f32.xlu0 %v2344_v36  ;;  %v2780_v63 = vld [vmem:[%s5594_s0 + $0xe] sm:$0x3]  ;;  %v2777_v45 = vld [vmem:[%s5594_s0 + $0x8] sm:$0x3] }
 0x6b1   :  { %v5246_v36 = vpack.c.bf16 %v2780_v63, %v2780_v63 }
 0x6b2   :  { %v5172_v35 = vpop.eup %4496  ;;  %v2335_v15 = vmul.f32 1.442695, %v2322_v8  ;;  %v2788_v8 = vmul.f32 0.35355338, %v2780_v63 }
 0x6b3   :  { %v2347_v47 = vsel %vm434_vm3, %v5172_v35, 0.0  ;;  %v2313_v24 = vpop.xlane.xlu1 %2312 }
 0x6b4   :  { %4502 = vpow2.f32 %v2335_v15  ;;  %2348 = vadd.xlane.f32.xlu1 %v2347_v47  ;;  %v2323_v49 = vsub.f32 %v5151_v28, %v2313_v24  ;;  %v5249_v15 = vpack.c.bf16 %v2777_v45, %v2777_v45  ;;  %v2785_v47 = vmul.f32 0.35355338, %v2777_v45 }
 0x6b6   :  { %v5176_v16 = vpop.eup %4498  ;;  %v2337_v30 = vmul.f32 1.442695, %v2323_v49 }
 0x6b7   :  { %v2350_v50 = vsel %vm434_vm3, %v5176_v16, 0.0  ;;  %v2316_v25 = vpop.xlane.xlu0 %2315 }
 0x6b8   :  { %2351 = vadd.xlane.f32.xlu0 %v2350_v50  ;;  %v2324_v31 = vsub.f32 %v2287_v32, %v2316_v25  ;;  %4504 = vpow2.f32 %v2337_v30  ;;  %v2796_v50 = vpack.c.bf16 %v2788_v8, %v2788_v8  ;;  %v2630_v30 = vpop.permute.xlu1 %2629 }
 0x6ba   :  { %v5180_v13 = vpop.eup %4500  ;;  %v2339_v27 = vmul.f32 1.442695, %v2324_v31 }
 0x6bb   :  { %v2353_v60 = vsel %vm434_vm3, %v5180_v13, 0.0  ;;  %v2582_v31 = vpop.permute.xlu0 %2581 }
 0x6bc   :  { %2354 = vadd.xlane.f32.xlu1 %v2353_v60  ;;  %4506 = vpow2.f32 %v2339_v27  ;;  %v2793_v60 = vpack.c.bf16 %v2785_v47, %v2785_v47  ;;  %v2587_v10 = vsel %vm537_vm2, %v2582_v31, 0 }
 0x6be   :  { %v5184_v23 = vpop.eup %4502 }
 0x6bf   :  { %v2356_v22 = vsel %vm434_vm3, %v5184_v23, 0.0 }
 0x6c0   :  { %2357 = vadd.xlane.f32.xlu0 %v2356_v22  ;;  %v2779_v22 = vld [vmem:[%s5594_s0 + $0xc] sm:$0x3] }
 0x6c1   :  { %v5260_v24 = vpack.c.bf16 %v2779_v22, %v2779_v22  ;;  %v2787_v49 = vmul.f32 0.35355338, %v2779_v22 }
 0x6c2   :  { %v5193_v40 = vpop.eup %4504 }
 0x6c3   :  { %v2359_v41 = vsel %vm434_vm3, %v5193_v40, 0.0  ;;  %v2795_v25 = vpack.c.bf16 %v2787_v49, %v2787_v49 }
 0x6c6   :  { %v5197_v9 = vpop.eup %4506 }
 0x6cd   :  { %2725 = vrot.lane.b32.xlu1 %v5012_v33, %s4565_s3  ;;  %v2362_v33 = vsel %vm434_vm3, %v5197_v9, 0.0 }
 0x6d6   :  { %2677 = vrot.lane.b32.xlu0 %v5026_v7, %s4565_s3  ;;  %v2774_v7 = vld [vmem:[%s5594_s0 + $0x2] sm:$0x3]  ;;  %s4568_s0 = smov 40  }
 0x6d7   :  { %v5204_v28 = vpack.c.bf16 %v2774_v7, %v2774_v7  ;;  %v2782_v32 = vmul.f32 0.35355338, %v2774_v7 }
 0x6d9   :  { %v2790_v12 = vpack.c.bf16 %v2782_v32, %v2782_v32 }
 0x6f1   :  { %2360 = vadd.xlane.f32.xlu1 %v2359_v41 }
 0x6f5   :  { %2363 = vadd.xlane.f32.xlu0 %v2362_v33 }
 0x702   :  { %2861 = vrot.lane.b32.xlu1 %v5204_v28, %s4566_s6 }
 0x706   :  { %2858 = vrot.lane.b32.xlu1 %v2790_v12, %s4567_s11 }
 0x70a   :  { %2965 = vrot.lane.b32.xlu1 %v5215_v2, %s4566_s6 }
 0x70b   :  { %2809 = vrot.lane.b32.xlu0 %v5217_v57, %s4566_s6 }
 0x70e   :  { %2962 = vrot.lane.b32.xlu1 %v2792_v0, %s4567_s11 }
 0x70f   :  { %2806 = vrot.lane.b32.xlu0 %v2789_v34, %s4567_s11 }
 0x712   :  { %3069 = vrot.lane.b32.xlu1 %v5230_v4, %s4566_s6 }
 0x713   :  { %2913 = vrot.lane.b32.xlu0 %v5233_v39, %s4566_s6 }
 0x716   :  { %3066 = vrot.lane.b32.xlu1 %v2794_v42, %s4567_s11 }
 0x717   :  { %2910 = vrot.lane.b32.xlu0 %v2791_v54, %s4567_s11  ;;  %v2635_v54 = vsel %vm537_vm2, %v2630_v30, 0 }
 0x71a   :  { %3173 = vrot.lane.b32.xlu1 %v5246_v36, %s4566_s6 }
 0x71b   :  { %3017 = vrot.lane.b32.xlu0 %v5249_v15, %s4566_s6 }
 0x71e   :  { %3170 = vrot.lane.b32.xlu1 %v2796_v50, %s4567_s11 }
 0x71f   :  { %3014 = vrot.lane.b32.xlu0 %v2793_v60, %s4567_s11 }
 0x722   :  { %3317 = vrot.lane.b32.xlu1 %v5217_v57, %s4568_s0 }
 0x723   :  { %3121 = vrot.lane.b32.xlu0 %v5260_v24, %s4566_s6 }
 0x727   :  { %3118 = vrot.lane.b32.xlu0 %v2795_v25, %s4567_s11 }
 0x739   :  { %v2343_v27 = vpop.xlane.xlu1 %2342 }
 0x73a   :  { %4508 = vrcp.f32 %v2343_v27 }
 0x73d   :  { %v2346_v41 = vpop.xlane.xlu0 %2345 }
 0x73e   :  { %4510 = vrcp.f32 %v2346_v41 }
 0x741   :  { %v2349_v33 = vpop.xlane.xlu1 %2348 }
 0x742   :  { %4512 = vrcp.f32 %v2349_v33 }
 0x744   :  { %v4509_v7 = vpop.eup %4508 }
 0x745   :  { %v2373_v32 = vmul.f32 %v4509_v7, %v5164_v14  ;;  %v2352_v12 = vpop.xlane.xlu0 %2351 }
 0x746   :  { %4514 = vrcp.f32 %v2352_v12 }
 0x747   :  { %v2381_v11 = vpack.c.bf16 %v2373_v32, %v2373_v32 }
 0x748   :  { %v4511_v46 = vpop.eup %4510 }
 0x749   :  { %v2374_v59 = vmul.f32 %v4511_v46, %v5168_v17  ;;  %4271 = vmatmul.mubr.msk.bf16.vlgmr.msra.gmra.mrb[80].mxu0 %vm533_vm4, %v2381_v11  ;;  %v2355_v0 = vpop.xlane.xlu1 %2354 }
 0x74a   :  { %4281 = vmatpush3.bf16.msra.mxu0 %v2491_v56  ;;  %4516 = vrcp.f32 %v2355_v0  ;;  %4282 = vmatprep.mubr.msk.bf16.mxu0 %vm4557_vm0, %v4556_v3 }
 0x74b   :  { %v2382_v34 = vpack.c.bf16 %v2374_v59, %v2374_v59  ;;  %4292 = vmatprep.subr.bf16.mxu0 %v4556_v3 }
 0x74c   :  { %v4513_v14 = vpop.eup %4512 }
 0x74d   :  { %v2375_v44 = vmul.f32 %v4513_v14, %v5172_v35  ;;  %4277 = vmatmul.mubr.msk.bf16.vlgmr.msra.gmra.mrb[80].mxu1 %vm533_vm4, %v2382_v34  ;;  %v2358_v51 = vpop.xlane.xlu0 %2357  ;;  %v2726_v60 = vpop.permute.xlu1 %2725 }
 0x74e   :  { %4287 = vmatpush3.bf16.msra.mxu1 %v2539_v37  ;;  %4518 = vrcp.f32 %v2358_v51  ;;  %4288 = vmatprep.mubr.msk.bf16.mxu1 %vm4557_vm0, %v4556_v3  ;;  %v2731_v22 = vsel %vm537_vm2, %v2726_v60, 0 }
 0x74f   :  { %v2383_v17 = vpack.c.bf16 %v2375_v44, %v2375_v44  ;;  %4298 = vmatprep.subr.bf16.mxu1 %v4556_v3 }
 0x750   :  { %v4515_v20 = vpop.eup %4514 }
 0x751   :  { %v2376_v42 = vmul.f32 %v4515_v20, %v5176_v16  ;;  %4283 = vmatmul.mubr.msk.bf16.vlgmr.msra.gmra.mrb[84].mxu0 %vm533_vm4, %v2383_v17  ;;  %v2678_v45 = vpop.permute.xlu0 %2677 }
 0x752   :  { %4293 = vmatpush3.bf16.msra.mxu0 %v2587_v10  ;;  %4294 = vmatprep.mubr.msk.bf16.mxu0 %vm4557_vm0, %v4556_v3  ;;  %v2683_v50 = vsel %vm537_vm2, %v2678_v45, 0 }
 0x753   :  { %v2384_v53 = vpack.c.bf16 %v2376_v42, %v2376_v42  ;;  %4304 = vmatprep.subr.bf16.mxu0 %v4556_v3 }
 0x754   :  { %v4517_v35 = vpop.eup %4516 }
 0x755   :  { %v2377_v63 = vmul.f32 %v4517_v35, %v5180_v13  ;;  %4289 = vmatmul.mubr.msk.bf16.vlgmr.msra.gmra.mrb[84].mxu1 %vm533_vm4, %v2384_v53 }
 0x756   :  { %4299 = vmatpush3.bf16.msra.mxu1 %v2635_v54  ;;  %4300 = vmatprep.mubr.msk.bf16.mxu1 %vm4557_vm0, %v4556_v3 }
 0x757   :  { %v2385_v16 = vpack.c.bf16 %v2377_v63, %v2377_v63  ;;  %4310 = vmatprep.subr.bf16.mxu1 %v4556_v3 }
 0x758   :  { %v4519_v8 = vpop.eup %4518 }
 0x759   :  { %v2378_v47 = vmul.f32 %v4519_v8, %v5184_v23  ;;  %4295 = vmatmul.mubr.msk.bf16.vlgmr.msra.gmra.mrb[88].mxu0 %vm533_vm4, %v2385_v16 }
 0x75a   :  { %4305 = vmatpush3.bf16.msra.mxu0 %v2683_v50  ;;  %4306 = vmatprep.mubr.msk.bf16.mxu0 %vm4557_vm0, %v4556_v3 }
 0x75b   :  { %v2386_v13 = vpack.c.bf16 %v2378_v47, %v2378_v47  ;;  %4316 = vmatprep.subr.bf16.mxu0 %v4556_v3 }
 0x75d   :  { %4301 = vmatmul.mubr.msk.bf16.vlgmr.msra.gmra.mrb[88].mxu1 %vm533_vm4, %v2386_v13 }
 0x75e   :  { %4311 = vmatpush3.bf16.msra.mxu1 %v2731_v22  ;;  %4312 = vmatprep.mubr.msk.bf16.mxu1 %vm4557_vm0, %v4556_v3 }
 0x75f   :  { %4322 = vmatprep.subr.bf16.mxu1 %v4556_v3 }
 0x77e   :  { %v2361_v23 = vpop.xlane.xlu1 %2360 }
 0x77f   :  { %4520 = vrcp.f32 %v2361_v23 }
 0x782   :  { %v2364_v49 = vpop.xlane.xlu0 %2363  ;;  %v2862_v25 = vpop.permute.xlu1 %2861 }
 0x783   :  { %4522 = vrcp.f32 %v2364_v49  ;;  %v2867_v59 = vsel %vm44_vm1, %v2862_v25, 0 }
 0x786   :  { %v2810_v30 = vpop.permute.xlu0 %2809  ;;  %v2859_v31 = vpop.permute.xlu1 %2858 }
 0x787   :  { %v2815_v7 = vsel %vm44_vm1, %v2810_v30, 0 }
 0x789   :  { %v4521_v27 = vpop.eup %4520 }
 0x78a   :  { %v2379_v41 = vmul.f32 %v4521_v27, %v5193_v40  ;;  %v2807_v33 = vpop.permute.xlu0 %2806  ;;  %v2966_v11 = vpop.permute.xlu1 %2965 }
 0x78b   :  { %v2971_v37 = vsel %vm44_vm1, %v2966_v11, 0 }
 0x78c   :  { %v2387_v32 = vpack.c.bf16 %v2379_v41, %v2379_v41 }
 0x78d   :  { %v4523_v12 = vpop.eup %4522 }
 0x78e   :  { %v2380_v46 = vmul.f32 %v4523_v12, %v5197_v9  ;;  %4307 = vmatmul.mubr.msk.bf16.vlgmr.msra.gmra.mrb[92].mxu0 %vm533_vm4, %v2387_v32  ;;  %v2914_v56 = vpop.permute.xlu0 %2913  ;;  %v2963_v9 = vpop.permute.xlu1 %2962 }
 0x78f   :  { %4317 = vmatpush3.bf16.xpose.msra.mxu0 %v2815_v7  ;;  %4318 = vmatprep.mubr.msk.bf16.mxu0 %vm4557_vm0, %v4556_v3  ;;  %v2919_v34 = vsel %vm44_vm1, %v2914_v56, 0 }
 0x790   :  { %v2388_v0 = vpack.c.bf16 %v2380_v46, %v2380_v46  ;;  %4328 = vmatprep.subr.bf16.mxu0 %v4556_v3 }
 0x792   :  { %4313 = vmatmul.mubr.msk.bf16.vlgmr.msra.gmra.mrb[92].mxu1 %vm533_vm4, %v2388_v0  ;;  %v2911_v40 = vpop.permute.xlu0 %2910  ;;  %v3070_v44 = vpop.permute.xlu1 %3069 }
 0x793   :  { %4323 = vmatpush3.bf16.xpose.msra.mxu1 %v2867_v59  ;;  %4324 = vmatprep.mubr.msk.bf16.mxu1 %vm4557_vm0, %v4556_v3  ;;  %v3075_v10 = vsel %vm44_vm1, %v3070_v44, 0 }
 0x794   :  { %4334 = vmatprep.subr.bf16.mxu1 %v4556_v3 }
 0x796   :  { %4319 = vmatmul.mubr.msk.bf16.vlgmr.msra.gmra.mrb[96].mxu0 %vm44_vm1, %v2807_v33  ;;  %v3018_v14 = vpop.permute.xlu0 %3017  ;;  %v3067_v20 = vpop.permute.xlu1 %3066 }
 0x797   :  { %4329 = vmatpush3.bf16.xpose.msra.mxu0 %v2919_v34  ;;  %4330 = vmatprep.mubr.msk.bf16.mxu0 %vm4557_vm0, %v4556_v3  ;;  %v3023_v17 = vsel %vm44_vm1, %v3018_v14, 0 }
 0x798   :  { %4340 = vmatprep.subr.bf16.mxu0 %v4556_v3 }
 0x79a   :  { %4325 = vmatmul.mubr.msk.bf16.vlgmr.msra.gmra.mrb[96].mxu1 %vm44_vm1, %v2859_v31  ;;  %v3015_v51 = vpop.permute.xlu0 %3014  ;;  %v3174_v35 = vpop.permute.xlu1 %3173 }
 0x79b   :  { %4335 = vmatpush3.bf16.xpose.msra.mxu1 %v2971_v37  ;;  %4336 = vmatprep.mubr.msk.bf16.mxu1 %vm4557_vm0, %v4556_v3  ;;  %v3179_v54 = vsel %vm44_vm1, %v3174_v35, 0 }
 0x79c   :  { %4346 = vmatprep.subr.bf16.mxu1 %v4556_v3 }
 0x79e   :  { %4331 = vmatmul.mubr.msk.bf16.vlgmr.msra.gmra.mrb[100].mxu0 %vm44_vm1, %v2911_v40  ;;  %v3122_v42 = vpop.permute.xlu0 %3121  ;;  %v3171_v45 = vpop.permute.xlu1 %3170 }
 0x79f   :  { %4341 = vmatpush3.bf16.xpose.msra.mxu0 %v3023_v17  ;;  %4342 = vmatprep.mubr.msk.bf16.mxu0 %vm4557_vm0, %v4556_v3  ;;  %v3127_v53 = vsel %vm44_vm1, %v3122_v42, 0 }
 0x7a0   :  { %4352 = vmatprep.subr.bf16.mxu0 %v4556_v3 }
 0x7a2   :  { %4337 = vmatmul.mubr.msk.bf16.vlgmr.msra.gmra.mrb[100].mxu1 %vm44_vm1, %v2963_v9  ;;  %v3119_v63 = vpop.permute.xlu0 %3118  ;;  %v3318_v31 = vpop.permute.xlu1 %3317 }
 0x7a3   :  { %4347 = vmatpush3.bf16.xpose.msra.mxu1 %v3075_v10  ;;  %4348 = vmatprep.mubr.msk.bf16.mxu1 %vm4557_vm0, %v4556_v3  ;;  %v3323_v41 = vsel %vm537_vm2, %v3318_v31, 0 }
 0x7a4   :  { %4358 = vmatprep.subr.bf16.mxu1 %v4556_v3 }
 0x7a6   :  { %4343 = vmatmul.mubr.msk.bf16.vlgmr.msra.gmra.mrb[104].mxu0 %vm44_vm1, %v3015_v51 }
 0x7a7   :  { %4353 = vmatpush3.bf16.xpose.msra.mxu0 %v3127_v53  ;;  %4354 = vmatprep.mubr.msk.bf16.mxu0 %vm4557_vm0, %v4556_v3 }
 0x7a8   :  { %4364 = vmatprep.subr.bf16.mxu0 %v4556_v3 }
 0x7aa   :  { %4349 = vmatmul.mubr.msk.bf16.vlgmr.msra.gmra.mrb[104].mxu1 %vm44_vm1, %v3067_v20 }
 0x7ab   :  { %4359 = vmatpush3.bf16.xpose.msra.mxu1 %v3179_v54  ;;  %4360 = vmatprep.mubr.msk.bf16.mxu1 %vm4557_vm0, %v4556_v3 }
 0x7ac   :  { %4370 = vmatprep.subr.bf16.mxu1 %v4556_v3 }
 0x7ae   :  { %4355 = vmatmul.mubr.msk.bf16.vlgmr.msra.gmra.mrb[108].mxu0 %vm44_vm1, %v3119_v63 }
 0x7af   :  { %4366 = vmatprep.mubr.msk.bf16.mxu0 %vm4557_vm0, %v4556_v3  ;;  %4365 = vmatpush3.bf16.msra.mxu0 %v3323_v41 }
 0x7b0   :  { %4376 = vmatprep.subr.bf16.mxu0 %v4556_v3 }
 0x7b2   :  { %4361 = vmatmul.mubr.msk.bf16.vlgmr.msra.gmra.mrb[108].mxu1 %vm44_vm1, %v3171_v45 }
 0x7b3   :  { %4372 = vmatprep.mubr.msk.bf16.mxu1 %vm4557_vm0, %v4556_v3 }
 0x81c   :  { %v5353_v16 = vpop.f32.mrb[80].mxu0 }
 0x81d   :  { %v4272_v8 = vpop.f32.mrb[81].mxu0 }
 0x81e   :  { %v2434_v47 = vpop.f32.mrb[82].mxu0 }
 0x81f   :  { %v4273_v50 = vpop.f32.mrb[83].mxu0 }
 0x820   :  { %v5355_v60 = vpop.f32.mrb[80].mxu1 }
 0x821   :  { %v4278_v13 = vpop.f32.mrb[81].mxu1 }
 0x822   :  { %v2482_v22 = vpop.f32.mrb[82].mxu1 }
 0x823   :  { %v4279_v23 = vpop.f32.mrb[83].mxu1 }
 0x824   :  { %v5357_v49 = vpop.f32.mrb[84].mxu0 }
 0x825   :  { %v4284_v25 = vpop.f32.mrb[85].mxu0 }
 0x826   :  { %v2530_v30 = vpop.f32.mrb[86].mxu0 }
 0x827   :  { %v4285_v27 = vpop.f32.mrb[87].mxu0 }
 0x828   :  { %v5360_v33 = vpop.f32.mrb[84].mxu1 }
 0x829   :  { %v4290_v57 = vpop.f32.mrb[85].mxu1 }
 0x82a   :  { %v2578_v7 = vpop.f32.mrb[86].mxu1 }
 0x82b   :  { %v4291_v32 = vpop.f32.mrb[87].mxu1 }
 0x82c   :  { %v5363_v12 = vpop.f32.mrb[88].mxu0 }
 0x82d   :  { %v4296_v11 = vpop.f32.mrb[89].mxu0 }
 0x82e   :  { %v2626_v46 = vpop.f32.mrb[90].mxu0 }
 0x82f   :  { %v4297_v56 = vpop.f32.mrb[91].mxu0 }
 0x830   :  { %v5365_v59 = vpop.f32.mrb[88].mxu1 }
 0x831   :  { %v4302_v0 = vpop.f32.mrb[89].mxu1 }
 0x832   :  { %v2674_v40 = vpop.f32.mrb[90].mxu1 }
 0x833   :  { %v4303_v9 = vpop.f32.mrb[91].mxu1 }
 0x861   :  { %v5367_v34 = vpop.f32.mrb[92].mxu0 }
 0x862   :  { %v4308_v14 = vpop.f32.mrb[93].mxu0 }
 0x863   :  { %v2722_v37 = vpop.f32.mrb[94].mxu0 }
 0x864   :  { %v4309_v44 = vpop.f32.mrb[95].mxu0 }
 0x865   :  { %v5369_v51 = vpop.f32.mrb[92].mxu1 }
 0x866   :  { %v4314_v17 = vpop.f32.mrb[93].mxu1 }
 0x867   :  { %v2770_v20 = vpop.f32.mrb[94].mxu1 }
 0x868   :  { %v4315_v10 = vpop.f32.mrb[95].mxu1 }
 0x869   :  { %v2851_v42 = vpop.f32.mrb[96].mxu0 }
 0x86a   :  { %v4320_v53 = vpop.f32.mrb[97].mxu0  ;;  %v3221_v35 = vsel %vm434_vm3, %v2851_v42, -inf }
 0x86b   :  { %3222 = vmax.xlane.f32.xlu0 %v3221_v35  ;;  %v2854_v54 = vpop.f32.mrb[98].mxu0 }
 0x86c   :  { %v4321_v63 = vpop.f32.mrb[99].mxu0 }
 0x86d   :  { %v2903_v45 = vpop.f32.mrb[96].mxu1 }
 0x86e   :  { %v4326_v8 = vpop.f32.mrb[97].mxu1  ;;  %v3224_v47 = vsel %vm434_vm3, %v2903_v45, -inf }
 0x86f   :  { %3225 = vmax.xlane.f32.xlu1 %v3224_v47  ;;  %v2906_v50 = vpop.f32.mrb[98].mxu1 }
 0x870   :  { %v4327_v13 = vpop.f32.mrb[99].mxu1 }
 0x871   :  { %v2955_v22 = vpop.f32.mrb[100].mxu0 }
 0x872   :  { %v4332_v23 = vpop.f32.mrb[101].mxu0  ;;  %v3227_v25 = vsel %vm434_vm3, %v2955_v22, -inf }
 0x873   :  { %3228 = vmax.xlane.f32.xlu0 %v3227_v25  ;;  %v2958_v30 = vpop.f32.mrb[102].mxu0 }
 0x874   :  { %v4333_v31 = vpop.f32.mrb[103].mxu0 }
 0x875   :  { %v3007_v27 = vpop.f32.mrb[100].mxu1 }
 0x876   :  { %v4338_v41 = vpop.f32.mrb[101].mxu1  ;;  %v3230_v57 = vsel %vm434_vm3, %v3007_v27, -inf }
 0x877   :  { %v3010_v7 = vpop.f32.mrb[102].mxu1  ;;  %3231 = vmax.xlane.f32.xlu0 %v3230_v57 }
 0x878   :  { %v4339_v32 = vpop.f32.mrb[103].mxu1 }
 0x879   :  { %v5375_v11 = vpop.f32.mrb[104].mxu0 }
 0x87a   :  { %v3233_v46 = vsel %vm434_vm3, %v5375_v11, -inf  ;;  %v4344_v56 = vpop.f32.mrb[105].mxu0 }
 0x87b   :  { %3234 = vmax.xlane.f32.xlu1 %v3233_v46  ;;  %v3062_v0 = vpop.f32.mrb[106].mxu0 }
 0x87c   :  { %v4345_v40 = vpop.f32.mrb[107].mxu0 }
 0x87d   :  { %v5379_v9 = vpop.f32.mrb[104].mxu1 }
 0x87e   :  { %v3236_v14 = vsel %vm434_vm3, %v5379_v9, -inf  ;;  %v4350_v37 = vpop.f32.mrb[105].mxu1 }
 0x87f   :  { %3237 = vmax.xlane.f32.xlu0 %v3236_v14  ;;  %v3114_v44 = vpop.f32.mrb[106].mxu1 }
 0x880   :  { %v4351_v17 = vpop.f32.mrb[107].mxu1 }
 0x881   :  { %v3163_v20 = vpop.f32.mrb[108].mxu0 }
 0x882   :  { %v3239_v10 = vsel %vm434_vm3, %v3163_v20, -inf  ;;  %v4356_v53 = vpop.f32.mrb[109].mxu0 }
 0x883   :  { %3240 = vmax.xlane.f32.xlu1 %v3239_v10  ;;  %v3166_v35 = vpop.f32.mrb[110].mxu0 }
 0x884   :  { %v4357_v54 = vpop.f32.mrb[111].mxu0 }
 0x885   :  { %v3215_v63 = vpop.f32.mrb[108].mxu1 }
 0x886   :  { %v3242_v8 = vsel %vm434_vm3, %v3215_v63, -inf  ;;  %v4362_v47 = vpop.f32.mrb[109].mxu1 }
 0x887   :  { %3243 = vmax.xlane.f32.xlu0 %v3242_v8  ;;  %v3218_v50 = vpop.f32.mrb[110].mxu1 }
 0x888   :  { %v4363_v13 = vpop.f32.mrb[111].mxu1 }
 0x894   :  { %3413 = vrot.lane.b32.xlu1 %v5233_v39, %s4568_s0 }
 0x898   :  { %3461 = vrot.lane.b32.xlu1 %v5215_v2, %s4568_s0 }
 0x89d   :  { %3365 = vrot.lane.b32.xlu0 %v5204_v28, %s4568_s0 }
 0x8f8   :  { %v3223_v23 = vpop.xlane.xlu0 %3222 }
 0x8f9   :  { %v3245_v25 = vsub.f32 %v2851_v42, %v3223_v23 }
 0x8fb   :  { %v3253_v30 = vmul.f32 1.442695, %v3245_v25 }
 0x8fc   :  { %v3226_v31 = vpop.xlane.xlu1 %3225 }
 0x8fd   :  { %4524 = vpow2.f32 %v3253_v30  ;;  %v3246_v41 = vsub.f32 %v2903_v45, %v3226_v31 }
 0x8ff   :  { %v3255_v57 = vmul.f32 1.442695, %v3246_v41 }
 0x900   :  { %v3229_v7 = vpop.xlane.xlu0 %3228 }
 0x901   :  { %4526 = vpow2.f32 %v3255_v57  ;;  %v3247_v32 = vsub.f32 %v2955_v22, %v3229_v7 }
 0x903   :  { %v3257_v46 = vmul.f32 1.442695, %v3247_v32 }
 0x904   :  { %v3232_v56 = vpop.xlane.xlu0 %3231 }
 0x905   :  { %4528 = vpow2.f32 %v3257_v46  ;;  %v3248_v39 = vsub.f32 %v3007_v27, %v3232_v56 }
 0x907   :  { %v5391_v0 = vpop.eup %4524  ;;  %v3259_v2 = vmul.f32 1.442695, %v3248_v39 }
 0x908   :  { %v3269_v28 = vsel %vm434_vm3, %v5391_v0, 0.0  ;;  %v3235_v53 = vpop.xlane.xlu1 %3234 }
 0x909   :  { %4530 = vpow2.f32 %v3259_v2  ;;  %3270 = vadd.xlane.f32.xlu1 %v3269_v28  ;;  %v3249_v35 = vsub.f32 %v5375_v11, %v3235_v53 }
 0x90b   :  { %v5395_v42 = vpop.eup %4526  ;;  %v3261_v47 = vmul.f32 1.442695, %v3249_v35 }
 0x90c   :  { %v3272_v45 = vsel %vm434_vm3, %v5395_v42, 0.0  ;;  %v3238_v22 = vpop.xlane.xlu0 %3237 }
 0x90d   :  { %3273 = vadd.xlane.f32.xlu0 %v3272_v45  ;;  %v3250_v8 = vsub.f32 %v5379_v9, %v3238_v22  ;;  %4532 = vpow2.f32 %v3261_v47 }
 0x90f   :  { %v5399_v40 = vpop.eup %4528  ;;  %v3263_v13 = vmul.f32 1.442695, %v3250_v8 }
 0x910   :  { %v3275_v27 = vsel %vm434_vm3, %v5399_v40, 0.0  ;;  %v3241_v54 = vpop.xlane.xlu1 %3240 }
 0x911   :  { %3276 = vadd.xlane.f32.xlu1 %v3275_v27  ;;  %v3251_v50 = vsub.f32 %v3163_v20, %v3241_v54  ;;  %4534 = vpow2.f32 %v3263_v13 }
 0x913   :  { %v5403_v14 = vpop.eup %4530  ;;  %v3265_v23 = vmul.f32 1.442695, %v3251_v50 }
 0x914   :  { %v3244_v37 = vpop.xlane.xlu0 %3243  ;;  %v3278_v44 = vsel %vm434_vm3, %v5403_v14, 0.0 }
 0x915   :  { %3279 = vadd.xlane.f32.xlu0 %v3278_v44  ;;  %v3252_v25 = vsub.f32 %v3215_v63, %v3244_v37  ;;  %4536 = vpow2.f32 %v3265_v23 }
 0x917   :  { %v3267_v30 = vmul.f32 1.442695, %v3252_v25 }
 0x918   :  { %v3366_v17 = vpop.permute.xlu0 %3365 }
 0x919   :  { %v3371_v10 = vsel %vm537_vm2, %v3366_v17, 0  ;;  %4538 = vpow2.f32 %v3267_v30 }
 0x91a   :  { %4371 = vmatpush3.bf16.msra.mxu1 %v3371_v10 }
 0x91b   :  { %4382 = vmatprep.subr.bf16.mxu1 %v4556_v3 }
 0x922   :  { %3557 = vrot.lane.b32.xlu1 %v5230_v4, %s4568_s0  ;;  %v5415_v4 = vpop.eup %4532 }
 0x923   :  { %v5417_v31 = vpop.eup %4534 }
 0x924   :  { %v5421_v11 = vpop.eup %4536  ;;  %v3284_v9 = vsel %vm434_vm3, %v5417_v31, 0.0 }
 0x925   :  { %v3287_v20 = vsel %vm434_vm3, %v5421_v11, 0.0  ;;  %v5427_v63 = vpop.eup %4538 }
 0x926   :  { %v3290_v41 = vsel %vm434_vm3, %v5427_v63, 0.0 }
 0x92b   :  { %3509 = vrot.lane.b32.xlu0 %v5249_v15, %s4568_s0  ;;  %v3281_v15 = vsel %vm434_vm3, %v5415_v4, 0.0 }
 0x946   :  { %3282 = vadd.xlane.f32.xlu1 %v3281_v15 }
 0x94a   :  { %3285 = vadd.xlane.f32.xlu0 %v3284_v9  ;;  %3288 = vadd.xlane.f32.xlu1 %v3287_v20 }
 0x94e   :  { %3291 = vadd.xlane.f32.xlu0 %v3290_v41 }
 0x95b   :  { %3653 = vrot.lane.b32.xlu1 %v5246_v36, %s4568_s0 }
 0x95f   :  { %3711 = vrot.lane.b32.xlu1 %v5127_v55, %s4569_s22 }
 0x963   :  { %3715 = vrot.lane.b32.xlu1 %v5132_v29, %s4569_s22 }
 0x964   :  { %3605 = vrot.lane.b32.xlu0 %v5260_v24, %s4568_s0 }
 0x967   :  { %3719 = vrot.lane.b32.xlu1 %v5139_v38, %s4569_s22 }
 0x968   :  { %3709 = vrot.lane.b32.xlu0 %v5125_v5, %s4569_s22  ;;  %v3414_v5 = vpop.permute.xlu1 %3413 }
 0x96b   :  { %3723 = vrot.lane.b32.xlu1 %v5143_v48, %s4569_s22 }
 0x96c   :  { %3713 = vrot.lane.b32.xlu0 %v5129_v6, %s4569_s22  ;;  %v3462_v55 = vpop.permute.xlu1 %3461 }
 0x96f   :  { %3743 = vrot.lane.b32.xlu1 %v5355_v60, %s4570_s23 }
 0x970   :  { %3717 = vrot.lane.b32.xlu0 %v5137_v52, %s4569_s22 }
 0x973   :  { %3747 = vrot.lane.b32.xlu1 %v5360_v33, %s4570_s23 }
 0x974   :  { %3721 = vrot.lane.b32.xlu0 %v5141_v43, %s4569_s22 }
 0x977   :  { %3751 = vrot.lane.b32.xlu1 %v5365_v59, %s4570_s23 }
 0x978   :  { %3741 = vrot.lane.b32.xlu0 %v5353_v16, %s4570_s23  ;;  %v3419_v16 = vsel %vm537_vm2, %v3414_v5, 0 }
 0x97b   :  { %3755 = vrot.lane.b32.xlu1 %v5369_v51, %s4570_s23 }
 0x97c   :  { %3745 = vrot.lane.b32.xlu0 %v5357_v49, %s4570_s23 }
 0x980   :  { %3749 = vrot.lane.b32.xlu0 %v5363_v12, %s4570_s23  ;;  %v3467_v12 = vsel %vm537_vm2, %v3462_v55, 0 }
 0x984   :  { %3753 = vrot.lane.b32.xlu0 %v5367_v34, %s4570_s23 }
 0x996   :  { %v3271_v6 = vpop.xlane.xlu1 %3270 }
 0x997   :  { %4540 = vrcp.f32 %v3271_v6 }
 0x99a   :  { %v3274_v29 = vpop.xlane.xlu0 %3273 }
 0x99b   :  { %4542 = vrcp.f32 %v3274_v29 }
 0x99e   :  { %v3277_v52 = vpop.xlane.xlu1 %3276 }
 0x99f   :  { %4544 = vrcp.f32 %v3277_v52 }
 0x9a1   :  { %v4541_v38 = vpop.eup %4540 }
 0x9a2   :  { %v3301_v43 = vmul.f32 %v4541_v38, %v5391_v0  ;;  %v3280_v48 = vpop.xlane.xlu0 %3279  ;;  %v3558_v46 = vpop.permute.xlu1 %3557 }
 0x9a3   :  { %4546 = vrcp.f32 %v3280_v48  ;;  %v3563_v39 = vsel %vm537_vm2, %v3558_v46, 0 }
 0x9a4   :  { %v3309_v36 = vpack.c.bf16 %v3301_v43, %v3301_v43 }
 0x9a5   :  { %v4543_v24 = vpop.eup %4542 }
 0x9a6   :  { %v3302_v60 = vmul.f32 %v4543_v24, %v5395_v42  ;;  %4367 = vmatmul.mubr.msk.bf16.vlgmr.msra.gmra.mrb[112].mxu0 %vm533_vm4, %v3309_v36  ;;  %v3510_v34 = vpop.permute.xlu0 %3509 }
 0x9a7   :  { %4377 = vmatpush3.bf16.msra.mxu0 %v3419_v16  ;;  %4378 = vmatprep.mubr.msk.bf16.mxu0 %vm4557_vm0, %v4556_v3  ;;  %v3515_v32 = vsel %vm537_vm2, %v3510_v34, 0 }
 0x9a8   :  { %v3310_v49 = vpack.c.bf16 %v3302_v60, %v3302_v60  ;;  %4388 = vmatprep.subr.bf16.mxu0 %v4556_v3 }
 0x9a9   :  { %v4545_v33 = vpop.eup %4544 }
 0x9aa   :  { %v3303_v59 = vmul.f32 %v4545_v33, %v5399_v40  ;;  %4373 = vmatmul.mubr.msk.bf16.vlgmr.msra.gmra.mrb[112].mxu1 %vm533_vm4, %v3310_v49 }
 0x9ab   :  { %4383 = vmatpush3.bf16.msra.mxu1 %v3467_v12  ;;  %4384 = vmatprep.mubr.msk.bf16.mxu1 %vm4557_vm0, %v4556_v3 }
 0x9ac   :  { %v3311_v51 = vpack.c.bf16 %v3303_v59, %v3303_v59  ;;  %4394 = vmatprep.subr.bf16.mxu1 %v4556_v3 }
 0x9ad   :  { %v4547_v57 = vpop.eup %4546 }
 0x9ae   :  { %v3304_v7 = vmul.f32 %v4547_v57, %v5403_v14  ;;  %4379 = vmatmul.mubr.msk.bf16.vlgmr.msra.gmra.mrb[116].mxu0 %vm533_vm4, %v3311_v51 }
 0x9af   :  { %4389 = vmatpush3.bf16.msra.mxu0 %v3515_v32  ;;  %4390 = vmatprep.mubr.msk.bf16.mxu0 %vm4557_vm0, %v4556_v3 }
 0x9b0   :  { %v3312_v56 = vpack.c.bf16 %v3304_v7, %v3304_v7  ;;  %4400 = vmatprep.subr.bf16.mxu0 %v4556_v3 }
 0x9b2   :  { %4385 = vmatmul.mubr.msk.bf16.vlgmr.msra.gmra.mrb[116].mxu1 %vm533_vm4, %v3312_v56 }
 0x9b3   :  { %4395 = vmatpush3.bf16.msra.mxu1 %v3563_v39  ;;  %4396 = vmatprep.mubr.msk.bf16.mxu1 %vm4557_vm0, %v4556_v3 }
 0x9b4   :  { %4406 = vmatprep.subr.bf16.mxu1 %v4556_v3 }
 0x9d3   :  { %v3283_v0 = vpop.xlane.xlu1 %3282 }
 0x9d4   :  { %4548 = vrcp.f32 %v3283_v0 }
 0x9d7   :  { %v3286_v2 = vpop.xlane.xlu0 %3285  ;;  %v3289_v28 = vpop.xlane.xlu1 %3288 }
 0x9d8   :  { %4550 = vrcp.f32 %v3286_v2 }
 0x9d9   :  { %4552 = vrcp.f32 %v3289_v28 }
 0x9db   :  { %v3292_v42 = vpop.xlane.xlu0 %3291  ;;  %v3654_v45 = vpop.permute.xlu1 %3653 }
 0x9dc   :  { %4554 = vrcp.f32 %v3292_v42  ;;  %v3659_v47 = vsel %vm537_vm2, %v3654_v45, 0 }
 0x9de   :  { %v4549_v40 = vpop.eup %4548 }
 0x9df   :  { %v3305_v22 = vmul.f32 %v4549_v40, %v5415_v4  ;;  %v3606_v27 = vpop.permute.xlu0 %3605  ;;  %v5476_v14 = vpop.permute.xlu1 %3711 }
 0x9e0   :  { %v3611_v37 = vsel %vm537_vm2, %v3606_v27, 0 }
 0x9e1   :  { %v3313_v44 = vpack.c.bf16 %v3305_v22, %v3305_v22 }
 0x9e2   :  { %v4551_v17 = vpop.eup %4550 }
 0x9e3   :  { %v4553_v10 = vpop.eup %4552  ;;  %v3306_v53 = vmul.f32 %v4551_v17, %v5417_v31  ;;  %v5480_v35 = vpop.permute.xlu0 %3709  ;;  %4391 = vmatmul.mubr.msk.bf16.vlgmr.msra.gmra.mrb[120].mxu0 %vm533_vm4, %v3313_v44 }
 0x9e4   :  { %v5483_v54 = vpop.permute.xlu1 %3715  ;;  %4401 = vmatpush3.bf16.msra.mxu0 %v3611_v37  ;;  %4402 = vmatprep.mubr.msk.bf16.mxu0 %vm4557_vm0, %v4556_v3  ;;  %v3307_v8 = vmul.f32 %v4553_v10, %v5421_v11 }
 0x9e5   :  { %v3314_v50 = vpack.c.bf16 %v3306_v53, %v3306_v53 }
 0x9e6   :  { %v4555_v13 = vpop.eup %4554  ;;  %v3315_v31 = vpack.c.bf16 %v3307_v8, %v3307_v8 }
 0x9e7   :  { %v5489_v23 = vpop.permute.xlu0 %3713  ;;  %4397 = vmatmul.mubr.msk.bf16.vlgmr.msra.gmra.mrb[120].mxu1 %vm533_vm4, %v3314_v50  ;;  %v3308_v4 = vmul.f32 %v4555_v13, %v5427_v63  ;;  %v3797_v13 = vsel %vm44_vm1, %v4891_v61, %v5480_v35 }
 0x9e8   :  { %v3720_v25 = vpop.permute.xlu1 %3719  ;;  %4407 = vmatpush3.bf16.msra.mxu1 %v3659_v47  ;;  %4408 = vmatprep.mubr.msk.bf16.mxu1 %vm4557_vm0, %v4556_v3  ;;  %v3799_v35 = vsel %vm44_vm1, %v4895_v21, %v5489_v23 }
 0x9e9   :  { %v3802_v30 = vsel %vm44_vm1, %v4905_v18, %v3720_v25  ;;  %v3316_v41 = vpack.c.bf16 %v3308_v4, %v3308_v4 }
 0x9eb   :  { %v3718_v15 = vpop.permute.xlu0 %3717  ;;  %4403 = vmatmul.mubr.msk.bf16.vlgmr.msra.gmra.mrb[124].mxu0 %vm533_vm4, %v3315_v31  ;;  %v3798_v31 = vsel %vm44_vm1, %v4893_v1, %v5476_v14  ;;  %v3800_v14 = vsel %vm44_vm1, %v4898_v19, %v5483_v54 }
 0x9ec   :  { %v3724_v11 = vpop.permute.xlu1 %3723  ;;  %v3801_v9 = vsel %vm44_vm1, %v4903_v58, %v3718_v15 }
 0x9ed   :  { %v3804_v20 = vsel %vm44_vm1, %v4909_v26, %v3724_v11 }
 0x9ef   :  { %v3722_v5 = vpop.permute.xlu0 %3721  ;;  %4409 = vmatmul.mubr.msk.bf16.vlgmr.msra.gmra.mrb[124].mxu1 %vm533_vm4, %v3316_v41 }
 0x9f0   :  { %v5503_v18 = vpop.permute.xlu1 %3743  ;;  %v3803_v3 = vsel %vm44_vm1, %v4907_v62, %v3722_v5 }
 0x9f1   :  { %v3807_v15 = vsel %vm3805_vm5, %v3798_v31, %v5503_v18 }
 0x9f3   :  { %v3742_v63 = vpop.permute.xlu0 %3741 }
 0x9f4   :  { %v5507_v55 = vpop.permute.xlu1 %3747  ;;  %v3806_v25 = vsel %vm3805_vm5, %v3797_v13, %v3742_v63 }
 0x9f5   :  { %v3809_v41 = vsel %vm3805_vm5, %v3800_v14, %v5507_v55 }
 0x9f7   :  { %v5509_v6 = vpop.permute.xlu0 %3745 }
 0x9f8   :  { %v3752_v29 = vpop.permute.xlu1 %3751 }
 0x9f9   :  { %v5512_v58 = vsel %vm3805_vm5, %v3802_v30, %v3752_v29 }
 0x9fb   :  { %v3750_v26 = vpop.permute.xlu0 %3749 }
 0x9fc   :  { %v3756_v52 = vpop.permute.xlu1 %3755  ;;  %v5515_v38 = vsel %vm3805_vm5, %v3801_v9, %v3750_v26  ;;  %v3808_v9 = vsel %vm3805_vm5, %v3799_v35, %v5509_v6 }
 0x9fd   :  { %v5518_v43 = vsel %vm3805_vm5, %v3804_v20, %v3756_v52 }
 0x9ff   :  { %v3754_v48 = vpop.permute.xlu0 %3753 }
 0xa00   :  { %v5521_v62 = vsel %vm3805_vm5, %v3803_v3, %v3754_v48 }
 0xa79   :  { %v3359_v36 = vpop.f32.mrb[112].mxu0 }
 0xa7a   :  { %3773 = vrot.lane.b32.xlu0 %v3359_v36, %s4571_s24  ;;  %v4368_v24 = vpop.f32.mrb[113].mxu0 }
 0xa7b   :  { %v3362_v16 = vpop.f32.mrb[114].mxu0 }
 0xa7c   :  { %v4369_v60 = vpop.f32.mrb[115].mxu0 }
 0xa7d   :  { %v3407_v49 = vpop.f32.mrb[112].mxu1 }
 0xa7e   :  { %v4374_v33 = vpop.f32.mrb[113].mxu1  ;;  %3775 = vrot.lane.b32.xlu1 %v3407_v49, %s4571_s24 }
 0xa7f   :  { %v3410_v12 = vpop.f32.mrb[114].mxu1 }
 0xa80   :  { %v4375_v59 = vpop.f32.mrb[115].mxu1 }
 0xa81   :  { %v3455_v34 = vpop.f32.mrb[116].mxu0 }
 0xa82   :  { %3777 = vrot.lane.b32.xlu0 %v3455_v34, %s4571_s24  ;;  %v4380_v51 = vpop.f32.mrb[117].mxu0 }
 0xa83   :  { %v3458_v57 = vpop.f32.mrb[118].mxu0 }
 0xa84   :  { %v4381_v7 = vpop.f32.mrb[119].mxu0 }
 0xa85   :  { %v3503_v32 = vpop.f32.mrb[116].mxu1 }
 0xa86   :  { %3779 = vrot.lane.b32.xlu1 %v3503_v32, %s4571_s24  ;;  %v4386_v46 = vpop.f32.mrb[117].mxu1 }
 0xa87   :  { %v3506_v56 = vpop.f32.mrb[118].mxu1 }
 0xa88   :  { %v4387_v39 = vpop.f32.mrb[119].mxu1 }
 0xab6   :  { %v3551_v0 = vpop.f32.mrb[120].mxu0 }
 0xab7   :  { %3781 = vrot.lane.b32.xlu0 %v3551_v0, %s4571_s24  ;;  %v4392_v2 = vpop.f32.mrb[121].mxu0 }
 0xab8   :  { %v3554_v28 = vpop.f32.mrb[122].mxu0 }
 0xab9   :  { %v4393_v42 = vpop.f32.mrb[123].mxu0 }
 0xaba   :  { %v3599_v45 = vpop.f32.mrb[120].mxu1 }
 0xabb   :  { %3783 = vrot.lane.b32.xlu1 %v3599_v45, %s4571_s24  ;;  %v4398_v40 = vpop.f32.mrb[121].mxu1 }
 0xabc   :  { %v3602_v22 = vpop.f32.mrb[122].mxu1 }
 0xabd   :  { %v4399_v27 = vpop.f32.mrb[123].mxu1 }
 0xabe   :  { %v3647_v37 = vpop.f32.mrb[124].mxu0 }
 0xabf   :  { %3785 = vrot.lane.b32.xlu0 %v3647_v37, %s4571_s24  ;;  %v4404_v44 = vpop.f32.mrb[125].mxu0 }
 0xac0   :  { %v3650_v17 = vpop.f32.mrb[126].mxu0 }
 0xac1   :  { %v4405_v10 = vpop.f32.mrb[127].mxu0 }
 0xac2   :  { %v3695_v53 = vpop.f32.mrb[124].mxu1 }
 0xac3   :  { %3787 = vrot.lane.b32.xlu1 %v3695_v53, %s4571_s24  ;;  %v4410_v8 = vpop.f32.mrb[125].mxu1 }
 0xac4   :  { %v3698_v47 = vpop.f32.mrb[126].mxu1 }
 0xac5   :  { %v4411_v50 = vpop.f32.mrb[127].mxu1 }
 0xaec   :  { %v3774_v30 = vpop.permute.xlu0 %3773 }
 0xaed   :  { %v3815_v4 = vsel %vm3814_vm6, %v3806_v25, %v3774_v30 }
 0xaee   :  { %3824 = vst.msk [vmem:[%s5595_s1] sm:$0x3] %vm3823_vm7, %v3815_v4 }
 0xaf0   :  { %v3776_v11 = vpop.permute.xlu1 %3775 }
 0xaf1   :  { %v3816_v61 = vsel %vm3814_vm6, %v3807_v15, %v3776_v11 }
 0xaf2   :  { %3825 = vst.msk [vmem:[%s5595_s1 + $0x2] sm:$0x3] %vm3823_vm7, %v3816_v61 }
 0xaf4   :  { %v3778_v20 = vpop.permute.xlu0 %3777 }
 0xaf5   :  { %v3817_v1 = vsel %vm3814_vm6, %v3808_v9, %v3778_v20 }
 0xaf6   :  { %3826 = vst.msk [vmem:[%s5595_s1 + $0x4] sm:$0x3] %vm3823_vm7, %v3817_v1 }
 0xaf8   :  { %v3780_v5 = vpop.permute.xlu1 %3779 }
 0xaf9   :  { %v3818_v21 = vsel %vm3814_vm6, %v3809_v41, %v3780_v5 }
 0xafa   :  { %3827 = vst.msk [vmem:[%s5595_s1 + $0x6] sm:$0x3] %vm3823_vm7, %v3818_v21 }
 0xb29   :  { %v3782_v23 = vpop.permute.xlu0 %3781 }
 0xb2a   :  { %v3819_v18 = vsel %vm3814_vm6, %v5515_v38, %v3782_v23 }
 0xb2b   :  { %3828 = vst.msk [vmem:[%s5595_s1 + $0x8] sm:$0x3] %vm3823_vm7, %v3819_v18 }
 0xb2d   :  { %v3784_v19 = vpop.permute.xlu1 %3783 }
 0xb2e   :  { %v3820_v54 = vsel %vm3814_vm6, %v5512_v58, %v3784_v19 }
 0xb2f   :  { %3829 = vst.msk [vmem:[%s5595_s1 + $0xa] sm:$0x3] %vm3823_vm7, %v3820_v54 }
 0xb31   :  { %v3786_v3 = vpop.permute.xlu0 %3785 }
 0xb32   :  { %v3821_v63 = vsel %vm3814_vm6, %v5521_v62, %v3786_v3 }
 0xb33   :  { %3830 = vst.msk [vmem:[%s5595_s1 + $0xc] sm:$0x3] %vm3823_vm7, %v3821_v63 }
 0xb35   :  { %v3788_v55 = vpop.permute.xlu1 %3787 }
 0xb36   :  { %v3822_v6 = vsel %vm3814_vm6, %v5518_v43, %v3788_v55 }
 0xb37   :  { %3831 = vst.msk [vmem:[%s5595_s1 + $0xe] sm:$0x3] %vm3823_vm7, %v3822_v6 }

// kernel: timesformer_forward.36
= control target key start
LH: loop header
LB: loop body
LE: loop exit
PB: predicated region body
PF: predicated region fallthrough
CT: control target
= control target key end

     0   :  { %vm33_vm0 = vcmask 261120   ;;  %vm90_vm1 = vcmask 257024   ;;  %s168_s1 = inlined_call_operand.vmem [shape: f32[32,32], index: 1, kind: input, shape index: {}]   ;;  %s169_s0 = inlined_call_operand.vmem [shape: f32[20,32], index: 0, kind: input, shape index: {}]   ;;  %s170_s2 = inlined_call_operand.vmem [shape: f32[1,32], index: 2, kind: input, shape index: {}]   ;;  %s171_s3 = inlined_call_operand.vmem [shape: f32[20,32], index: 3, kind: output, shape index: {}]  }
   0x1   :  { %v20_v0 = vld [vmem:[%s168_s1] sm:$0xff]  ;;  %v21_v1 = vld [vmem:[%s168_s1 + $0x8] sm:$0xff]  ;;  %v22_v2 = vld [vmem:[%s168_s1 + $0x10] sm:$0xff] }
   0x2   :  { %v24_v3 = vpack.c.bf16 %v21_v1, %v20_v0  ;;  %v23_v4 = vld [vmem:[%s168_s1 + $0x18] sm:$0xff]  ;;  %v15_v5 = vld [vmem:[%s169_s0] sm:$0xff]  ;;  %v16_v6 = vld [vmem:[%s169_s0 + $0x8] sm:$0xff] }
   0x3   :  { %v25_v7 = vpack.c.bf16 %v23_v4, %v22_v2  ;;  %v18_v8 = vpack.c.bf16 %v16_v6, %v15_v5  ;;  %v17_v9 = vld [vmem:[%s169_s0 + $0x10] sm:$0xf]  ;;  %v96_v11 = vld [vmem:[%s170_s2] ss:$0 sm:$0xff] }
   0x4   :  { %103 = vmatprep.subr.bf16.mxu0 %v24_v3  ;;  %v19_v10 = vpack.c.bf16 %v17_v9, %v17_v9 }
   0x5   :  { %104 = vmatpush3.bf16.msra.mxu0 %v24_v3  ;;  %107 = vmatprep.mubr.msk.bf16.mxu0 %vm33_vm0, %v18_v8 }
   0x6   :  { %105 = vmatprep.subr.bf16.mxu0 %v25_v7 }
   0x9   :  { %106 = vmatpush3.bf16.msra.mxu0 %v25_v7 }
   0xc   :  { %108 = vmatmul.mubr.msk.bf16.vlgmr.msra.gmra.mrb[0].mxu0 %vm33_vm0, %v19_v10 }
  0xdf   :  { %v109_v12 = vpop.f32.mrb[0].mxu0 }
  0xe0   :  { %v83_v13 = vadd.f32 %v109_v12, %v96_v11  ;;  %v74_v14 = vpop.f32.mrb[1].mxu0 }
  0xe1   :  { %v75_v15 = vadd.f32 %v96_v11, %v74_v14  ;;  %v110_v16 = vpop.f32.mrb[2].mxu0 }
  0xe2   :  { %91 = vst.msk [vmem:[%s171_s3 + $0x10] sm:$0xf] %vm90_vm1, %v83_v13  ;;  %v77_v17 = vpop.f32.mrb[3].mxu0 }
  0xe3   :  { %88 = vst.msk [vmem:[%s171_s3] sm:$0xff] %vm33_vm0, %v75_v15  ;;  %v78_v18 = vadd.f32 %v96_v11, %v77_v17 }
  0xe5   :  { %89 = vst.msk [vmem:[%s171_s3 + $0x8] sm:$0xff] %vm33_vm0, %v78_v18 }

// kernel: timesformer_forward.37
= control target key start
LH: loop header
LB: loop body
LE: loop exit
PB: predicated region body
PF: predicated region fallthrough
CT: control target
= control target key end

     0   :  { %vm17_vm0 = vcmask 261120   ;;  %vm24_vm1 = vcmask 254976   ;;  %s147_s0 = inlined_call_operand.vmem [shape: f32[18,32], index: 0, kind: input, shape index: {}]   ;;  %s148_s1 = inlined_call_operand.vmem [shape: f32[1,32], index: 1, kind: input, shape index: {}]   ;;  %s149_s2 = inlined_call_operand.vmem [shape: f32[1,32], index: 2, kind: input, shape index: {}]   ;;  %s150_s3 = inlined_call_operand.vmem [shape: f32[18,32], index: 3, kind: output, shape index: {}]  }
   0x1   :  { %v14_v0 = vld [vmem:[%s147_s0] sm:$0xff]  ;;  %v16_v1 = vld [vmem:[%s147_s0 + $0x10] sm:$0x3]  ;;  %v15_v2 = vld [vmem:[%s147_s0 + $0x8] sm:$0xff] }
   0x2   :  { %v18_v3 = vsel %vm17_vm0, %v14_v0, 0.0  ;;  %v25_v4 = vsel %vm24_vm1, %v16_v1, 0.0  ;;  %v21_v5 = vsel %vm17_vm0, %v15_v2, 0.0  ;;  %v86_v31 = vld [vmem:[%s148_s1] ss:$0 sm:$0xff] }
   0x3   :  { %19 = vadd.xlane.f32.xlu0 %v18_v3  ;;  %26 = vadd.xlane.f32.xlu1 %v25_v4  ;;  %v87_v33 = vld [vmem:[%s149_s2] ss:$0 sm:$0xff] }
   0x7   :  { %22 = vadd.xlane.f32.xlu0 %v21_v5 }
  0x90   :  { %v20_v6 = vpop.xlane.xlu0 %19  ;;  %v27_v7 = vpop.xlane.xlu1 %26 }
  0x91   :  { %v29_v8 = vmul.f32 0.03125, %v20_v6  ;;  %v31_v9 = vmul.f32 0.03125, %v27_v7 }
  0x93   :  { %v32_v10 = vsub.f32 %v14_v0, %v29_v8  ;;  %v34_v11 = vsub.f32 %v16_v1, %v31_v9 }
  0x94   :  { %v23_v12 = vpop.xlane.xlu0 %22 }
  0x95   :  { %v30_v13 = vmul.f32 0.03125, %v23_v12  ;;  %v35_v14 = vmul.f32 %v32_v10, %v32_v10  ;;  %v37_v15 = vmul.f32 %v34_v11, %v34_v11 }
  0x97   :  { %v33_v16 = vsub.f32 %v15_v2, %v30_v13  ;;  %v38_v17 = vsel %vm17_vm0, %v35_v14, 0.0  ;;  %v44_v18 = vsel %vm24_vm1, %v37_v15, 0.0 }
  0x98   :  { %39 = vadd.xlane.f32.xlu1 %v38_v17 }
  0x99   :  { %v36_v19 = vmul.f32 %v33_v16, %v33_v16 }
  0x9b   :  { %v41_v20 = vsel %vm17_vm0, %v36_v19, 0.0 }
  0x9c   :  { %45 = vadd.xlane.f32.xlu1 %v44_v18  ;;  %42 = vadd.xlane.f32.xlu0 %v41_v20 }
 0x125   :  { %v40_v21 = vpop.xlane.xlu1 %39 }
 0x126   :  { %v47_v22 = vmul.f32 0.03125, %v40_v21 }
 0x128   :  { %v50_v23 = vadd.f32 1e-06, %v47_v22 }
 0x129   :  { %v46_v24 = vpop.xlane.xlu1 %45  ;;  %v43_v25 = vpop.xlane.xlu0 %42 }
 0x12a   :  { %88 = vrsqrt.f32 %v50_v23  ;;  %v49_v26 = vmul.f32 0.03125, %v46_v24  ;;  %v48_v27 = vmul.f32 0.03125, %v43_v25 }
 0x12c   :  { %v52_v28 = vadd.f32 1e-06, %v49_v26  ;;  %v51_v29 = vadd.f32 1e-06, %v48_v27 }
 0x12e   :  { %90 = vrsqrt.f32 %v52_v28 }
 0x12f   :  { %92 = vrsqrt.f32 %v51_v29 }
 0x134   :  { %v89_v30 = vpop.eup %88 }
 0x135   :  { %v56_v32 = vmul.f32 %v89_v30, %v32_v10 }
 0x137   :  { %v66_v34 = vmul.f32 %v86_v31, %v56_v32 }
 0x138   :  { %v91_v35 = vpop.eup %90 }
 0x139   :  { %v93_v36 = vpop.eup %92  ;;  %v76_v37 = vadd.f32 %v87_v33, %v66_v34  ;;  %v58_v38 = vmul.f32 %v91_v35, %v34_v11 }
 0x13a   :  { %v57_v39 = vmul.f32 %v93_v36, %v33_v16 }
 0x13b   :  { %79 = vst.msk [vmem:[%s150_s3] sm:$0xff] %vm17_vm0, %v76_v37  ;;  %v68_v40 = vmul.f32 %v86_v31, %v58_v38 }
 0x13c   :  { %v67_v41 = vmul.f32 %v86_v31, %v57_v39 }
 0x13d   :  { %v78_v42 = vadd.f32 %v87_v33, %v68_v40 }
 0x13e   :  { %v77_v43 = vadd.f32 %v87_v33, %v67_v41 }
 0x13f   :  { %81 = vst.msk [vmem:[%s150_s3 + $0x10] sm:$0x3] %vm24_vm1, %v78_v42 }
 0x140   :  { %80 = vst.msk [vmem:[%s150_s3 + $0x8] sm:$0xff] %vm17_vm0, %v77_v43 }

// kernel: timesformer_forward.38
= control target key start
LH: loop header
LB: loop body
LE: loop exit
PB: predicated region body
PF: predicated region fallthrough
CT: control target
= control target key end

     0   :  { %vm33_vm0 = vcmask 261120   ;;  %s280_s1 = inlined_call_operand.vmem [shape: f32[32,128], index: 1, kind: input, shape index: {}]   ;;  %s281_s0 = inlined_call_operand.vmem [shape: f32[18,32], index: 0, kind: input, shape index: {}]   ;;  %s282_s2 = inlined_call_operand.vmem [shape: f32[1,128], index: 2, kind: input, shape index: {}]   ;;  %s283_s3 = inlined_call_operand.vmem [shape: f32[18,128], index: 3, kind: output, shape index: {}]  }
   0x1   :  { %v20_v0 = vld [vmem:[%s280_s1] sm:$0xff]  ;;  %v21_v1 = vld [vmem:[%s280_s1 + $0x8] sm:$0xff]  ;;  %v22_v2 = vld [vmem:[%s280_s1 + $0x10] sm:$0xff] }
   0x2   :  { %v24_v3 = vpack.c.bf16 %v21_v1, %v20_v0  ;;  %v23_v4 = vld [vmem:[%s280_s1 + $0x18] sm:$0xff]  ;;  %v15_v5 = vld [vmem:[%s281_s0] sm:$0xff]  ;;  %v16_v6 = vld [vmem:[%s281_s0 + $0x8] sm:$0xff] }
   0x3   :  { %v25_v7 = vpack.c.bf16 %v23_v4, %v22_v2  ;;  %v18_v8 = vpack.c.bf16 %v16_v6, %v15_v5  ;;  %v17_v9 = vld [vmem:[%s281_s0 + $0x10] sm:$0x3]  ;;  %v176_v11 = vld [vmem:[%s282_s2] ss:$0 sm:$0xff] }
   0x4   :  { %183 = vmatprep.subr.bf16.mxu0 %v24_v3  ;;  %v19_v10 = vpack.c.bf16 %v17_v9, %v17_v9 }
   0x5   :  { %184 = vmatpush3.bf16.msra.mxu0 %v24_v3  ;;  %187 = vmatprep.mubr.msk.bf16.mxu0 %vm33_vm0, %v18_v8 }
   0x6   :  { %185 = vmatprep.subr.bf16.mxu0 %v25_v7 }
   0x9   :  { %186 = vmatpush3.bf16.msra.mxu0 %v25_v7 }
   0xc   :  { %188 = vmatmul.mubr.msk.bf16.vlgmr.msra.gmra.mrb[0].mxu0 %vm33_vm0, %v19_v10 }
  0xdf   :  { %v189_v12 = vpop.f32.mrb[0].mxu0 }
  0xe0   :  { %v247_v13 = vadd.f32 %v189_v12, %v176_v11  ;;  %v74_v14 = vpop.f32.mrb[1].mxu0 }
  0xe1   :  { %v249_v15 = vadd.f32 %v176_v11, %v74_v14  ;;  %v190_v16 = vpop.f32.mrb[2].mxu0 }
  0xe2   :  { %v252_v17 = vmul.f32 0.70710677, %v247_v13  ;;  %v77_v18 = vpop.f32.mrb[3].mxu0 }
  0xe3   :  { %v255_v19 = vmul.f32 0.70710677, %v249_v15  ;;  %v257_v20 = vadd.f32 %v176_v11, %v77_v18 }
  0xe4   :  { %v96_v21 = vand.u32 2147483647, %v252_v17  ;;  %vm156_vm1 = vcmp.lt.f32.partialorder %v252_v17, 0.0 }
  0xe5   :  { %v94_v22 = vand.u32 2147483647, %v255_v19  ;;  %v262_v23 = vmul.f32 0.70710677, %v257_v20  ;;  %vm154_vm2 = vcmp.lt.f32.partialorder %v255_v19, 0.0  ;;  %v89_v17 = vmul.f32 0.5, %v257_v20 }
  0xe6   :  { %v99_v24 = vmul.f32 0.3275911, %v96_v21  ;;  %v138_v31 = vsub.f32 0.0, %v96_v21 }
  0xe7   :  { %v97_v25 = vmul.f32 0.3275911, %v94_v22  ;;  %v95_v26 = vand.u32 2147483647, %v262_v23  ;;  %v136_v32 = vsub.f32 0.0, %v94_v22  ;;  %vm155_vm3 = vcmp.lt.f32.partialorder %v262_v23, 0.0 }
  0xe8   :  { %v102_v27 = vadd.f32 1.0, %v99_v24  ;;  %v141_v34 = vmul.f32 %v138_v31, %v96_v21  ;;  %v90_v24 = vmul.f32 0.5, %v247_v13 }
  0xe9   :  { %v100_v28 = vadd.f32 1.0, %v97_v25  ;;  %v98_v29 = vmul.f32 0.3275911, %v95_v26  ;;  %v137_v35 = vsub.f32 0.0, %v95_v26  ;;  %v139_v38 = vmul.f32 %v136_v32, %v94_v22 }
  0xea   :  { %191 = vrcp.f32 %v102_v27  ;;  %v146_v42 = vmul.f32 1.442695, %v141_v34  ;;  %v88_v27 = vmul.f32 0.5, %v249_v15 }
  0xeb   :  { %193 = vrcp.f32 %v100_v28  ;;  %v101_v30 = vadd.f32 1.0, %v98_v29  ;;  %v140_v44 = vmul.f32 %v137_v35, %v95_v26  ;;  %v142_v46 = vmul.f32 1.442695, %v139_v38 }
  0xed   :  { %195 = vrcp.f32 %v101_v30  ;;  %v144_v52 = vmul.f32 1.442695, %v140_v44 }
  0xee   :  { %197 = vpow2.f32 %v146_v42 }
  0xef   :  { %199 = vpow2.f32 %v142_v46 }
  0xf0   :  { %201 = vpow2.f32 %v144_v52 }
  0xf4   :  { %v192_v33 = vpop.eup %191 }
  0xf5   :  { %v194_v36 = vpop.eup %193  ;;  %v111_v37 = vmul.f32 1.0614054, %v192_v33 }
  0xf6   :  { %v109_v39 = vmul.f32 1.0614054, %v194_v36 }
  0xf7   :  { %v114_v40 = vadd.f32 -1.4531521, %v111_v37  ;;  %v196_v41 = vpop.eup %195 }
  0xf8   :  { %v112_v43 = vadd.f32 -1.4531521, %v109_v39  ;;  %v110_v47 = vmul.f32 1.0614054, %v196_v41  ;;  %v198_v3 = vpop.eup %197 }
  0xf9   :  { %v117_v45 = vmul.f32 %v192_v33, %v114_v40  ;;  %v200_v5 = vpop.eup %199 }
  0xfa   :  { %v115_v48 = vmul.f32 %v194_v36, %v112_v43  ;;  %v113_v50 = vadd.f32 -1.4531521, %v110_v47  ;;  %v202_v11 = vpop.eup %201 }
  0xfb   :  { %v120_v49 = vadd.f32 1.4214138, %v117_v45 }
  0xfc   :  { %v118_v51 = vadd.f32 1.4214138, %v115_v48  ;;  %v116_v54 = vmul.f32 %v196_v41, %v113_v50 }
  0xfd   :  { %v123_v53 = vmul.f32 %v192_v33, %v120_v49 }
  0xfe   :  { %v121_v55 = vmul.f32 %v194_v36, %v118_v51  ;;  %v119_v57 = vadd.f32 1.4214138, %v116_v54 }
  0xff   :  { %v126_v56 = vadd.f32 -0.28449672, %v123_v53 }
 0x100   :  { %v124_v58 = vadd.f32 -0.28449672, %v121_v55  ;;  %v122_v60 = vmul.f32 %v196_v41, %v119_v57 }
 0x101   :  { %v129_v59 = vmul.f32 %v192_v33, %v126_v56 }
 0x102   :  { %v127_v61 = vmul.f32 %v194_v36, %v124_v58  ;;  %v125_v63 = vadd.f32 -0.28449672, %v122_v60 }
 0x103   :  { %v132_v62 = vadd.f32 0.2548296, %v129_v59 }
 0x104   :  { %v130_v0 = vadd.f32 0.2548296, %v127_v61  ;;  %v128_v2 = vmul.f32 %v196_v41, %v125_v63 }
 0x105   :  { %v135_v1 = vmul.f32 %v192_v33, %v132_v62 }
 0x106   :  { %v133_v4 = vmul.f32 %v194_v36, %v130_v0  ;;  %v131_v7 = vadd.f32 0.2548296, %v128_v2 }
 0x107   :  { %v150_v6 = vmul.f32 %v198_v3, %v135_v1 }
 0x108   :  { %v148_v8 = vmul.f32 %v200_v5, %v133_v4  ;;  %v134_v10 = vmul.f32 %v196_v41, %v131_v7 }
 0x109   :  { %v153_v9 = vsub.f32 1.0, %v150_v6 }
 0x10a   :  { %v151_v12 = vsub.f32 1.0, %v148_v8  ;;  %v149_v16 = vmul.f32 %v202_v11, %v134_v10 }
 0x10b   :  { %v159_v14 = vsub.f32 0.0, %v153_v9 }
 0x10c   :  { %v157_v18 = vsub.f32 0.0, %v151_v12  ;;  %v152_v22 = vsub.f32 1.0, %v149_v16 }
 0x10d   :  { %v162_v21 = vsel %vm156_vm1, %v159_v14, %v153_v9 }
 0x10e   :  { %v165_v25 = vadd.f32 1.0, %v162_v21  ;;  %v160_v26 = vsel %vm154_vm2, %v157_v18, %v151_v12  ;;  %v158_v29 = vsub.f32 0.0, %v152_v22 }
 0x10f   :  { %v163_v28 = vadd.f32 1.0, %v160_v26 }
 0x110   :  { %v168_v30 = vmul.f32 %v165_v25, %v90_v24  ;;  %v161_v32 = vsel %vm155_vm3, %v158_v29, %v152_v22 }
 0x111   :  { %v166_v31 = vmul.f32 %v163_v28, %v88_v27  ;;  %v164_v19 = vadd.f32 1.0, %v161_v32 }
 0x112   :  { %171 = vst [vmem:[%s283_s3 + $0x10] sm:$0x3] %v168_v30 }
 0x113   :  { %169 = vst [vmem:[%s283_s3] sm:$0xff] %v166_v31  ;;  %v167_v13 = vmul.f32 %v164_v19, %v89_v17 }
 0x115   :  { %170 = vst [vmem:[%s283_s3 + $0x8] sm:$0xff] %v167_v13 }

// kernel: timesformer_forward.39
= control target key start
LH: loop header
LB: loop body
LE: loop exit
PB: predicated region body
PF: predicated region fallthrough
CT: control target
= control target key end

     0   :  { %vm102_vm0 = vcmask 254976   ;;  %vm99_vm1 = vcmask 261120   ;;  %s228_s1 = inlined_call_operand.vmem [shape: f32[128,32], index: 1, kind: input, shape index: {}]   ;;  %s229_s0 = inlined_call_operand.vmem [shape: f32[18,128], index: 0, kind: input, shape index: {}]   ;;  %s230_s2 = inlined_call_operand.vmem [shape: f32[1,32], index: 2, kind: input, shape index: {}]   ;;  %s231_s3 = inlined_call_operand.vmem [shape: f32[18,32], index: 3, kind: output, shape index: {}]  }
   0x1   :  { %v20_v0 = vld [vmem:[%s228_s1] sm:$0xff]  ;;  %v21_v1 = vld [vmem:[%s228_s1 + $0x8] sm:$0xff]  ;;  %v22_v2 = vld [vmem:[%s228_s1 + $0x10] sm:$0xff] }
   0x2   :  { %v36_v3 = vpack.c.bf16 %v21_v1, %v20_v0  ;;  %v23_v4 = vld [vmem:[%s228_s1 + $0x18] sm:$0xff]  ;;  %v24_v6 = vld [vmem:[%s228_s1 + $0x20] sm:$0xff]  ;;  %v25_v7 = vld [vmem:[%s228_s1 + $0x28] sm:$0xff] }
   0x3   :  { %v37_v5 = vpack.c.bf16 %v23_v4, %v22_v2  ;;  %v38_v8 = vpack.c.bf16 %v25_v7, %v24_v6  ;;  %v15_v9 = vld [vmem:[%s229_s0] sm:$0xff]  ;;  %v16_v10 = vld [vmem:[%s229_s0 + $0x8] sm:$0xff]  ;;  %v26_v11 = vld [vmem:[%s228_s1 + $0x30] sm:$0xff] }
   0x4   :  { %119 = vmatprep.subr.bf16.mxu0 %v36_v3  ;;  %v27_v12 = vld [vmem:[%s228_s1 + $0x38] sm:$0xff]  ;;  %v18_v13 = vpack.c.bf16 %v16_v10, %v15_v9  ;;  %v28_v15 = vld [vmem:[%s228_s1 + $0x40] sm:$0xff]  ;;  %v29_v16 = vld [vmem:[%s228_s1 + $0x48] sm:$0xff] }
   0x5   :  { %120 = vmatpush3.bf16.msra.mxu0 %v36_v3  ;;  %v39_v14 = vpack.c.bf16 %v27_v12, %v26_v11  ;;  %v40_v17 = vpack.c.bf16 %v29_v16, %v28_v15  ;;  %v30_v18 = vld [vmem:[%s228_s1 + $0x50] sm:$0xff]  ;;  %v31_v19 = vld [vmem:[%s228_s1 + $0x58] sm:$0xff]  ;;  %v32_v21 = vld [vmem:[%s228_s1 + $0x60] sm:$0xff] }
   0x6   :  { %121 = vmatprep.subr.bf16.mxu0 %v37_v5  ;;  %135 = vmatprep.mubr.bf16.mxu0 %v18_v13  ;;  %v41_v20 = vpack.c.bf16 %v31_v19, %v30_v18  ;;  %v33_v22 = vld [vmem:[%s228_s1 + $0x68] sm:$0xff]  ;;  %v34_v24 = vld [vmem:[%s228_s1 + $0x70] sm:$0xff]  ;;  %v35_v25 = vld [vmem:[%s228_s1 + $0x78] sm:$0xff] }
   0x7   :  { %v42_v23 = vpack.c.bf16 %v33_v22, %v32_v21  ;;  %v43_v26 = vpack.c.bf16 %v35_v25, %v34_v24  ;;  %v17_v27 = vld [vmem:[%s229_s0 + $0x10] sm:$0x3]  ;;  %v108_v29 = vld [vmem:[%s230_s2] ss:$0 sm:$0xff] }
   0x8   :  { %v19_v28 = vpack.c.bf16 %v17_v27, %v17_v27 }
   0x9   :  { %122 = vmatpush3.bf16.msra.mxu0 %v37_v5 }
   0xa   :  { %123 = vmatprep.subr.bf16.mxu0 %v38_v8 }
   0xd   :  { %124 = vmatpush3.bf16.msra.mxu0 %v38_v8 }
   0xe   :  { %125 = vmatprep.subr.bf16.mxu0 %v39_v14 }
  0x11   :  { %126 = vmatpush3.bf16.msra.mxu0 %v39_v14 }
  0x12   :  { %127 = vmatprep.subr.bf16.mxu0 %v40_v17 }
  0x15   :  { %128 = vmatpush3.bf16.msra.mxu0 %v40_v17 }
  0x16   :  { %129 = vmatprep.subr.bf16.mxu0 %v41_v20 }
  0x19   :  { %130 = vmatpush3.bf16.msra.mxu0 %v41_v20 }
  0x1a   :  { %131 = vmatprep.subr.bf16.mxu0 %v42_v23 }
  0x1d   :  { %132 = vmatpush3.bf16.msra.mxu0 %v42_v23 }
  0x1e   :  { %133 = vmatprep.subr.bf16.mxu0 %v43_v26 }
  0x21   :  { %134 = vmatpush3.bf16.msra.mxu0 %v43_v26 }
  0x24   :  { %136 = vmatmul.mubr.bf16.vlgmr.msra.gmra.mrb[0].mxu0 %v19_v28 }
  0xf7   :  { %v137_v30 = vpop.f32.mrb[0].mxu0 }
  0xf8   :  { %v94_v31 = vadd.f32 %v137_v30, %v108_v29  ;;  %v85_v32 = vpop.f32.mrb[1].mxu0 }
  0xf9   :  { %v86_v33 = vadd.f32 %v108_v29, %v85_v32  ;;  %v138_v34 = vpop.f32.mrb[2].mxu0 }
  0xfa   :  { %103 = vst.msk [vmem:[%s231_s3 + $0x10] sm:$0x3] %vm102_vm0, %v94_v31  ;;  %v88_v35 = vpop.f32.mrb[3].mxu0 }
  0xfb   :  { %100 = vst.msk [vmem:[%s231_s3] sm:$0xff] %vm99_vm1, %v86_v33  ;;  %v89_v36 = vadd.f32 %v108_v29, %v88_v35 }
  0xfd   :  { %101 = vst.msk [vmem:[%s231_s3 + $0x8] sm:$0xff] %vm99_vm1, %v89_v36 }

// kernel: timesformer_forward.35
= control target key start
LH: loop header
LB: loop body
LE: loop exit
PB: predicated region body
PF: predicated region fallthrough
CT: control target
= control target key end

     0   :  { %v2300_v3 = vmov 0.0   ;;  %vm2301_vm0 = vmmov 0   ;;  %s2302_s14 = smov 96   ;;  %vm28_vm1 = vcmask 64512   ;;  %vm222_vm2 = vcmask 36864   ;;  %s2303_s15 = smov 64   ;;  %s2725_s0 = inlined_call_operand.vmem [shape: f32[4,5,96], index: 0, kind: input, shape index: {}]   ;;  %s2726_s1 = inlined_call_operand.vmem [shape: f32[4,5,32], index: 1, kind: output, shape index: {}]  }
   0x1   :  { %v9_v0 = vld [vmem:[%s2725_s0] sm:$0x1f]  ;;  %v10_v1 = vld [vmem:[%s2725_s0 + $0x8] sm:$0x1f]  ;;  %v11_v2 = vld [vmem:[%s2725_s0 + $0x10] sm:$0x1f]  ;;  %2027 = vmatprep.subr.bf16.mxu0 %v2300_v3  ;;  %2033 = vmatprep.subr.bf16.mxu1 %v2300_v3 }
   0x2   :  { %v2338_v4 = vpack.c.bf16 %v9_v0, %v9_v0  ;;  %v12_v5 = vld [vmem:[%s2725_s0 + $0x18] sm:$0x1f]  ;;  %2029 = vmatprep.mubr.msk.bf16.mxu0 %vm2301_vm0, %v2300_v3  ;;  %2035 = vmatprep.mubr.msk.bf16.mxu1 %vm2301_vm0, %v2300_v3  ;;  %v2347_v6 = vpack.c.bf16 %v11_v2, %v11_v2  ;;  %v2350_v7 = vpack.c.bf16 %v10_v1, %v10_v1  ;;  %v13_v10 = vmul.f32 0.35355338, %v9_v0  ;;  %s2305_s20 = smov 88   ;;  %s2306_s23 = smov 120  }
   0x3   :  { %v2353_v8 = vpack.c.bf16 %v12_v5, %v12_v5  ;;  %v14_v15 = vmul.f32 0.35355338, %v10_v1  ;;  %v15_v20 = vmul.f32 0.35355338, %v11_v2  ;;  %v16_v23 = vmul.f32 0.35355338, %v12_v5 }
   0x4   :  { %26 = vrot.lane.b32.xlu0 %v2338_v4, %s2302_s14  ;;  %125 = vrot.lane.b32.xlu1 %v2347_v6, %s2302_s14  ;;  %v17_v14 = vpack.c.bf16 %v13_v10, %v13_v10  ;;  %vm277_vm3 = vcmask 1041408   ;;  %vm278_vm4 = vcmask 1042432   ;;  %v2304_v48 = vmov 65535   ;;  %v468_v10 = vld [vmem:[%s2725_s0] sm:$0x1f]  ;;  %s2307_s26 = smov 56  }
   0x5   :  { %v18_v19 = vpack.c.bf16 %v14_v15, %v14_v15  ;;  %v19_v22 = vpack.c.bf16 %v15_v20, %v15_v20  ;;  %v20_v24 = vpack.c.bf16 %v16_v23, %v16_v23  ;;  %v279_v49 = vsel %vm277_vm3, 4294967295, %v2304_v48  ;;  %s2308_s2 = smov 80   ;;  %s2309_s7 = smov 112  }
   0x6   :  { %v2382_v52 = vsel %vm278_vm4, %v279_v49, 0  ;;  %vm273_vm5 = vcmask 39936   ;;  %s2310_s8 = smov 48   ;;  %s2311_s13 = smov 72   ;;  %vm1912_vm6 = vcmask 130048   ;;  %vm1917_vm7 = vcmask 195584  }
   0x7   :  { %s2312_s18 = smov 104   ;;  %s2314_s19 = smov 8   ;;  %vm1922_vm8 = vcmask 258048  }
   0x8   :  { %76 = vrot.lane.b32.xlu0 %v2350_v7, %s2302_s14  ;;  %174 = vrot.lane.b32.xlu1 %v2353_v8, %s2302_s14  ;;  %s2316_s21 = smov 24  }
  0x76   :  { %v27_v9 = vpop.permute.xlu0 %26  ;;  %v126_v12 = vpop.permute.xlu1 %125 }
  0x77   :  { %v33_v11 = vsel %vm28_vm1, %v27_v9, 0  ;;  %v131_v17 = vsel %vm28_vm1, %v126_v12, 0  ;;  %v2408_v12 = vpack.c.bf16 %v468_v10, %v468_v10 }
  0x78   :  { %2028 = vmatpush3.bf16.xpose.msra.mxu0 %v33_v11 }
  0x79   :  { %2039 = vmatprep.subr.bf16.mxu0 %v2300_v3 }
  0x7a   :  { %v77_v13 = vpop.permute.xlu0 %76  ;;  %v175_v18 = vpop.permute.xlu1 %174 }
  0x7b   :  { %v82_v16 = vsel %vm28_vm1, %v77_v13, 0  ;;  %v180_v21 = vsel %vm28_vm1, %v175_v18, 0  ;;  %v472_v13 = vmul.f32 0.35355338, %v468_v10  ;;  %v470_v18 = vld [vmem:[%s2725_s0 + $0x10] sm:$0x1f] }
  0x7c   :  { %2034 = vmatpush3.bf16.xpose.msra.mxu1 %v82_v16  ;;  %v2420_v20 = vpack.c.bf16 %v470_v18, %v470_v18 }
  0x7d   :  { %2045 = vmatprep.subr.bf16.mxu1 %v2300_v3 }
  0x7f   :  { %2030 = vmatmul.mubr.msk.bf16.vlgmr.msra.gmra.mrb[0].mxu0 %vm28_vm1, %v17_v14  ;;  %v471_v14 = vld [vmem:[%s2725_s0 + $0x18] sm:$0x1f] }
  0x80   :  { %2040 = vmatpush3.bf16.xpose.msra.mxu0 %v131_v17  ;;  %2041 = vmatprep.mubr.msk.bf16.mxu0 %vm2301_vm0, %v2300_v3  ;;  %v2413_v15 = vpack.c.bf16 %v471_v14, %v471_v14  ;;  %v475_v16 = vmul.f32 0.35355338, %v471_v14  ;;  %v476_v17 = vpack.c.bf16 %v472_v13, %v472_v13 }
  0x81   :  { %2051 = vmatprep.subr.bf16.mxu0 %v2300_v3 }
  0x83   :  { %2036 = vmatmul.mubr.msk.bf16.vlgmr.msra.gmra.mrb[0].mxu1 %vm28_vm1, %v18_v19  ;;  %v479_v19 = vpack.c.bf16 %v475_v16, %v475_v16 }
  0x84   :  { %2046 = vmatpush3.bf16.xpose.msra.mxu1 %v180_v21  ;;  %2047 = vmatprep.mubr.msk.bf16.mxu1 %vm2301_vm0, %v2300_v3  ;;  %v474_v21 = vmul.f32 0.35355338, %v470_v18 }
  0x85   :  { %2057 = vmatprep.subr.bf16.mxu1 %v2300_v3 }
  0x87   :  { %2042 = vmatmul.mubr.msk.bf16.vlgmr.msra.gmra.mrb[4].mxu0 %vm28_vm1, %v19_v22  ;;  %v478_v22 = vpack.c.bf16 %v474_v21, %v474_v21 }
  0x88   :  { %2053 = vmatprep.mubr.msk.bf16.mxu0 %vm2301_vm0, %v2300_v3 }
  0x8b   :  { %2048 = vmatmul.mubr.msk.bf16.vlgmr.msra.gmra.mrb[4].mxu1 %vm28_vm1, %v20_v24 }
  0x8c   :  { %2059 = vmatprep.mubr.msk.bf16.mxu1 %vm2301_vm0, %v2300_v3 }
 0x152   :  { %v69_v25 = vpop.f32.mrb[0].mxu0 }
 0x153   :  { %v2031_v26 = vpop.f32.mrb[1].mxu0  ;;  %v223_v27 = vsel %vm222_vm2, %v69_v25, -inf }
 0x154   :  { %224 = vmax.xlane.f32.xlu0 %v223_v27  ;;  %v72_v28 = vpop.f32.mrb[2].mxu0 }
 0x155   :  { %v2032_v29 = vpop.f32.mrb[3].mxu0 }
 0x156   :  { %v118_v30 = vpop.f32.mrb[0].mxu1 }
 0x157   :  { %v226_v31 = vsel %vm222_vm2, %v118_v30, -inf  ;;  %v2037_v32 = vpop.f32.mrb[1].mxu1 }
 0x158   :  { %227 = vmax.xlane.f32.xlu1 %v226_v31  ;;  %v121_v33 = vpop.f32.mrb[2].mxu1 }
 0x159   :  { %v2038_v34 = vpop.f32.mrb[3].mxu1 }
 0x15a   :  { %v167_v35 = vpop.f32.mrb[4].mxu0 }
 0x15b   :  { %v229_v36 = vsel %vm222_vm2, %v167_v35, -inf  ;;  %v2043_v37 = vpop.f32.mrb[5].mxu0 }
 0x15c   :  { %230 = vmax.xlane.f32.xlu0 %v229_v36  ;;  %v170_v38 = vpop.f32.mrb[6].mxu0 }
 0x15d   :  { %v2044_v39 = vpop.f32.mrb[7].mxu0 }
 0x15e   :  { %v216_v40 = vpop.f32.mrb[4].mxu1 }
 0x15f   :  { %v232_v41 = vsel %vm222_vm2, %v216_v40, -inf  ;;  %v2049_v42 = vpop.f32.mrb[5].mxu1 }
 0x160   :  { %233 = vmax.xlane.f32.xlu0 %v232_v41  ;;  %v219_v43 = vpop.f32.mrb[6].mxu1 }
 0x161   :  { %v2050_v44 = vpop.f32.mrb[7].mxu1 }
 0x169   :  { %271 = vrot.lane.b32.xlu1 %v2338_v4, %s2303_s15 }
 0x1e1   :  { %v225_v45 = vpop.xlane.xlu0 %224 }
 0x1e2   :  { %v235_v46 = vsub.f32 %v69_v25, %v225_v45 }
 0x1e4   :  { %v239_v47 = vmul.f32 1.442695, %v235_v46 }
 0x1e5   :  { %v228_v50 = vpop.xlane.xlu1 %227 }
 0x1e6   :  { %2236 = vpow2.f32 %v239_v47  ;;  %v236_v51 = vsub.f32 %v118_v30, %v228_v50 }
 0x1e8   :  { %v241_v53 = vmul.f32 1.442695, %v236_v51 }
 0x1e9   :  { %v272_v54 = vpop.permute.xlu1 %271  ;;  %v231_v60 = vpop.xlane.xlu0 %230 }
 0x1ea   :  { %2238 = vpow2.f32 %v241_v53  ;;  %v282_v55 = vand.u32 %v2382_v52, %v272_v54  ;;  %v237_v62 = vsub.f32 %v167_v35, %v231_v60 }
 0x1ec   :  { %2052 = vmatpush3.bf16.msra.mxu0 %v282_v55  ;;  %v243_v0 = vmul.f32 1.442695, %v237_v62 }
 0x1ed   :  { %2063 = vmatprep.subr.bf16.mxu0 %v2300_v3  ;;  %v234_v61 = vpop.xlane.xlu0 %233 }
 0x1ee   :  { %v238_v63 = vsub.f32 %v216_v40, %v234_v61  ;;  %2240 = vpow2.f32 %v243_v0 }
 0x1f0   :  { %v2237_v56 = vpop.eup %2236  ;;  %v245_v1 = vmul.f32 1.442695, %v238_v63 }
 0x1f1   :  { %v247_v57 = vsel %vm222_vm2, %v2237_v56, 0.0 }
 0x1f2   :  { %248 = vadd.xlane.f32.xlu1 %v247_v57  ;;  %2242 = vpow2.f32 %v245_v1 }
 0x1f4   :  { %v2239_v58 = vpop.eup %2238 }
 0x1f5   :  { %v250_v59 = vsel %vm222_vm2, %v2239_v58, 0.0 }
 0x1f6   :  { %251 = vadd.xlane.f32.xlu0 %v250_v59 }
 0x1f8   :  { %v2391_v2 = vpop.eup %2240 }
 0x1f9   :  { %v253_v5 = vsel %vm222_vm2, %v2391_v2, 0.0 }
 0x1fc   :  { %v2393_v4 = vpop.eup %2242 }
 0x203   :  { %372 = vrot.lane.b32.xlu1 %v2347_v6, %s2303_s15  ;;  %v256_v6 = vsel %vm222_vm2, %v2393_v4, 0.0 }
 0x207   :  { %420 = vrot.lane.b32.xlu1 %v2353_v8, %s2303_s15 }
 0x20c   :  { %324 = vrot.lane.b32.xlu0 %v2350_v7, %s2303_s15  ;;  %v469_v7 = vld [vmem:[%s2725_s0 + $0x8] sm:$0x1f] }
 0x20d   :  { %v2402_v8 = vpack.c.bf16 %v469_v7, %v469_v7  ;;  %v473_v9 = vmul.f32 0.35355338, %v469_v7 }
 0x20f   :  { %v477_v11 = vpack.c.bf16 %v473_v9, %v473_v9 }
 0x22b   :  { %254 = vadd.xlane.f32.xlu1 %v253_v5  ;;  %257 = vadd.xlane.f32.xlu0 %v256_v6 }
 0x23c   :  { %540 = vrot.lane.b32.xlu1 %v2402_v8, %s2305_s20 }
 0x240   :  { %537 = vrot.lane.b32.xlu1 %v477_v11, %s2306_s23 }
 0x241   :  { %488 = vrot.lane.b32.xlu0 %v2408_v12, %s2305_s20 }
 0x244   :  { %644 = vrot.lane.b32.xlu1 %v2413_v15, %s2305_s20 }
 0x245   :  { %485 = vrot.lane.b32.xlu0 %v476_v17, %s2306_s23 }
 0x248   :  { %641 = vrot.lane.b32.xlu1 %v479_v19, %s2306_s23 }
 0x249   :  { %592 = vrot.lane.b32.xlu0 %v2420_v20, %s2305_s20  ;;  %s2315_s20 = smov 16  }
 0x24d   :  { %589 = vrot.lane.b32.xlu0 %v478_v22, %s2306_s23 }
 0x27f   :  { %v249_v23 = vpop.xlane.xlu1 %248 }
 0x280   :  { %2244 = vrcp.f32 %v249_v23 }
 0x283   :  { %v252_v24 = vpop.xlane.xlu0 %251  ;;  %v373_v27 = vpop.permute.xlu1 %372 }
 0x284   :  { %2246 = vrcp.f32 %v252_v24  ;;  %v378_v32 = vand.u32 %v373_v27, %v2382_v52 }
 0x287   :  { %v325_v25 = vpop.permute.xlu0 %324  ;;  %v421_v34 = vpop.permute.xlu1 %420 }
 0x288   :  { %v330_v26 = vand.u32 %v325_v25, %v2382_v52  ;;  %v426_v36 = vand.u32 %v421_v34, %v2382_v52 }
 0x28a   :  { %v2245_v28 = vpop.eup %2244  ;;  %2058 = vmatpush3.bf16.msra.mxu1 %v330_v26 }
 0x28b   :  { %v263_v29 = vmul.f32 %v2245_v28, %v2237_v56  ;;  %2069 = vmatprep.subr.bf16.mxu1 %v2300_v3 }
 0x28d   :  { %v267_v30 = vpack.c.bf16 %v263_v29, %v263_v29 }
 0x28e   :  { %v2247_v31 = vpop.eup %2246 }
 0x28f   :  { %v264_v33 = vmul.f32 %v2247_v31, %v2239_v58  ;;  %2054 = vmatmul.mubr.msk.bf16.vlgmr.msra.gmra.mrb[8].mxu0 %vm273_vm5, %v267_v30 }
 0x290   :  { %2064 = vmatpush3.bf16.msra.mxu0 %v378_v32  ;;  %2065 = vmatprep.mubr.msk.bf16.mxu0 %vm2301_vm0, %v2300_v3 }
 0x291   :  { %v268_v35 = vpack.c.bf16 %v264_v33, %v264_v33  ;;  %2075 = vmatprep.subr.bf16.mxu0 %v2300_v3 }
 0x293   :  { %2060 = vmatmul.mubr.msk.bf16.vlgmr.msra.gmra.mrb[8].mxu1 %vm273_vm5, %v268_v35 }
 0x294   :  { %2070 = vmatpush3.bf16.msra.mxu1 %v426_v36  ;;  %2071 = vmatprep.mubr.msk.bf16.mxu1 %vm2301_vm0, %v2300_v3 }
 0x295   :  { %2081 = vmatprep.subr.bf16.mxu1 %v2300_v3 }
 0x2b8   :  { %v255_v37 = vpop.xlane.xlu1 %254  ;;  %v258_v38 = vpop.xlane.xlu0 %257 }
 0x2b9   :  { %2248 = vrcp.f32 %v255_v37 }
 0x2ba   :  { %2250 = vrcp.f32 %v258_v38 }
 0x2bc   :  { %v489_v39 = vpop.permute.xlu0 %488  ;;  %v541_v40 = vpop.permute.xlu1 %540 }
 0x2bd   :  { %v494_v46 = vsel %vm28_vm1, %v489_v39, 0  ;;  %v546_v49 = vsel %vm28_vm1, %v541_v40, 0 }
 0x2c0   :  { %v486_v45 = vpop.permute.xlu0 %485  ;;  %v538_v48 = vpop.permute.xlu1 %537 }
 0x2c3   :  { %v2249_v41 = vpop.eup %2248 }
 0x2c4   :  { %v2251_v42 = vpop.eup %2250  ;;  %v265_v43 = vmul.f32 %v2249_v41, %v2391_v2  ;;  %v593_v51 = vpop.permute.xlu0 %592 }
 0x2c5   :  { %v266_v44 = vmul.f32 %v2251_v42, %v2393_v4  ;;  %v645_v53 = vpop.permute.xlu1 %644  ;;  %v598_v54 = vsel %vm28_vm1, %v593_v51, 0 }
 0x2c6   :  { %v269_v47 = vpack.c.bf16 %v265_v43, %v265_v43  ;;  %v650_v55 = vsel %vm28_vm1, %v645_v53, 0 }
 0x2c7   :  { %v270_v50 = vpack.c.bf16 %v266_v44, %v266_v44 }
 0x2c8   :  { %2066 = vmatmul.mubr.msk.bf16.vlgmr.msra.gmra.mrb[12].mxu0 %vm273_vm5, %v269_v47  ;;  %v590_v56 = vpop.permute.xlu0 %589 }
 0x2c9   :  { %2072 = vmatmul.mubr.msk.bf16.vlgmr.msra.gmra.mrb[12].mxu1 %vm273_vm5, %v270_v50  ;;  %2076 = vmatpush3.bf16.xpose.msra.mxu0 %v494_v46  ;;  %v642_v57 = vpop.permute.xlu1 %641 }
 0x2ca   :  { %2082 = vmatpush3.bf16.xpose.msra.mxu1 %v546_v49  ;;  %2077 = vmatprep.mubr.msk.bf16.mxu0 %vm2301_vm0, %v2300_v3 }
 0x2cb   :  { %2083 = vmatprep.mubr.msk.bf16.mxu1 %vm2301_vm0, %v2300_v3  ;;  %2087 = vmatprep.subr.bf16.mxu0 %v2300_v3 }
 0x2cc   :  { %2093 = vmatprep.subr.bf16.mxu1 %v2300_v3 }
 0x2d0   :  { %2078 = vmatmul.mubr.msk.bf16.vlgmr.msra.gmra.mrb[16].mxu0 %vm28_vm1, %v486_v45 }
 0x2d1   :  { %2084 = vmatmul.mubr.msk.bf16.vlgmr.msra.gmra.mrb[16].mxu1 %vm28_vm1, %v538_v48  ;;  %2088 = vmatpush3.bf16.xpose.msra.mxu0 %v598_v54 }
 0x2d2   :  { %2094 = vmatpush3.bf16.xpose.msra.mxu1 %v650_v55  ;;  %2089 = vmatprep.mubr.msk.bf16.mxu0 %vm2301_vm0, %v2300_v3 }
 0x2d3   :  { %2095 = vmatprep.mubr.msk.bf16.mxu1 %vm2301_vm0, %v2300_v3  ;;  %2099 = vmatprep.subr.bf16.mxu0 %v2300_v3 }
 0x2d4   :  { %2105 = vmatprep.subr.bf16.mxu1 %v2300_v3 }
 0x2d8   :  { %2090 = vmatmul.mubr.msk.bf16.vlgmr.msra.gmra.mrb[20].mxu0 %vm28_vm1, %v590_v56 }
 0x2d9   :  { %2096 = vmatmul.mubr.msk.bf16.vlgmr.msra.gmra.mrb[20].mxu1 %vm28_vm1, %v642_v57  ;;  %2101 = vmatprep.mubr.msk.bf16.mxu0 %vm2301_vm0, %v2300_v3 }
 0x2da   :  { %2107 = vmatprep.mubr.msk.bf16.mxu1 %vm2301_vm0, %v2300_v3 }
 0x362   :  { %v2463_v58 = vpop.f32.mrb[8].mxu0 }
 0x363   :  { %v2055_v59 = vpop.f32.mrb[9].mxu0 }
 0x364   :  { %v321_v60 = vpop.f32.mrb[10].mxu0 }
 0x365   :  { %v2056_v61 = vpop.f32.mrb[11].mxu0 }
 0x366   :  { %v2465_v62 = vpop.f32.mrb[8].mxu1 }
 0x367   :  { %v2061_v63 = vpop.f32.mrb[9].mxu1 }
 0x368   :  { %v369_v0 = vpop.f32.mrb[10].mxu1  ;;  %v935_v63 = vld [vmem:[%s2725_s0 + $0x18] sm:$0x1f] }
 0x369   :  { %v2062_v1 = vpop.f32.mrb[11].mxu1 }
 0x36a   :  { %v934_v1 = vld [vmem:[%s2725_s0 + $0x10] sm:$0x1f] }
 0x39b   :  { %v2467_v2 = vpop.f32.mrb[12].mxu0 }
 0x39c   :  { %v2469_v4 = vpop.f32.mrb[12].mxu1  ;;  %v2067_v5 = vpop.f32.mrb[13].mxu0 }
 0x39d   :  { %v2073_v6 = vpop.f32.mrb[13].mxu1  ;;  %v417_v7 = vpop.f32.mrb[14].mxu0  ;;  %v2509_v5 = vpack.c.bf16 %v935_v63, %v935_v63 }
 0x39e   :  { %v465_v9 = vpop.f32.mrb[14].mxu1  ;;  %v2068_v10 = vpop.f32.mrb[15].mxu0  ;;  %v939_v6 = vmul.f32 0.35355338, %v935_v63  ;;  %v2511_v7 = vpack.c.bf16 %v934_v1, %v934_v1 }
 0x39f   :  { %v2074_v11 = vpop.f32.mrb[15].mxu1  ;;  %v938_v9 = vmul.f32 0.35355338, %v934_v1 }
 0x3a0   :  { %v943_v10 = vpack.c.bf16 %v939_v6, %v939_v6 }
 0x3a1   :  { %v942_v11 = vpack.c.bf16 %v938_v9, %v938_v9 }
 0x3a3   :  { %v530_v13 = vpop.f32.mrb[16].mxu0 }
 0x3a4   :  { %v582_v14 = vpop.f32.mrb[16].mxu1  ;;  %v2079_v16 = vpop.f32.mrb[17].mxu0  ;;  %v692_v17 = vsel %vm222_vm2, %v530_v13, -inf }
 0x3a5   :  { %v695_v18 = vsel %vm222_vm2, %v582_v14, -inf  ;;  %693 = vmax.xlane.f32.xlu0 %v692_v17  ;;  %v533_v19 = vpop.f32.mrb[18].mxu0  ;;  %v2085_v21 = vpop.f32.mrb[17].mxu1 }
 0x3a6   :  { %696 = vmax.xlane.f32.xlu1 %v695_v18  ;;  %v2080_v22 = vpop.f32.mrb[19].mxu0  ;;  %v585_v23 = vpop.f32.mrb[18].mxu1 }
 0x3a7   :  { %v2086_v24 = vpop.f32.mrb[19].mxu1 }
 0x3ab   :  { %v634_v25 = vpop.f32.mrb[20].mxu0 }
 0x3ac   :  { %v698_v26 = vsel %vm222_vm2, %v634_v25, -inf  ;;  %v686_v27 = vpop.f32.mrb[20].mxu1  ;;  %v2091_v28 = vpop.f32.mrb[21].mxu0 }
 0x3ad   :  { %699 = vmax.xlane.f32.xlu0 %v698_v26  ;;  %v637_v29 = vpop.f32.mrb[22].mxu0  ;;  %v2097_v30 = vpop.f32.mrb[21].mxu1  ;;  %v701_v31 = vsel %vm222_vm2, %v686_v27, -inf }
 0x3ae   :  { %v2092_v32 = vpop.f32.mrb[23].mxu0  ;;  %v689_v33 = vpop.f32.mrb[22].mxu1 }
 0x3af   :  { %v2098_v34 = vpop.f32.mrb[23].mxu1 }
 0x3b1   :  { %702 = vmax.xlane.f32.xlu0 %v701_v31 }
 0x3b7   :  { %740 = vrot.lane.b32.xlu1 %v2408_v12, %s2307_s26 }
 0x432   :  { %v694_v35 = vpop.xlane.xlu0 %693 }
 0x433   :  { %v697_v36 = vpop.xlane.xlu1 %696  ;;  %v704_v37 = vsub.f32 %v530_v13, %v694_v35 }
 0x434   :  { %v705_v38 = vsub.f32 %v582_v14, %v697_v36 }
 0x435   :  { %v708_v39 = vmul.f32 1.442695, %v704_v37 }
 0x436   :  { %v710_v40 = vmul.f32 1.442695, %v705_v38 }
 0x437   :  { %2252 = vpow2.f32 %v708_v39  ;;  %v741_v41 = vpop.permute.xlu1 %740 }
 0x438   :  { %2254 = vpow2.f32 %v710_v40  ;;  %v746_v42 = vand.u32 %v741_v41, %v2382_v52 }
 0x43a   :  { %2100 = vmatpush3.bf16.msra.mxu0 %v746_v42  ;;  %v700_v46 = vpop.xlane.xlu0 %699 }
 0x43b   :  { %2111 = vmatprep.subr.bf16.mxu0 %v2300_v3  ;;  %v706_v49 = vsub.f32 %v634_v25, %v700_v46 }
 0x43d   :  { %v712_v51 = vmul.f32 1.442695, %v706_v49 }
 0x43e   :  { %v703_v47 = vpop.xlane.xlu0 %702 }
 0x43f   :  { %v707_v48 = vsub.f32 %v686_v27, %v703_v47 }
 0x441   :  { %v2253_v43 = vpop.eup %2252  ;;  %v714_v50 = vmul.f32 1.442695, %v707_v48 }
 0x442   :  { %v2255_v44 = vpop.eup %2254  ;;  %v716_v45 = vsel %vm222_vm2, %v2253_v43, 0.0 }
 0x443   :  { %717 = vadd.xlane.f32.xlu1 %v716_v45  ;;  %v719_v12 = vsel %vm222_vm2, %v2255_v44, 0.0  ;;  %2256 = vpow2.f32 %v714_v50 }
 0x444   :  { %720 = vadd.xlane.f32.xlu0 %v719_v12  ;;  %2258 = vpow2.f32 %v712_v51 }
 0x44d   :  { %v2483_v53 = vpop.eup %2256 }
 0x44e   :  { %v2485_v54 = vpop.eup %2258  ;;  %v725_v55 = vsel %vm222_vm2, %v2483_v53, 0.0 }
 0x454   :  { %836 = vrot.lane.b32.xlu1 %v2420_v20, %s2307_s26  ;;  %v932_v20 = vld [vmem:[%s2725_s0] sm:$0x1f] }
 0x455   :  { %v2499_v59 = vpack.c.bf16 %v932_v20, %v932_v20  ;;  %v936_v60 = vmul.f32 0.35355338, %v932_v20 }
 0x457   :  { %v940_v0 = vpack.c.bf16 %v936_v60, %v936_v60 }
 0x458   :  { %884 = vrot.lane.b32.xlu1 %v2413_v15, %s2307_s26  ;;  %v722_v15 = vsel %vm222_vm2, %v2485_v54, 0.0 }
 0x45a   :  { %788 = vrot.lane.b32.xlu0 %v2402_v8, %s2307_s26  ;;  %v933_v8 = vld [vmem:[%s2725_s0 + $0x8] sm:$0x1f] }
 0x45b   :  { %v2497_v56 = vpack.c.bf16 %v933_v8, %v933_v8  ;;  %v937_v57 = vmul.f32 0.35355338, %v933_v8 }
 0x45d   :  { %v941_v61 = vpack.c.bf16 %v937_v57, %v937_v57 }
 0x479   :  { %726 = vadd.xlane.f32.xlu0 %v725_v55 }
 0x47c   :  { %723 = vadd.xlane.f32.xlu1 %v722_v15 }
 0x48d   :  { %1004 = vrot.lane.b32.xlu1 %v2497_v56, %s2308_s2 }
 0x48f   :  { %952 = vrot.lane.b32.xlu0 %v2499_v59, %s2308_s2 }
 0x491   :  { %1001 = vrot.lane.b32.xlu1 %v941_v61, %s2309_s7 }
 0x493   :  { %949 = vrot.lane.b32.xlu0 %v940_v0, %s2309_s7 }
 0x495   :  { %1108 = vrot.lane.b32.xlu1 %v2509_v5, %s2308_s2 }
 0x497   :  { %1056 = vrot.lane.b32.xlu0 %v2511_v7, %s2308_s2 }
 0x499   :  { %1105 = vrot.lane.b32.xlu1 %v943_v10, %s2309_s7 }
 0x49b   :  { %1053 = vrot.lane.b32.xlu0 %v942_v11, %s2309_s7 }
 0x4d0   :  { %v718_v13 = vpop.xlane.xlu1 %717 }
 0x4d1   :  { %2260 = vrcp.f32 %v718_v13  ;;  %v721_v14 = vpop.xlane.xlu0 %720 }
 0x4d2   :  { %2262 = vrcp.f32 %v721_v14 }
 0x4d4   :  { %v837_v18 = vpop.permute.xlu1 %836 }
 0x4d5   :  { %v789_v16 = vpop.permute.xlu0 %788  ;;  %v842_v26 = vand.u32 %v837_v18, %v2382_v52 }
 0x4d6   :  { %v794_v17 = vand.u32 %v789_v16, %v2382_v52 }
 0x4d8   :  { %2106 = vmatpush3.bf16.msra.mxu1 %v794_v17  ;;  %v885_v24 = vpop.permute.xlu1 %884 }
 0x4d9   :  { %2117 = vmatprep.subr.bf16.mxu1 %v2300_v3  ;;  %v890_v28 = vand.u32 %v885_v24, %v2382_v52 }
 0x4db   :  { %v2261_v19 = vpop.eup %2260 }
 0x4dc   :  { %v2263_v21 = vpop.eup %2262  ;;  %v732_v22 = vmul.f32 %v2261_v19, %v2253_v43 }
 0x4dd   :  { %v733_v23 = vmul.f32 %v2263_v21, %v2255_v44 }
 0x4de   :  { %v736_v25 = vpack.c.bf16 %v732_v22, %v732_v22 }
 0x4df   :  { %v737_v27 = vpack.c.bf16 %v733_v23, %v733_v23 }
 0x4e0   :  { %2102 = vmatmul.mubr.msk.bf16.vlgmr.msra.gmra.mrb[24].mxu0 %vm273_vm5, %v736_v25 }
 0x4e1   :  { %2108 = vmatmul.mubr.msk.bf16.vlgmr.msra.gmra.mrb[24].mxu1 %vm273_vm5, %v737_v27  ;;  %2112 = vmatpush3.bf16.msra.mxu0 %v842_v26 }
 0x4e2   :  { %2118 = vmatpush3.bf16.msra.mxu1 %v890_v28  ;;  %2119 = vmatprep.mubr.msk.bf16.mxu1 %vm2301_vm0, %v2300_v3 }
 0x4e3   :  { %2129 = vmatprep.subr.bf16.mxu1 %v2300_v3  ;;  %2113 = vmatprep.mubr.msk.bf16.mxu0 %vm2301_vm0, %v2300_v3 }
 0x4e4   :  { %2123 = vmatprep.subr.bf16.mxu0 %v2300_v3 }
 0x506   :  { %v727_v29 = vpop.xlane.xlu0 %726 }
 0x507   :  { %2264 = vrcp.f32 %v727_v29 }
 0x509   :  { %v724_v30 = vpop.xlane.xlu1 %723 }
 0x50a   :  { %2266 = vrcp.f32 %v724_v30  ;;  %v953_v31 = vpop.permute.xlu0 %952 }
 0x50b   :  { %v958_v41 = vsel %vm28_vm1, %v953_v31, 0 }
 0x50d   :  { %v1005_v33 = vpop.permute.xlu1 %1004 }
 0x50e   :  { %v1010_v36 = vsel %vm28_vm1, %v1005_v33, 0  ;;  %v950_v40 = vpop.permute.xlu0 %949 }
 0x511   :  { %v2265_v32 = vpop.eup %2264  ;;  %v1002_v39 = vpop.permute.xlu1 %1001 }
 0x512   :  { %v735_v34 = vmul.f32 %v2265_v32, %v2483_v53  ;;  %v1057_v44 = vpop.permute.xlu0 %1056 }
 0x513   :  { %v1062_v12 = vsel %vm28_vm1, %v1057_v44, 0 }
 0x514   :  { %v2267_v35 = vpop.eup %2266  ;;  %v739_v37 = vpack.c.bf16 %v735_v34, %v735_v34 }
 0x515   :  { %v734_v38 = vmul.f32 %v2267_v35, %v2485_v54  ;;  %v1109_v43 = vpop.permute.xlu1 %1108 }
 0x516   :  { %2120 = vmatmul.mubr.msk.bf16.vlgmr.msra.gmra.mrb[28].mxu1 %vm273_vm5, %v739_v37  ;;  %v1114_v45 = vsel %vm28_vm1, %v1109_v43, 0  ;;  %v1054_v47 = vpop.permute.xlu0 %1053 }
 0x517   :  { %2130 = vmatpush3.bf16.xpose.msra.mxu1 %v1010_v36  ;;  %v738_v42 = vpack.c.bf16 %v734_v38, %v734_v38  ;;  %2131 = vmatprep.mubr.msk.bf16.mxu1 %vm2301_vm0, %v2300_v3 }
 0x518   :  { %2141 = vmatprep.subr.bf16.mxu1 %v2300_v3 }
 0x519   :  { %2114 = vmatmul.mubr.msk.bf16.vlgmr.msra.gmra.mrb[28].mxu0 %vm273_vm5, %v738_v42  ;;  %v1106_v46 = vpop.permute.xlu1 %1105 }
 0x51a   :  { %2124 = vmatpush3.bf16.xpose.msra.mxu0 %v958_v41  ;;  %2125 = vmatprep.mubr.msk.bf16.mxu0 %vm2301_vm0, %v2300_v3 }
 0x51b   :  { %2135 = vmatprep.subr.bf16.mxu0 %v2300_v3 }
 0x51e   :  { %2132 = vmatmul.mubr.msk.bf16.vlgmr.msra.gmra.mrb[32].mxu1 %vm28_vm1, %v1002_v39 }
 0x51f   :  { %2142 = vmatpush3.bf16.xpose.msra.mxu1 %v1114_v45  ;;  %2143 = vmatprep.mubr.msk.bf16.mxu1 %vm2301_vm0, %v2300_v3 }
 0x520   :  { %2153 = vmatprep.subr.bf16.mxu1 %v2300_v3 }
 0x521   :  { %2126 = vmatmul.mubr.msk.bf16.vlgmr.msra.gmra.mrb[32].mxu0 %vm28_vm1, %v950_v40 }
 0x522   :  { %2136 = vmatpush3.bf16.xpose.msra.mxu0 %v1062_v12  ;;  %2137 = vmatprep.mubr.msk.bf16.mxu0 %vm2301_vm0, %v2300_v3 }
 0x523   :  { %2147 = vmatprep.subr.bf16.mxu0 %v2300_v3 }
 0x526   :  { %2144 = vmatmul.mubr.msk.bf16.vlgmr.msra.gmra.mrb[36].mxu1 %vm28_vm1, %v1106_v46 }
 0x527   :  { %2155 = vmatprep.mubr.msk.bf16.mxu1 %vm2301_vm0, %v2300_v3 }
 0x529   :  { %2138 = vmatmul.mubr.msk.bf16.vlgmr.msra.gmra.mrb[36].mxu0 %vm28_vm1, %v1054_v47 }
 0x52a   :  { %2149 = vmatprep.mubr.msk.bf16.mxu0 %vm2301_vm0, %v2300_v3 }
 0x5b3   :  { %v2555_v48 = vpop.f32.mrb[24].mxu0 }
 0x5b4   :  { %v2557_v49 = vpop.f32.mrb[24].mxu1  ;;  %v2103_v50 = vpop.f32.mrb[25].mxu0 }
 0x5b5   :  { %v2109_v51 = vpop.f32.mrb[25].mxu1  ;;  %v785_v53 = vpop.f32.mrb[26].mxu0 }
 0x5b6   :  { %v833_v54 = vpop.f32.mrb[26].mxu1  ;;  %v2104_v55 = vpop.f32.mrb[27].mxu0 }
 0x5b7   :  { %v2110_v15 = vpop.f32.mrb[27].mxu1 }
 0x5e9   :  { %v2559_v8 = vpop.f32.mrb[28].mxu1 }
 0x5ea   :  { %v2121_v20 = vpop.f32.mrb[29].mxu1 }
 0x5eb   :  { %v929_v57 = vpop.f32.mrb[30].mxu1 }
 0x5ec   :  { %v2122_v60 = vpop.f32.mrb[31].mxu1  ;;  %v2561_v61 = vpop.f32.mrb[28].mxu0  ;;  %v1398_v57 = vld [vmem:[%s2725_s0 + $0x10] sm:$0x1f] }
 0x5ed   :  { %v2115_v63 = vpop.f32.mrb[29].mxu0 }
 0x5ee   :  { %v881_v0 = vpop.f32.mrb[30].mxu0  ;;  %v1399_v63 = vld [vmem:[%s2725_s0 + $0x18] sm:$0x1f] }
 0x5ef   :  { %v2116_v1 = vpop.f32.mrb[31].mxu0  ;;  %v2601_v0 = vpack.c.bf16 %v1398_v57, %v1398_v57 }
 0x5f0   :  { %v1402_v1 = vmul.f32 0.35355338, %v1398_v57 }
 0x5f1   :  { %v1046_v6 = vpop.f32.mrb[32].mxu1 }
 0x5f2   :  { %v1159_v9 = vsel %vm222_vm2, %v1046_v6, -inf  ;;  %v2133_v10 = vpop.f32.mrb[33].mxu1 }
 0x5f3   :  { %1160 = vmax.xlane.f32.xlu1 %v1159_v9  ;;  %v1049_v11 = vpop.f32.mrb[34].mxu1  ;;  %v1403_v9 = vmul.f32 0.35355338, %v1399_v63  ;;  %v1406_v10 = vpack.c.bf16 %v1402_v1, %v1402_v1 }
 0x5f4   :  { %v994_v13 = vpop.f32.mrb[32].mxu0  ;;  %v2134_v14 = vpop.f32.mrb[35].mxu1 }
 0x5f5   :  { %v2127_v16 = vpop.f32.mrb[33].mxu0  ;;  %v1156_v17 = vsel %vm222_vm2, %v994_v13, -inf  ;;  %v1407_v11 = vpack.c.bf16 %v1403_v9, %v1403_v9 }
 0x5f6   :  { %1157 = vmax.xlane.f32.xlu0 %v1156_v17  ;;  %v997_v18 = vpop.f32.mrb[34].mxu0 }
 0x5f7   :  { %v2128_v19 = vpop.f32.mrb[35].mxu0 }
 0x5f9   :  { %v1150_v21 = vpop.f32.mrb[36].mxu1 }
 0x5fa   :  { %v2145_v22 = vpop.f32.mrb[37].mxu1  ;;  %v1165_v29 = vsel %vm222_vm2, %v1150_v21, -inf }
 0x5fb   :  { %v1153_v23 = vpop.f32.mrb[38].mxu1 }
 0x5fc   :  { %v1098_v24 = vpop.f32.mrb[36].mxu0  ;;  %v2146_v25 = vpop.f32.mrb[39].mxu1 }
 0x5fd   :  { %v1162_v26 = vsel %vm222_vm2, %v1098_v24, -inf  ;;  %v2139_v27 = vpop.f32.mrb[37].mxu0 }
 0x5fe   :  { %1163 = vmax.xlane.f32.xlu0 %v1162_v26  ;;  %v1101_v28 = vpop.f32.mrb[38].mxu0 }
 0x5ff   :  { %v2140_v30 = vpop.f32.mrb[39].mxu0 }
 0x602   :  { %1166 = vmax.xlane.f32.xlu0 %v1165_v29 }
 0x604   :  { %1204 = vrot.lane.b32.xlu1 %v2499_v59, %s2310_s8 }
 0x680   :  { %v1161_v31 = vpop.xlane.xlu1 %1160 }
 0x681   :  { %v1169_v32 = vsub.f32 %v1046_v6, %v1161_v31  ;;  %v2603_v6 = vpack.c.bf16 %v1399_v63, %v1399_v63 }
 0x683   :  { %v1174_v33 = vmul.f32 1.442695, %v1169_v32  ;;  %v1158_v34 = vpop.xlane.xlu0 %1157 }
 0x684   :  { %v1168_v35 = vsub.f32 %v994_v13, %v1158_v34  ;;  %v1205_v36 = vpop.permute.xlu1 %1204 }
 0x685   :  { %2268 = vpow2.f32 %v1174_v33  ;;  %v1210_v37 = vand.u32 %v1205_v36, %v2382_v52 }
 0x686   :  { %v1172_v38 = vmul.f32 1.442695, %v1168_v35 }
 0x687   :  { %2148 = vmatpush3.bf16.msra.mxu0 %v1210_v37 }
 0x688   :  { %2270 = vpow2.f32 %v1172_v38  ;;  %2159 = vmatprep.subr.bf16.mxu0 %v2300_v3 }
 0x68b   :  { %v1164_v42 = vpop.xlane.xlu0 %1163 }
 0x68c   :  { %v1170_v12 = vsub.f32 %v1098_v24, %v1164_v42 }
 0x68e   :  { %v1176_v46 = vmul.f32 1.442695, %v1170_v12 }
 0x68f   :  { %v2269_v39 = vpop.eup %2268  ;;  %v1167_v43 = vpop.xlane.xlu0 %1166 }
 0x690   :  { %v1183_v40 = vsel %vm222_vm2, %v2269_v39, 0.0  ;;  %v1171_v44 = vsub.f32 %v1150_v21, %v1167_v43 }
 0x691   :  { %1184 = vadd.xlane.f32.xlu0 %v1183_v40 }
 0x692   :  { %v2271_v41 = vpop.eup %2270  ;;  %v1178_v45 = vmul.f32 1.442695, %v1171_v44 }
 0x693   :  { %v1180_v59 = vsel %vm222_vm2, %v2271_v41, 0.0 }
 0x694   :  { %1181 = vadd.xlane.f32.xlu1 %v1180_v59  ;;  %2272 = vpow2.f32 %v1178_v45 }
 0x695   :  { %2274 = vpow2.f32 %v1176_v46 }
 0x69e   :  { %v2575_v47 = vpop.eup %2272 }
 0x69f   :  { %v1189_v50 = vsel %vm222_vm2, %v2575_v47, 0.0  ;;  %v2579_v51 = vpop.eup %2274 }
 0x6a5   :  { %1300 = vrot.lane.b32.xlu1 %v2511_v7, %s2310_s8  ;;  %v1397_v7 = vld [vmem:[%s2725_s0 + $0x8] sm:$0x1f] }
 0x6a6   :  { %v2591_v55 = vpack.c.bf16 %v1397_v7, %v1397_v7  ;;  %v1401_v15 = vmul.f32 0.35355338, %v1397_v7 }
 0x6a7   :  { %1252 = vrot.lane.b32.xlu0 %v2497_v56, %s2310_s8  ;;  %v1186_v56 = vsel %vm222_vm2, %v2579_v51, 0.0 }
 0x6a8   :  { %v1405_v60 = vpack.c.bf16 %v1401_v15, %v1401_v15 }
 0x6a9   :  { %1348 = vrot.lane.b32.xlu1 %v2509_v5, %s2310_s8  ;;  %v1396_v5 = vld [vmem:[%s2725_s0] sm:$0x1f]  ;;  %s2313_s0 = smov 40  }
 0x6aa   :  { %v2589_v53 = vpack.c.bf16 %v1396_v5, %v1396_v5  ;;  %v1400_v54 = vmul.f32 0.35355338, %v1396_v5 }
 0x6ac   :  { %v1404_v20 = vpack.c.bf16 %v1400_v54, %v1400_v54 }
 0x6c6   :  { %1190 = vadd.xlane.f32.xlu0 %v1189_v50 }
 0x6cd   :  { %1187 = vadd.xlane.f32.xlu1 %v1186_v56 }
 0x6dc   :  { %1416 = vrot.lane.b32.xlu0 %v2589_v53, %s2311_s13 }
 0x6de   :  { %1468 = vrot.lane.b32.xlu1 %v2591_v55, %s2311_s13 }
 0x6e0   :  { %1413 = vrot.lane.b32.xlu0 %v1404_v20, %s2312_s18 }
 0x6e2   :  { %1465 = vrot.lane.b32.xlu1 %v1405_v60, %s2312_s18 }
 0x6e4   :  { %1520 = vrot.lane.b32.xlu0 %v2601_v0, %s2311_s13 }
 0x6e6   :  { %1572 = vrot.lane.b32.xlu1 %v2603_v6, %s2311_s13 }
 0x6e8   :  { %1517 = vrot.lane.b32.xlu0 %v1406_v10, %s2312_s18 }
 0x6ea   :  { %1569 = vrot.lane.b32.xlu1 %v1407_v11, %s2312_s18 }
 0x71e   :  { %v1185_v13 = vpop.xlane.xlu0 %1184 }
 0x71f   :  { %2276 = vrcp.f32 %v1185_v13 }
 0x721   :  { %v1182_v14 = vpop.xlane.xlu1 %1181 }
 0x722   :  { %2278 = vrcp.f32 %v1182_v14  ;;  %v1253_v16 = vpop.permute.xlu0 %1252 }
 0x723   :  { %v1258_v17 = vand.u32 %v1253_v16, %v2382_v52 }
 0x725   :  { %v1301_v18 = vpop.permute.xlu1 %1300  ;;  %2154 = vmatpush3.bf16.msra.mxu1 %v1258_v17 }
 0x726   :  { %2165 = vmatprep.subr.bf16.mxu1 %v2300_v3  ;;  %v1306_v28 = vand.u32 %v1301_v18, %v2382_v52 }
 0x729   :  { %v2277_v19 = vpop.eup %2276  ;;  %v1349_v21 = vpop.permute.xlu1 %1348 }
 0x72a   :  { %v1197_v22 = vmul.f32 %v2277_v19, %v2269_v39  ;;  %v1354_v23 = vand.u32 %v1349_v21, %v2382_v52 }
 0x72c   :  { %v2279_v24 = vpop.eup %2278  ;;  %v1201_v25 = vpack.c.bf16 %v1197_v22, %v1197_v22 }
 0x72d   :  { %v1196_v26 = vmul.f32 %v2279_v24, %v2271_v41 }
 0x72e   :  { %2156 = vmatmul.mubr.msk.bf16.vlgmr.msra.gmra.mrb[40].mxu1 %vm273_vm5, %v1201_v25 }
 0x72f   :  { %2166 = vmatpush3.bf16.msra.mxu1 %v1354_v23  ;;  %v1200_v27 = vpack.c.bf16 %v1196_v26, %v1196_v26  ;;  %2167 = vmatprep.mubr.msk.bf16.mxu1 %vm2301_vm0, %v2300_v3 }
 0x730   :  { %2177 = vmatprep.subr.bf16.mxu1 %v2300_v3 }
 0x731   :  { %2150 = vmatmul.mubr.msk.bf16.vlgmr.msra.gmra.mrb[40].mxu0 %vm273_vm5, %v1200_v27 }
 0x732   :  { %2160 = vmatpush3.bf16.msra.mxu0 %v1306_v28  ;;  %2161 = vmatprep.mubr.msk.bf16.mxu0 %vm2301_vm0, %v2300_v3 }
 0x733   :  { %2171 = vmatprep.subr.bf16.mxu0 %v2300_v3 }
 0x753   :  { %v1191_v29 = vpop.xlane.xlu0 %1190 }
 0x754   :  { %2280 = vrcp.f32 %v1191_v29 }
 0x757   :  { %v1417_v36 = vpop.permute.xlu0 %1416 }
 0x758   :  { %v1422_v59 = vsel %vm28_vm1, %v1417_v36, 0 }
 0x75a   :  { %v1188_v30 = vpop.xlane.xlu1 %1187 }
 0x75b   :  { %2282 = vrcp.f32 %v1188_v30  ;;  %v1414_v40 = vpop.permute.xlu0 %1413 }
 0x75e   :  { %v2281_v31 = vpop.eup %2280  ;;  %v1469_v32 = vpop.permute.xlu1 %1468 }
 0x75f   :  { %v1199_v33 = vmul.f32 %v2281_v31, %v2575_v47  ;;  %v1474_v34 = vsel %vm28_vm1, %v1469_v32, 0  ;;  %v1521_v44 = vpop.permute.xlu0 %1520 }
 0x760   :  { %v1526_v45 = vsel %vm28_vm1, %v1521_v44, 0 }
 0x761   :  { %v1203_v35 = vpack.c.bf16 %v1199_v33, %v1199_v33 }
 0x762   :  { %v1466_v37 = vpop.permute.xlu1 %1465 }
 0x763   :  { %2168 = vmatmul.mubr.msk.bf16.vlgmr.msra.gmra.mrb[44].mxu1 %vm273_vm5, %v1203_v35  ;;  %v1518_v46 = vpop.permute.xlu0 %1517 }
 0x764   :  { %2178 = vmatpush3.bf16.xpose.msra.mxu1 %v1474_v34  ;;  %2179 = vmatprep.mubr.msk.bf16.mxu1 %vm2301_vm0, %v2300_v3 }
 0x765   :  { %v2283_v38 = vpop.eup %2282  ;;  %2189 = vmatprep.subr.bf16.mxu1 %v2300_v3 }
 0x766   :  { %v1198_v39 = vmul.f32 %v2283_v38, %v2579_v51  ;;  %v1573_v41 = vpop.permute.xlu1 %1572 }
 0x767   :  { %v1578_v43 = vsel %vm28_vm1, %v1573_v41, 0 }
 0x768   :  { %v1202_v42 = vpack.c.bf16 %v1198_v39, %v1198_v39 }
 0x76a   :  { %2162 = vmatmul.mubr.msk.bf16.vlgmr.msra.gmra.mrb[44].mxu0 %vm273_vm5, %v1202_v42  ;;  %v1570_v12 = vpop.permute.xlu1 %1569 }
 0x76b   :  { %2180 = vmatmul.mubr.msk.bf16.vlgmr.msra.gmra.mrb[48].mxu1 %vm28_vm1, %v1466_v37  ;;  %2172 = vmatpush3.bf16.xpose.msra.mxu0 %v1422_v59 }
 0x76c   :  { %2173 = vmatprep.mubr.msk.bf16.mxu0 %vm2301_vm0, %v2300_v3  ;;  %2183 = vmatprep.subr.bf16.mxu0 %v2300_v3 }
 0x76d   :  { %2190 = vmatpush3.bf16.xpose.msra.mxu1 %v1578_v43  ;;  %2191 = vmatprep.mubr.msk.bf16.mxu1 %vm2301_vm0, %v2300_v3 }
 0x76e   :  { %2201 = vmatprep.subr.bf16.mxu1 %v2300_v3 }
 0x772   :  { %2174 = vmatmul.mubr.msk.bf16.vlgmr.msra.gmra.mrb[48].mxu0 %vm28_vm1, %v1414_v40 }
 0x773   :  { %2184 = vmatpush3.bf16.xpose.msra.mxu0 %v1526_v45  ;;  %2185 = vmatprep.mubr.msk.bf16.mxu0 %vm2301_vm0, %v2300_v3 }
 0x774   :  { %2192 = vmatmul.mubr.msk.bf16.vlgmr.msra.gmra.mrb[52].mxu1 %vm28_vm1, %v1570_v12  ;;  %2195 = vmatprep.subr.bf16.mxu0 %v2300_v3 }
 0x775   :  { %2203 = vmatprep.mubr.msk.bf16.mxu1 %vm2301_vm0, %v2300_v3 }
 0x77a   :  { %2186 = vmatmul.mubr.msk.bf16.vlgmr.msra.gmra.mrb[52].mxu0 %vm28_vm1, %v1518_v46 }
 0x77b   :  { %2197 = vmatprep.mubr.msk.bf16.mxu0 %vm2301_vm0, %v2300_v3 }
 0x801   :  { %v2647_v47 = vpop.f32.mrb[40].mxu1 }
 0x802   :  { %v2157_v50 = vpop.f32.mrb[41].mxu1 }
 0x803   :  { %v1297_v51 = vpop.f32.mrb[42].mxu1 }
 0x804   :  { %v2158_v56 = vpop.f32.mrb[43].mxu1  ;;  %v2649_v5 = vpop.f32.mrb[40].mxu0 }
 0x805   :  { %v2151_v7 = vpop.f32.mrb[41].mxu0 }
 0x806   :  { %v1249_v54 = vpop.f32.mrb[42].mxu0 }
 0x807   :  { %v2152_v15 = vpop.f32.mrb[43].mxu0 }
 0x836   :  { %v2651_v20 = vpop.f32.mrb[44].mxu1 }
 0x837   :  { %v2169_v57 = vpop.f32.mrb[45].mxu1 }
 0x838   :  { %v1393_v60 = vpop.f32.mrb[46].mxu1 }
 0x839   :  { %v2170_v63 = vpop.f32.mrb[47].mxu1 }
 0x83d   :  { %v2653_v1 = vpop.f32.mrb[44].mxu0 }
 0x83e   :  { %v1510_v9 = vpop.f32.mrb[48].mxu1  ;;  %v2163_v10 = vpop.f32.mrb[45].mxu0 }
 0x83f   :  { %v1623_v11 = vsel %vm222_vm2, %v1510_v9, -inf  ;;  %v1345_v13 = vpop.f32.mrb[46].mxu0  ;;  %v2181_v14 = vpop.f32.mrb[49].mxu1 }
 0x840   :  { %1624 = vmax.xlane.f32.xlu1 %v1623_v11  ;;  %v2164_v16 = vpop.f32.mrb[47].mxu0  ;;  %v1513_v17 = vpop.f32.mrb[50].mxu1 }
 0x841   :  { %v2182_v18 = vpop.f32.mrb[51].mxu1 }
 0x845   :  { %v1458_v19 = vpop.f32.mrb[48].mxu0 }
 0x846   :  { %v2175_v21 = vpop.f32.mrb[49].mxu0  ;;  %v1620_v22 = vsel %vm222_vm2, %v1458_v19, -inf }
 0x847   :  { %1621 = vmax.xlane.f32.xlu0 %v1620_v22  ;;  %v1461_v23 = vpop.f32.mrb[50].mxu0  ;;  %v1614_v24 = vpop.f32.mrb[52].mxu1 }
 0x848   :  { %v2176_v25 = vpop.f32.mrb[51].mxu0  ;;  %v2193_v26 = vpop.f32.mrb[53].mxu1  ;;  %v1629_v34 = vsel %vm222_vm2, %v1614_v24, -inf }
 0x849   :  { %v1617_v27 = vpop.f32.mrb[54].mxu1 }
 0x84a   :  { %v2194_v28 = vpop.f32.mrb[55].mxu1 }
 0x84d   :  { %v1562_v29 = vpop.f32.mrb[52].mxu0 }
 0x84e   :  { %v2187_v30 = vpop.f32.mrb[53].mxu0  ;;  %v1626_v31 = vsel %vm222_vm2, %v1562_v29, -inf }
 0x84f   :  { %1627 = vmax.xlane.f32.xlu0 %v1626_v31  ;;  %v1565_v32 = vpop.f32.mrb[54].mxu0 }
 0x850   :  { %v2188_v33 = vpop.f32.mrb[55].mxu0 }
 0x851   :  { %1668 = vrot.lane.b32.xlu1 %v2589_v53, %s2313_s0 }
 0x853   :  { %1630 = vmax.xlane.f32.xlu0 %v1629_v34 }
 0x8cd   :  { %v1625_v35 = vpop.xlane.xlu1 %1624 }
 0x8ce   :  { %v1633_v36 = vsub.f32 %v1510_v9, %v1625_v35 }
 0x8d0   :  { %v1638_v37 = vmul.f32 1.442695, %v1633_v36 }
 0x8d1   :  { %v1669_v38 = vpop.permute.xlu1 %1668 }
 0x8d2   :  { %2284 = vpow2.f32 %v1638_v37  ;;  %v1674_v39 = vand.u32 %v1669_v38, %v2382_v52 }
 0x8d4   :  { %v1622_v40 = vpop.xlane.xlu0 %1621  ;;  %2196 = vmatpush3.bf16.msra.mxu0 %v1674_v39 }
 0x8d5   :  { %v1632_v41 = vsub.f32 %v1458_v19, %v1622_v40  ;;  %2207 = vmatprep.subr.bf16.mxu0 %v2300_v3 }
 0x8d7   :  { %v1636_v59 = vmul.f32 1.442695, %v1632_v41 }
 0x8d9   :  { %2286 = vpow2.f32 %v1636_v59 }
 0x8dc   :  { %v2285_v42 = vpop.eup %2284  ;;  %v1628_v43 = vpop.xlane.xlu0 %1627 }
 0x8dd   :  { %v1634_v44 = vsub.f32 %v1562_v29, %v1628_v43  ;;  %v1647_v53 = vsel %vm222_vm2, %v2285_v42, 0.0 }
 0x8de   :  { %1648 = vadd.xlane.f32.xlu0 %v1647_v53 }
 0x8df   :  { %v1640_v45 = vmul.f32 1.442695, %v1634_v44 }
 0x8e0   :  { %v1631_v12 = vpop.xlane.xlu0 %1630 }
 0x8e1   :  { %2288 = vpow2.f32 %v1640_v45  ;;  %v1635_v46 = vsub.f32 %v1614_v24, %v1631_v12 }
 0x8e3   :  { %v2287_v50 = vpop.eup %2286  ;;  %v1642_v51 = vmul.f32 1.442695, %v1635_v46 }
 0x8e4   :  { %v1644_v56 = vsel %vm222_vm2, %v2287_v50, 0.0 }
 0x8e5   :  { %2290 = vpow2.f32 %v1642_v51  ;;  %1645 = vadd.xlane.f32.xlu1 %v1644_v56 }
 0x8eb   :  { %v2289_v7 = vpop.eup %2288 }
 0x8ec   :  { %v1650_v54 = vsel %vm222_vm2, %v2289_v7, 0.0 }
 0x8ed   :  { %1651 = vadd.xlane.f32.xlu1 %v1650_v54 }
 0x8ef   :  { %v2291_v15 = vpop.eup %2290 }
 0x8f0   :  { %v1653_v57 = vsel %vm222_vm2, %v2291_v15, 0.0 }
 0x8f1   :  { %1654 = vadd.xlane.f32.xlu0 %v1653_v57 }
 0x8fe   :  { %1764 = vrot.lane.b32.xlu1 %v2601_v0, %s2313_s0 }
 0x902   :  { %1812 = vrot.lane.b32.xlu1 %v2603_v6, %s2313_s0 }
 0x906   :  { %1866 = vrot.lane.b32.xlu1 %v2557_v49, %s2314_s19 }
 0x907   :  { %1716 = vrot.lane.b32.xlu0 %v2591_v55, %s2313_s0 }
 0x90a   :  { %1870 = vrot.lane.b32.xlu1 %v2559_v8, %s2314_s19 }
 0x90b   :  { %1864 = vrot.lane.b32.xlu0 %v2555_v48, %s2314_s19 }
 0x90e   :  { %1882 = vrot.lane.b32.xlu1 %v2647_v47, %s2315_s20 }
 0x90f   :  { %1868 = vrot.lane.b32.xlu0 %v2561_v61, %s2314_s19 }
 0x912   :  { %1886 = vrot.lane.b32.xlu1 %v2651_v20, %s2315_s20 }
 0x913   :  { %1880 = vrot.lane.b32.xlu0 %v2649_v5, %s2315_s20 }
 0x917   :  { %1884 = vrot.lane.b32.xlu0 %v2653_v1, %s2315_s20 }
 0x96b   :  { %v1649_v0 = vpop.xlane.xlu0 %1648 }
 0x972   :  { %v1646_v49 = vpop.xlane.xlu1 %1645 }
 0x973   :  { %2292 = vrcp.f32 %v1646_v49 }
 0x974   :  { %2294 = vrcp.f32 %v1649_v0 }
 0x97a   :  { %v1652_v55 = vpop.xlane.xlu1 %1651 }
 0x97b   :  { %2296 = vrcp.f32 %v1652_v55 }
 0x97d   :  { %v2293_v8 = vpop.eup %2292 }
 0x97e   :  { %v1660_v6 = vmul.f32 %v2293_v8, %v2287_v50  ;;  %v1765_v48 = vpop.permute.xlu1 %1764  ;;  %v1655_v60 = vpop.xlane.xlu0 %1654 }
 0x97f   :  { %v2295_v63 = vpop.eup %2294  ;;  %v1770_v47 = vand.u32 %v1765_v48, %v2382_v52  ;;  %2298 = vrcp.f32 %v1655_v60 }
 0x980   :  { %v1664_v61 = vpack.c.bf16 %v1660_v6, %v1660_v6  ;;  %v1661_v20 = vmul.f32 %v2295_v63, %v2285_v42 }
 0x982   :  { %2198 = vmatmul.mubr.msk.bf16.vlgmr.msra.gmra.mrb[56].mxu0 %vm273_vm5, %v1664_v61  ;;  %v1717_v5 = vpop.permute.xlu0 %1716  ;;  %v1813_v9 = vpop.permute.xlu1 %1812  ;;  %v1665_v14 = vpack.c.bf16 %v1661_v20, %v1661_v20 }
 0x983   :  { %v1722_v1 = vand.u32 %v1717_v5, %v2382_v52  ;;  %2208 = vmatpush3.bf16.msra.mxu0 %v1770_v47  ;;  %2209 = vmatprep.mubr.msk.bf16.mxu0 %vm2301_vm0, %v2300_v3  ;;  %v1818_v11 = vand.u32 %v1813_v9, %v2382_v52 }
 0x985   :  { %v2297_v10 = vpop.eup %2296  ;;  %2202 = vmatpush3.bf16.msra.mxu1 %v1722_v1 }
 0x986   :  { %v1662_v13 = vmul.f32 %v2297_v10, %v2289_v7  ;;  %2213 = vmatprep.subr.bf16.mxu1 %v2300_v3  ;;  %v1865_v35 = vpop.permute.xlu0 %1864  ;;  %v1867_v36 = vpop.permute.xlu1 %1866 }
 0x987   :  { %v1908_v59 = vsel %vm28_vm1, %v2463_v58, %v1865_v35  ;;  %v1909_v45 = vsel %vm28_vm1, %v2465_v62, %v1867_v36 }
 0x988   :  { %2204 = vmatmul.mubr.msk.bf16.vlgmr.msra.gmra.mrb[56].mxu1 %vm273_vm5, %v1665_v14  ;;  %v1666_v16 = vpack.c.bf16 %v1662_v13, %v1662_v13 }
 0x989   :  { %v2299_v17 = vpop.eup %2298  ;;  %2214 = vmatpush3.bf16.msra.mxu1 %v1818_v11  ;;  %2215 = vmatprep.mubr.msk.bf16.mxu1 %vm2301_vm0, %v2300_v3 }
 0x98a   :  { %v1663_v18 = vmul.f32 %v2299_v17, %v2291_v15  ;;  %2210 = vmatmul.mubr.msk.bf16.vlgmr.msra.gmra.mrb[60].mxu0 %vm273_vm5, %v1666_v16  ;;  %v1869_v37 = vpop.permute.xlu0 %1868  ;;  %v1871_v38 = vpop.permute.xlu1 %1870 }
 0x98b   :  { %v1910_v58 = vsel %vm28_vm1, %v2467_v2, %v1869_v37  ;;  %v1911_v62 = vsel %vm28_vm1, %v2469_v4, %v1871_v38 }
 0x98c   :  { %v1667_v19 = vpack.c.bf16 %v1663_v18, %v1663_v18 }
 0x98e   :  { %v1881_v39 = vpop.permute.xlu0 %1880  ;;  %v1883_v40 = vpop.permute.xlu1 %1882 }
 0x98f   :  { %v1913_v42 = vsel %vm1912_vm6, %v1908_v59, %v1881_v39  ;;  %v1914_v12 = vsel %vm1912_vm6, %v1909_v45, %v1883_v40 }
 0x990   :  { %2216 = vmatmul.mubr.msk.bf16.vlgmr.msra.gmra.mrb[60].mxu1 %vm273_vm5, %v1667_v19 }
 0x992   :  { %v1885_v41 = vpop.permute.xlu0 %1884  ;;  %v1887_v53 = vpop.permute.xlu1 %1886 }
 0x993   :  { %v1915_v51 = vsel %vm1912_vm6, %v1910_v58, %v1885_v41  ;;  %v1916_v2 = vsel %vm1912_vm6, %v1911_v62, %v1887_v53 }
 0xa55   :  { %v1710_v52 = vpop.f32.mrb[56].mxu0 }
 0xa56   :  { %1896 = vrot.lane.b32.xlu0 %v1710_v52, %s2316_s21  ;;  %v2199_v21 = vpop.f32.mrb[57].mxu0 }
 0xa57   :  { %v1713_v22 = vpop.f32.mrb[58].mxu0 }
 0xa58   :  { %v2200_v23 = vpop.f32.mrb[59].mxu0 }
 0xa5b   :  { %v1758_v24 = vpop.f32.mrb[56].mxu1 }
 0xa5c   :  { %1898 = vrot.lane.b32.xlu1 %v1758_v24, %s2316_s21  ;;  %v2205_v25 = vpop.f32.mrb[57].mxu1 }
 0xa5d   :  { %v1761_v26 = vpop.f32.mrb[58].mxu1  ;;  %v1806_v27 = vpop.f32.mrb[60].mxu0 }
 0xa5e   :  { %v2206_v28 = vpop.f32.mrb[59].mxu1  ;;  %1900 = vrot.lane.b32.xlu0 %v1806_v27, %s2316_s21  ;;  %v2211_v3 = vpop.f32.mrb[61].mxu0 }
 0xa5f   :  { %v1809_v29 = vpop.f32.mrb[62].mxu0 }
 0xa60   :  { %v2212_v30 = vpop.f32.mrb[63].mxu0 }
 0xa63   :  { %v1854_v31 = vpop.f32.mrb[60].mxu1 }
 0xa64   :  { %1902 = vrot.lane.b32.xlu1 %v1854_v31, %s2316_s21  ;;  %v2217_v32 = vpop.f32.mrb[61].mxu1 }
 0xa65   :  { %v1857_v33 = vpop.f32.mrb[62].mxu1 }
 0xa66   :  { %v2218_v34 = vpop.f32.mrb[63].mxu1 }
 0xac8   :  { %v1897_v43 = vpop.permute.xlu0 %1896 }
 0xac9   :  { %v1918_v44 = vsel %vm1917_vm7, %v1913_v42, %v1897_v43 }
 0xaca   :  { %1923 = vst.msk [vmem:[%s2726_s1] sm:$0x1f] %vm1922_vm8, %v1918_v44 }
 0xace   :  { %v1899_v46 = vpop.permute.xlu1 %1898 }
 0xacf   :  { %v1919_v50 = vsel %vm1917_vm7, %v1914_v12, %v1899_v46 }
 0xad0   :  { %1924 = vst.msk [vmem:[%s2726_s1 + $0x8] sm:$0x1f] %vm1922_vm8, %v1919_v50  ;;  %v1901_v56 = vpop.permute.xlu0 %1900 }
 0xad1   :  { %v1920_v7 = vsel %vm1917_vm7, %v1915_v51, %v1901_v56 }
 0xad2   :  { %1925 = vst.msk [vmem:[%s2726_s1 + $0x10] sm:$0x1f] %vm1922_vm8, %v1920_v7 }
 0xad6   :  { %v1903_v54 = vpop.permute.xlu1 %1902 }
 0xad7   :  { %v1921_v15 = vsel %vm1917_vm7, %v1916_v2, %v1903_v54 }
 0xad8   :  { %1926 = vst.msk [vmem:[%s2726_s1 + $0x18] sm:$0x1f] %vm1922_vm8, %v1921_v15 }

// kernel: timesformer_forward.53
= control target key start
LH: loop header
LB: loop body
LE: loop exit
PB: predicated region body
PF: predicated region fallthrough
CT: control target
= control target key end

     0   :  { %v131_v3 = vmov 0.0   ;;  %vm132_vm0 = vmmov 0   ;;  %s184_s0 = inlined_call_operand.vmem [shape: f32[2,32], index: 0, kind: input, shape index: {}]   ;;  %s185_s1 = inlined_call_operand.vmem [shape: f32[32,8], index: 1, kind: input, shape index: {}]   ;;  %s186_s2 = inlined_call_operand.vmem [shape: f32[1,8], index: 2, kind: input, shape index: {}]   ;;  %s187_s3 = inlined_call_operand.hbm [shape: f32[2,8], index: 3, kind: output, shape index: {}]  }
   0x1   :  { %v18_v0 = vld [vmem:[%s185_s1] sm:$0xff]  ;;  %v19_v1 = vld [vmem:[%s185_s1 + $0x8] sm:$0xff]  ;;  %v20_v2 = vld [vmem:[%s185_s1 + $0x10] sm:$0xff]  ;;  %96 = vmatprep.subr.bf16.mxu0 %v131_v3  ;;  %100 = vmatprep.mubr.msk.bf16.mxu0 %vm132_vm0, %v131_v3 }
   0x2   :  { %v22_v4 = vpack.c.bf16 %v19_v1, %v18_v0  ;;  %v21_v5 = vld [vmem:[%s185_s1 + $0x18] sm:$0xff] }
   0x3   :  { %8 = vsyncpa [#allocation3], 0  ;;  %v23_v6 = vpack.c.bf16 %v21_v5, %v20_v2  ;;  %v16_v7 = vld [vmem:[%s184_s0] sm:$0x3]  ;;  %vm31_vm1 = vcmask 261120   ;;  %s133_s24 = smov [#allocation2]  }
   0x4   :  { %97 = vmatpush3.bf16.msra.mxu0 %v22_v4  ;;  %v17_v8 = vpack.c.bf16 %v16_v7, %v16_v7  ;;  %v91_v9 = vld [vmem:[%s186_s2] ss:$0 sm:$0xff]  ;;  %s83_s1 = sshll.u32 %s133_s24, 4  ;;  %vm75_vm2 = vcmask 58368   ;;  %s84_s1 = int_to_ptr.vmem [resolvable:$true] %s83_s1 }
   0x5   :  { %98 = vmatprep.subr.bf16.mxu0 %v131_v3  ;;  %s107_s0 = scalar_lea.vmem %s84_s1, 32  ;;  %p112_p1 = scmp.lt.s32.totalorder %s84_s1, %s84_s1 }
   0x6   :  { %p108_p0 = scmp.ne.s32.totalorder %s84_s1, %s107_s0  ;;  %p113_p2 = scmp.lt.s32.totalorder %s107_s0, %s107_s0 }
   0x8   :  { %99 = vmatpush3.bf16.msra.mxu0 %v23_v6  ;;  %p114_p3 = por %p113_p2, %p112_p1 }
   0xa   :  { %p115_p4 = pnand %p114_p3, %p108_p0 }
   0xb   :  { %101 = vmatmul.mubr.msk.bf16.vlgmr.msra.gmra.mrb[0].mxu0 %vm31_vm1, %v17_v8 }
  0xde   :  { %v69_v10 = vpop.f32.mrb[0].mxu0 }
  0xdf   :  { %v70_v11 = vadd.f32 %v91_v9, %v69_v10  ;;  %v102_v12 = vpop.f32.mrb[1].mxu0 }
  0xe0   :  { %v72_v13 = vpop.f32.mrb[2].mxu0 }
  0xe1   :  { %v103_v14 = vpop.f32.mrb[3].mxu0  ;;  %76 = vst.msk [vmem:[#allocation2] sm:$0x3] %vm75_vm2, %v70_v11 }
  0xe2   :  { %118 = shalt.err (!%p115_p4)
}
  0xe3   :  { %s119_s2 = scalar_lea.hbm %s187_s3, 32 }
  0xe4   :  { %p120_p5 = scmp.ne.s32.totalorder %s187_s3, %s119_s2  ;;  %p123_p6 = scmp.lt.u32.totalorder %s119_s2, %s187_s3 }
  0xe6   :  { %p125_p7 = pnand %p123_p6, %p120_p5 }
  0xe8   :  { %128 = shalt.err (!%p125_p7)
}
  0xe9   :  { %86 = dma.vmem_to_hbm [thread:$0]  %s84_s1, 32, %s187_s3, [#allocation3]  }
  0xea   :  { %129 = dma.done.wait [#allocation3], 32  }
  0xeb   :  { %130 = vsyncadd [#allocation3], 4294967264 }
  0xec   :  { %90 = vsyncpa [#allocation3], 1 }

</bundles_post_ra>
